<compile_context>
chip_gen: v5e
topology: v5e:2x2
jax: 0.10.0
libtpu: 0.0.40
codegen_flags: <defaults>
</compile_context>

<pallas_src>
import functools
import math

import jax
import jax.numpy as jnp
from jax.experimental import pallas as pl
from jax.experimental.pallas import tpu as pltpu


def _encoder_block_kernel(x_ref, ln_w_ref, ln_b_ref, wqkv_ref, bqkv_ref,
                          wo_ref, bo_ref, wm_ref, bm_ref, out_ref,
                          *, num_heads, dh, eps):
    bt, n, dim = x_ref.shape
    m = bt * n
    x = x_ref[...].astype(jnp.float32)                 # (bt, n, dim)
    ln_w = ln_w_ref[...]                               # (n, dim) f32
    ln_b = ln_b_ref[...]

    inv_cnt = 1.0 / float(n * dim)

    def layernorm(y):
        # nn.LayerNorm((n, dim)): stats over BOTH trailing dims per batch elem.
        # Two-pass variance (y - mu)^2: no E[y^2]-mu^2 cancellation.
        mu = jnp.sum(jnp.sum(y, axis=2, keepdims=True), axis=1,
                     keepdims=True) * inv_cnt
        d = y - mu
        var = jnp.sum(jnp.sum(d * d, axis=2, keepdims=True), axis=1,
                      keepdims=True) * inv_cnt
        return d * jax.lax.rsqrt(var + eps) * ln_w + ln_b

    # ---- whoa = self.norm(input) ----
    whoa = layernorm(x)

    # ---- uhOh = self.attention(whoa) ----
    # Fused QKV projection on the flattened (m, dim) token slab; bf16 MXU
    # operands, f32 accumulation. 1/sqrt(dh) is pre-folded into the Q columns
    # (weight AND bias) on the host — no in-kernel scale pass.
    whoa2 = whoa.reshape(m, dim).astype(jnp.bfloat16)
    qkv = jnp.dot(whoa2, wqkv_ref[...], preferred_element_type=jnp.float32)
    qkv = qkv + bqkv_ref[...]                          # (m, 3*dim) f32

    def split_heads(which):
        # (m, dim) column block -> head-major (H*bt, n, dh) bf16.
        # Proven lowering: per-head lane slices + leading-axis stack.
        base = which * dim
        cols = [qkv[:, base + h * dh: base + (h + 1) * dh]
                for h in range(num_heads)]
        hmd = jnp.stack(cols, axis=0)                  # (H, m, dh) f32
        return hmd.reshape(num_heads * bt, n, dh).astype(jnp.bfloat16)

    qh = split_heads(0)    # already scaled by 1/sqrt(dh) via the packed weights
    kh = split_heads(1)
    vh = split_heads(2)

    # Scores / softmax / context as ONE batched contraction over (head, batch).
    # TODO(synk): for realistic ViT sequence lengths (n >= ~256), tile the KV
    # axis with an online softmax instead of materializing (H*bt, n, n) f32.
    s = jnp.einsum("bqd,bkd->bqk", qh, kh, preferred_element_type=jnp.float32)
    s = s - jnp.max(s, axis=-1, keepdims=True)
    p = jnp.exp(s)
    # EUP approximate reciprocal: rows sum to ~1 (intentional precision trade).
    p = p * pl.reciprocal(jnp.sum(p, axis=-1, keepdims=True), approx=True)
    ctx = jnp.einsum("bqk,bkd->bqd", p.astype(jnp.bfloat16), vh,
                     preferred_element_type=jnp.float32)   # (H*bt, n, dh) f32

    # Head merge + output projection as one head-batched MXU contraction:
    # uhOh = sum_h ctx_h @ Wo_h  (Wo pre-reshaped to (H, dh, dim) on the host).
    # No lane-axis concatenation of per-head context.
    ctx = ctx.reshape(num_heads, m, dh).astype(jnp.bfloat16)   # (H, m, dh)
    per_head = jnp.einsum("hmd,hde->hme", ctx, wo_ref[...],
                          preferred_element_type=jnp.float32)  # (H, m, dim)
    uhOh = jnp.sum(per_head, axis=0) + bo_ref[...]             # (m, dim)

    # ---- residual + shared LayerNorm + MLP + residual ----
    toAdd = uhOh.reshape(bt, n, dim) + x
    uhHuh = layernorm(toAdd)
    mlp = jnp.dot(uhHuh.reshape(m, dim).astype(jnp.bfloat16), wm_ref[...],
                  preferred_element_type=jnp.float32) + bm_ref[...]
    out_ref[...] = (mlp.reshape(bt, n, dim) + toAdd).astype(out_ref.dtype)


def _pick_block_b(B, n, dim, num_heads, *, target_rows, vmem_budget):
    """Largest divisor of B (=> no host-side padding) whose (block_b * n) row
    count stays near `target_rows` and whose rough VMEM footprint fits."""
    def est_bytes(bb):
        rows = bb * n
        act = rows * dim * 4                      # one f32 (rows, dim) slab
        scores = num_heads * bb * n * n * 4       # f32 (H*bb, n, n) scores
        # ~double-buffered x/out tiles + ~8 live activation temps + s/p.
        return 12 * act + 2 * scores

    divisors = [d for d in range(1, B + 1) if B % d == 0]
    fitting = [d for d in divisors if est_bytes(d) <= vmem_budget]
    if not fitting:
        return 1
    # Tiny workload: one grid step with the whole batch (splitting latency-
    # bound work across the megacore is pure overhead).
    if B * n <= target_rows and B in fitting:
        return B
    under = [d for d in fitting if d * n <= target_rows]
    return max(under) if under else min(fitting)


def encoder_block(x, params, *, num_heads, block_b=None):
    B, n, dim = x.shape
    if dim % num_heads != 0:
        raise ValueError("dim must be divisible by num_heads")
    if n % 8 != 0:
        # TODO(synk): pad n to a multiple of 8 (with key masking in the softmax)
        # to support non-sublane-aligned sequence lengths.
        raise ValueError("this kernel requires n % 8 == 0")
    dh = dim // num_heads

    # ---- host-side parameter packing ----
    #  * fused QKV weight/bias with the 1/sqrt(dh) scale folded into Q columns
    #  * W_out pre-reshaped to (H, dh, dim) so the head merge is a batched MXU
    #    contraction instead of a lane-axis concat
    #  * matmul weights in bf16 (MXU-native, halves weight DMA + VMEM); biases
    #    and LayerNorm params stay f32 (VPU path, f32 accumulation).
    scale = 1.0 / math.sqrt(dh)
    wqkv = jnp.concatenate([params["wq"] * scale, params["wk"], params["wv"]],
                           axis=1).astype(jnp.bfloat16)
    bqkv = jnp.concatenate([params["bq"] * scale, params["bk"], params["bv"]],
                           axis=1).astype(jnp.float32)
    wo = params["wo"].reshape(num_heads, dh, dim).astype(jnp.bfloat16)
    bo = params["bo"].astype(jnp.float32)
    wm = params["wm"].astype(jnp.bfloat16)
    bm = params["bm"].astype(jnp.float32)
    ln_w = params["ln_w"].astype(jnp.float32)
    ln_b = params["ln_b"].astype(jnp.float32)

    # ---- per-chip VMEM budget ----
    # 64 MiB parts (v7x): ~48 MiB (headroom for pipelined tiles + Mosaic
    # scratch). 128 MiB parts (v5e/v6e): raise to ~100 MiB so block_b can grow
    # toward MXU-filling tile sizes.
    try:
        phys_vmem = int(pltpu.get_tpu_info().vmem_capacity_bytes)
    except Exception:
        phys_vmem = 64 * 1024 * 1024              # conservative fallback
    vmem_limit = max(32 * 1024 * 1024,
                     min(phys_vmem - 16 * 1024 * 1024, 100 * 1024 * 1024))

    # ---- batch tiling: block_b divides B (no host-side pad / extra HBM copy) ----
    if block_b is None:
        block_b = _pick_block_b(B, n, dim, num_heads,
                                target_rows=512,   # ~256 already fills v5e MXU
                                vmem_budget=vmem_limit // 2)
    if B % block_b != 0:
        raise ValueError("block_b must divide B")
    grid = (B // block_b,)

    kernel = functools.partial(_encoder_block_kernel,
                               num_heads=num_heads, dh=dh, eps=1e-5)

    # Grid-invariant operands (weights / biases / LN params): whole-array VMEM
    # residents — copied in once, no per-step windowing / double-buffer pair.
    resident = pl.BlockSpec(memory_space=pltpu.MemorySpace.VMEM)
    in_specs = [
        pl.BlockSpec((block_b, n, dim), lambda i: (i, 0, 0)),   # x tile
        resident,   # ln weight   (n, dim)        f32
        resident,   # ln bias     (n, dim)        f32
        resident,   # fused W_qkv (dim, 3*dim)    bf16 (Q cols pre-scaled)
        resident,   # fused b_qkv (1, 3*dim)      f32
        resident,   # W_out       (H, dh, dim)    bf16
        resident,   # b_out       (1, dim)        f32
        resident,   # W_mlp       (dim, dim)      bf16
        resident,   # b_mlp       (1, dim)        f32
    ]
    out_spec = pl.BlockSpec((block_b, n, dim), lambda i: (i, 0, 0))

    return pl.pallas_call(
        kernel,
        out_shape=jax.ShapeDtypeStruct((B, n, dim), x.dtype),
        grid_spec=pltpu.PrefetchScalarGridSpec(
            num_scalar_prefetch=0,
            grid=grid,
            in_specs=in_specs,
            out_specs=out_spec,
        ),
        compiler_params=pltpu.CompilerParams(
            dimension_semantics=("parallel",),
            vmem_limit_bytes=vmem_limit,
        ),
    )(x, ln_w, ln_b, wqkv, bqkv, wo, bo, wm, bm)


def encoder_block_ref(x, params, *, num_heads):
    """Pure-JAX f32 reference mirroring the PyTorch forward."""
    B, n, dim = x.shape
    dh = dim // num_heads

    def layernorm(y):  # stats over (n, dim) per batch element
        mu = jnp.mean(y, axis=(1, 2), keepdims=True)
        var = jnp.mean((y - mu) ** 2, axis=(1, 2), keepdims=True)
        return (y - mu) / jnp.sqrt(var + 1e-5) * params["ln_w"] + params["ln_b"]

    whoa = layernorm(x)
    q = whoa @ params["wq"] + params["bq"]
    k = whoa @ params["wk"] + params["bk"]
    v = whoa @ params["wv"] + params["bv"]
    q = q.reshape(B, n, num_heads, dh).transpose(0, 2, 1, 3)
    k = k.reshape(B, n, num_heads, dh).transpose(0, 2, 1, 3)
    v = v.reshape(B, n, num_heads, dh).transpose(0, 2, 1, 3)
    s = jnp.einsum("bhqd,bhkd->bhqk", q, k) / math.sqrt(dh)
    p = jax.nn.softmax(s, axis=-1)
    attn = jnp.einsum("bhqk,bhkd->bhqd", p, v).transpose(0, 2, 1, 3).reshape(B, n, dim)
    uhOh = attn @ params["wo"] + params["bo"]
    toAdd = uhOh + x
    uhHuh = layernorm(toAdd)
    return uhHuh @ params["wm"] + params["bm"] + toAdd


def make_params(key, n, dim):
    ks = jax.random.split(key, 12)
    r = lambda k, shape, s: jax.random.normal(k, shape, jnp.float32) * s
    w = 0.05
    return {
        "ln_w": jnp.ones((n, dim), jnp.float32) + r(ks[0], (n, dim), 0.02),
        "ln_b": r(ks[1], (n, dim), 0.02),
        "wq": r(ks[2], (dim, dim), w), "bq": r(ks[3], (1, dim), w),
        "wk": r(ks[4], (dim, dim), w), "bk": r(ks[5], (1, dim), w),
        "wv": r(ks[6], (dim, dim), w), "bv": r(ks[7], (1, dim), w),
        "wo": r(ks[8], (dim, dim), w), "bo": r(ks[9], (1, dim), w),
        "wm": r(ks[10], (dim, dim), w), "bm": r(ks[11], (1, dim), w),
    }


if __name__ == "__main__":
    B, n, dim, num_heads = 4, 16, 128, 4     # lane-dense dim, sublane-aligned n
    key = jax.random.PRNGKey(0)
    kx, kp = jax.random.split(key)
    x = jax.random.normal(kx, (B, n, dim), jnp.float32)
    params = make_params(kp, n, dim)

    out = jax.block_until_ready(encoder_block(x, params, num_heads=num_heads))
    ref = encoder_block_ref(x, params, num_heads=num_heads)

    assert out.shape == (B, n, dim)
    # bf16 MXU operands (f32 accumulation) + approx softmax reciprocal =>
    # relaxed tolerance vs the f32 reference.
    assert jnp.allclose(out, ref, atol=5e-2, rtol=5e-2), "mismatch vs JAX reference"

    print("KERNEL_OK")
</pallas_src>

<mosaic_0001>
module attributes {stable_mosaic.version = 11 : i64} {
  func.func @_encoder_block_kernel(%arg0: i32, %arg1: memref<4x16x128xf32, #tpu.memory_space<vmem>>, %arg2: memref<16x128xf32, #tpu.memory_space<vmem>>, %arg3: memref<16x128xf32, #tpu.memory_space<vmem>>, %arg4: memref<128x384xbf16, #tpu.memory_space<vmem>>, %arg5: memref<1x384xf32, #tpu.memory_space<vmem>>, %arg6: memref<4x32x128xbf16, #tpu.memory_space<vmem>>, %arg7: memref<1x128xf32, #tpu.memory_space<vmem>>, %arg8: memref<128x128xbf16, #tpu.memory_space<vmem>>, %arg9: memref<1x128xf32, #tpu.memory_space<vmem>>, %arg10: memref<4x16x128xf32, #tpu.memory_space<vmem>>) attributes {dimension_semantics = [#tpu.dimension_semantics<parallel>], iteration_bounds = array<i64: 1>, scalar_prefetch = 0 : i64, scratch_operands = 0 : i64, tpu.core_type = #tpu.core_type<tc>, window_params = [{transform_indices = @transform_0, window_bounds = array<i64: 4, 16, 128>}, {pipeline_mode = #tpu.pipeline_mode<synchronous>, transform_indices = @transform_1, window_bounds = array<i64: 16, 128>}, {pipeline_mode = #tpu.pipeline_mode<synchronous>, transform_indices = @transform_2, window_bounds = array<i64: 16, 128>}, {pipeline_mode = #tpu.pipeline_mode<synchronous>, transform_indices = @transform_3, window_bounds = array<i64: 128, 384>}, {pipeline_mode = #tpu.pipeline_mode<synchronous>, transform_indices = @transform_4, window_bounds = array<i64: 1, 384>}, {pipeline_mode = #tpu.pipeline_mode<synchronous>, transform_indices = @transform_5, window_bounds = array<i64: 4, 32, 128>}, {pipeline_mode = #tpu.pipeline_mode<synchronous>, transform_indices = @transform_6, window_bounds = array<i64: 1, 128>}, {pipeline_mode = #tpu.pipeline_mode<synchronous>, transform_indices = @transform_7, window_bounds = array<i64: 128, 128>}, {pipeline_mode = #tpu.pipeline_mode<synchronous>, transform_indices = @transform_8, window_bounds = array<i64: 1, 128>}, {transform_indices = @transform_9, window_bounds = array<i64: 4, 16, 128>}]} {
    %c0 = arith.constant 0 : index
    %c0_0 = arith.constant 0 : index
    %c0_1 = arith.constant 0 : index
    %0 = vector.load %arg1[%c0, %c0_0, %c0_1] : memref<4x16x128xf32, #tpu.memory_space<vmem>>, vector<4x16x128xf32>
    %c0_2 = arith.constant 0 : index
    %c0_3 = arith.constant 0 : index
    %1 = vector.load %arg2[%c0_2, %c0_3] : memref<16x128xf32, #tpu.memory_space<vmem>>, vector<16x128xf32>
    %c0_4 = arith.constant 0 : index
    %c0_5 = arith.constant 0 : index
    %2 = vector.load %arg3[%c0_4, %c0_5] : memref<16x128xf32, #tpu.memory_space<vmem>>, vector<16x128xf32>
    %cst = arith.constant dense<0.000000e+00> : vector<4x16xf32>
    %3 = vector.multi_reduction <add>, %0, %cst [2] : vector<4x16x128xf32> to vector<4x16xf32>
    %4 = vector.shape_cast %3 : vector<4x16xf32> to vector<4x16x1xf32>
    %cst_6 = arith.constant dense<0.000000e+00> : vector<4x1xf32>
    %5 = vector.multi_reduction <add>, %4, %cst_6 [1] : vector<4x16x1xf32> to vector<4x1xf32>
    %6 = vector.shape_cast %5 : vector<4x1xf32> to vector<4x1x1xf32>
    %cst_7 = arith.constant 4.8828125E-4 : f32
    %7 = vector.broadcast %cst_7 : f32 to vector<4x1x1xf32>
    %8 = arith.mulf %6, %7 : vector<4x1x1xf32>
    %9 = vector.broadcast %8 : vector<4x1x1xf32> to vector<4x16x128xf32>
    %10 = arith.subf %0, %9 : vector<4x16x128xf32>
    %11 = arith.mulf %10, %10 : vector<4x16x128xf32>
    %cst_8 = arith.constant dense<0.000000e+00> : vector<4x16xf32>
    %12 = vector.multi_reduction <add>, %11, %cst_8 [2] : vector<4x16x128xf32> to vector<4x16xf32>
    %13 = vector.shape_cast %12 : vector<4x16xf32> to vector<4x16x1xf32>
    %cst_9 = arith.constant dense<0.000000e+00> : vector<4x1xf32>
    %14 = vector.multi_reduction <add>, %13, %cst_9 [1] : vector<4x16x1xf32> to vector<4x1xf32>
    %15 = vector.shape_cast %14 : vector<4x1xf32> to vector<4x1x1xf32>
    %cst_10 = arith.constant 4.8828125E-4 : f32
    %16 = vector.broadcast %cst_10 : f32 to vector<4x1x1xf32>
    %17 = arith.mulf %15, %16 : vector<4x1x1xf32>
    %cst_11 = arith.constant 9.99999974E-6 : f32
    %18 = vector.broadcast %cst_11 : f32 to vector<4x1x1xf32>
    %19 = arith.addf %17, %18 : vector<4x1x1xf32>
    %20 = math.rsqrt %19 : vector<4x1x1xf32>
    %21 = vector.broadcast %20 : vector<4x1x1xf32> to vector<4x16x128xf32>
    %22 = arith.mulf %10, %21 : vector<4x16x128xf32>
    %23 = vector.shape_cast %1 : vector<16x128xf32> to vector<1x16x128xf32>
    %24 = vector.broadcast %23 : vector<1x16x128xf32> to vector<4x16x128xf32>
    %25 = arith.mulf %22, %24 : vector<4x16x128xf32>
    %26 = vector.shape_cast %2 : vector<16x128xf32> to vector<1x16x128xf32>
    %27 = vector.broadcast %26 : vector<1x16x128xf32> to vector<4x16x128xf32>
    %28 = arith.addf %25, %27 : vector<4x16x128xf32>
    %29 = vector.shape_cast %28 : vector<4x16x128xf32> to vector<64x128xf32>
    %30 = arith.truncf %29 : vector<64x128xf32> to vector<64x128xbf16>
    %c0_12 = arith.constant 0 : index
    %c0_13 = arith.constant 0 : index
    %31 = vector.load %arg4[%c0_12, %c0_13] : memref<128x384xbf16, #tpu.memory_space<vmem>>, vector<128x384xbf16>
    %cst_14 = arith.constant dense<0.000000e+00> : vector<64x384xf32>
    %32 = tpu.matmul %30, %31, %cst_14 {dimension_numbers = #tpu.dot_dimension_numbers<[1], [0], [0], [1], [0, 0, 1, 1], [], []>} : vector<64x128xbf16>, vector<128x384xbf16>, vector<64x384xf32> -> vector<64x384xf32>
    %c0_15 = arith.constant 0 : index
    %c0_16 = arith.constant 0 : index
    %33 = vector.load %arg5[%c0_15, %c0_16] : memref<1x384xf32, #tpu.memory_space<vmem>>, vector<1x384xf32>
    %34 = vector.broadcast %33 : vector<1x384xf32> to vector<64x384xf32>
    %35 = arith.addf %32, %34 : vector<64x384xf32>
    %36 = vector.extract_strided_slice %35 {offsets = [0, 0], sizes = [64, 32], strides = [1, 1]} : vector<64x384xf32> to vector<64x32xf32>
    %37 = vector.extract_strided_slice %35 {offsets = [0, 32], sizes = [64, 32], strides = [1, 1]} : vector<64x384xf32> to vector<64x32xf32>
    %38 = vector.extract_strided_slice %35 {offsets = [0, 64], sizes = [64, 32], strides = [1, 1]} : vector<64x384xf32> to vector<64x32xf32>
    %39 = vector.extract_strided_slice %35 {offsets = [0, 96], sizes = [64, 32], strides = [1, 1]} : vector<64x384xf32> to vector<64x32xf32>
    %40 = vector.shape_cast %36 : vector<64x32xf32> to vector<1x64x32xf32>
    %41 = vector.shape_cast %37 : vector<64x32xf32> to vector<1x64x32xf32>
    %42 = vector.shape_cast %38 : vector<64x32xf32> to vector<1x64x32xf32>
    %43 = vector.shape_cast %39 : vector<64x32xf32> to vector<1x64x32xf32>
    %44 = tpu.concatenate %40, %41, %42, %43 in 0 : vector<1x64x32xf32>, vector<1x64x32xf32>, vector<1x64x32xf32>, vector<1x64x32xf32> -> vector<4x64x32xf32>
    %45 = vector.shape_cast %44 : vector<4x64x32xf32> to vector<16x16x32xf32>
    %46 = arith.truncf %45 : vector<16x16x32xf32> to vector<16x16x32xbf16>
    %47 = vector.extract_strided_slice %35 {offsets = [0, 128], sizes = [64, 32], strides = [1, 1]} : vector<64x384xf32> to vector<64x32xf32>
    %48 = vector.extract_strided_slice %35 {offsets = [0, 160], sizes = [64, 32], strides = [1, 1]} : vector<64x384xf32> to vector<64x32xf32>
    %49 = vector.extract_strided_slice %35 {offsets = [0, 192], sizes = [64, 32], strides = [1, 1]} : vector<64x384xf32> to vector<64x32xf32>
    %50 = vector.extract_strided_slice %35 {offsets = [0, 224], sizes = [64, 32], strides = [1, 1]} : vector<64x384xf32> to vector<64x32xf32>
    %51 = vector.shape_cast %47 : vector<64x32xf32> to vector<1x64x32xf32>
    %52 = vector.shape_cast %48 : vector<64x32xf32> to vector<1x64x32xf32>
    %53 = vector.shape_cast %49 : vector<64x32xf32> to vector<1x64x32xf32>
    %54 = vector.shape_cast %50 : vector<64x32xf32> to vector<1x64x32xf32>
    %55 = tpu.concatenate %51, %52, %53, %54 in 0 : vector<1x64x32xf32>, vector<1x64x32xf32>, vector<1x64x32xf32>, vector<1x64x32xf32> -> vector<4x64x32xf32>
    %56 = vector.shape_cast %55 : vector<4x64x32xf32> to vector<16x16x32xf32>
    %57 = arith.truncf %56 : vector<16x16x32xf32> to vector<16x16x32xbf16>
    %58 = vector.extract_strided_slice %35 {offsets = [0, 256], sizes = [64, 32], strides = [1, 1]} : vector<64x384xf32> to vector<64x32xf32>
    %59 = vector.extract_strided_slice %35 {offsets = [0, 288], sizes = [64, 32], strides = [1, 1]} : vector<64x384xf32> to vector<64x32xf32>
    %60 = vector.extract_strided_slice %35 {offsets = [0, 320], sizes = [64, 32], strides = [1, 1]} : vector<64x384xf32> to vector<64x32xf32>
    %61 = vector.extract_strided_slice %35 {offsets = [0, 352], sizes = [64, 32], strides = [1, 1]} : vector<64x384xf32> to vector<64x32xf32>
    %62 = vector.shape_cast %58 : vector<64x32xf32> to vector<1x64x32xf32>
    %63 = vector.shape_cast %59 : vector<64x32xf32> to vector<1x64x32xf32>
    %64 = vector.shape_cast %60 : vector<64x32xf32> to vector<1x64x32xf32>
    %65 = vector.shape_cast %61 : vector<64x32xf32> to vector<1x64x32xf32>
    %66 = tpu.concatenate %62, %63, %64, %65 in 0 : vector<1x64x32xf32>, vector<1x64x32xf32>, vector<1x64x32xf32>, vector<1x64x32xf32> -> vector<4x64x32xf32>
    %67 = vector.shape_cast %66 : vector<4x64x32xf32> to vector<16x16x32xf32>
    %68 = arith.truncf %67 : vector<16x16x32xf32> to vector<16x16x32xbf16>
    "tpu.trace_start"() <{level = 10 : i32, message = "bqd,bkd->bqk"}> : () -> ()
    %cst_17 = arith.constant dense<0.000000e+00> : vector<16x16x16xf32>
    %69 = tpu.matmul %46, %57, %cst_17 {dimension_numbers = #tpu.dot_dimension_numbers<[2], [2], [1], [1], [0, 0, 0, 1, 1, 1], [0], [0]>} : vector<16x16x32xbf16>, vector<16x16x32xbf16>, vector<16x16x16xf32> -> vector<16x16x16xf32>
    "tpu.trace_stop"() : () -> ()
    %cst_18 = arith.constant dense<0xFF800000> : vector<16x16xf32>
    %70 = vector.multi_reduction <maximumf>, %69, %cst_18 [2] : vector<16x16x16xf32> to vector<16x16xf32>
    %71 = vector.shape_cast %70 : vector<16x16xf32> to vector<16x16x1xf32>
    %72 = vector.broadcast %71 : vector<16x16x1xf32> to vector<16x16x16xf32>
    %73 = arith.subf %69, %72 : vector<16x16x16xf32>
    %74 = math.exp %73 : vector<16x16x16xf32>
    %cst_19 = arith.constant dense<0.000000e+00> : vector<16x16xf32>
    %75 = vector.multi_reduction <add>, %74, %cst_19 [2] : vector<16x16x16xf32> to vector<16x16xf32>
    %76 = vector.shape_cast %75 : vector<16x16xf32> to vector<16x16x1xf32>
    %77 = tpu.reciprocal %76 {approx = true} : vector<16x16x1xf32> -> vector<16x16x1xf32>
    %78 = vector.broadcast %77 : vector<16x16x1xf32> to vector<16x16x16xf32>
    %79 = arith.mulf %74, %78 : vector<16x16x16xf32>
    %80 = arith.truncf %79 : vector<16x16x16xf32> to vector<16x16x16xbf16>
    "tpu.trace_start"() <{level = 10 : i32, message = "bqk,bkd->bqd"}> : () -> ()
    %cst_20 = arith.constant dense<0.000000e+00> : vector<16x16x32xf32>
    %81 = tpu.matmul %80, %68, %cst_20 {dimension_numbers = #tpu.dot_dimension_numbers<[2], [1], [1], [2], [0, 0, 0, 1, 1, 2], [0], [0]>} : vector<16x16x16xbf16>, vector<16x16x32xbf16>, vector<16x16x32xf32> -> vector<16x16x32xf32>
    "tpu.trace_stop"() : () -> ()
    %82 = vector.shape_cast %81 : vector<16x16x32xf32> to vector<4x64x32xf32>
    %83 = arith.truncf %82 : vector<4x64x32xf32> to vector<4x64x32xbf16>
    %c0_21 = arith.constant 0 : index
    %c0_22 = arith.constant 0 : index
    %c0_23 = arith.constant 0 : index
    %84 = vector.load %arg6[%c0_21, %c0_22, %c0_23] : memref<4x32x128xbf16, #tpu.memory_space<vmem>>, vector<4x32x128xbf16>
    "tpu.trace_start"() <{level = 10 : i32, message = "hmd,hde->hme"}> : () -> ()
    %cst_24 = arith.constant dense<0.000000e+00> : vector<4x64x128xf32>
    %85 = tpu.matmul %83, %84, %cst_24 {dimension_numbers = #tpu.dot_dimension_numbers<[2], [1], [1], [2], [0, 0, 0, 1, 1, 2], [0], [0]>} : vector<4x64x32xbf16>, vector<4x32x128xbf16>, vector<4x64x128xf32> -> vector<4x64x128xf32>
    "tpu.trace_stop"() : () -> ()
    %cst_25 = arith.constant dense<0.000000e+00> : vector<64x128xf32>
    %86 = vector.multi_reduction <add>, %85, %cst_25 [0] : vector<4x64x128xf32> to vector<64x128xf32>
    %c0_26 = arith.constant 0 : index
    %c0_27 = arith.constant 0 : index
    %87 = vector.load %arg7[%c0_26, %c0_27] : memref<1x128xf32, #tpu.memory_space<vmem>>, vector<1x128xf32>
    %88 = vector.broadcast %87 : vector<1x128xf32> to vector<64x128xf32>
    %89 = arith.addf %86, %88 : vector<64x128xf32>
    %90 = vector.shape_cast %89 : vector<64x128xf32> to vector<4x16x128xf32>
    %91 = arith.addf %90, %0 : vector<4x16x128xf32>
    %cst_28 = arith.constant dense<0.000000e+00> : vector<4x16xf32>
    %92 = vector.multi_reduction <add>, %91, %cst_28 [2] : vector<4x16x128xf32> to vector<4x16xf32>
    %93 = vector.shape_cast %92 : vector<4x16xf32> to vector<4x16x1xf32>
    %cst_29 = arith.constant dense<0.000000e+00> : vector<4x1xf32>
    %94 = vector.multi_reduction <add>, %93, %cst_29 [1] : vector<4x16x1xf32> to vector<4x1xf32>
    %95 = vector.shape_cast %94 : vector<4x1xf32> to vector<4x1x1xf32>
    %cst_30 = arith.constant 4.8828125E-4 : f32
    %96 = vector.broadcast %cst_30 : f32 to vector<4x1x1xf32>
    %97 = arith.mulf %95, %96 : vector<4x1x1xf32>
    %98 = vector.broadcast %97 : vector<4x1x1xf32> to vector<4x16x128xf32>
    %99 = arith.subf %91, %98 : vector<4x16x128xf32>
    %100 = arith.mulf %99, %99 : vector<4x16x128xf32>
    %cst_31 = arith.constant dense<0.000000e+00> : vector<4x16xf32>
    %101 = vector.multi_reduction <add>, %100, %cst_31 [2] : vector<4x16x128xf32> to vector<4x16xf32>
    %102 = vector.shape_cast %101 : vector<4x16xf32> to vector<4x16x1xf32>
    %cst_32 = arith.constant dense<0.000000e+00> : vector<4x1xf32>
    %103 = vector.multi_reduction <add>, %102, %cst_32 [1] : vector<4x16x1xf32> to vector<4x1xf32>
    %104 = vector.shape_cast %103 : vector<4x1xf32> to vector<4x1x1xf32>
    %cst_33 = arith.constant 4.8828125E-4 : f32
    %105 = vector.broadcast %cst_33 : f32 to vector<4x1x1xf32>
    %106 = arith.mulf %104, %105 : vector<4x1x1xf32>
    %cst_34 = arith.constant 9.99999974E-6 : f32
    %107 = vector.broadcast %cst_34 : f32 to vector<4x1x1xf32>
    %108 = arith.addf %106, %107 : vector<4x1x1xf32>
    %109 = math.rsqrt %108 : vector<4x1x1xf32>
    %110 = vector.broadcast %109 : vector<4x1x1xf32> to vector<4x16x128xf32>
    %111 = arith.mulf %99, %110 : vector<4x16x128xf32>
    %112 = vector.shape_cast %1 : vector<16x128xf32> to vector<1x16x128xf32>
    %113 = vector.broadcast %112 : vector<1x16x128xf32> to vector<4x16x128xf32>
    %114 = arith.mulf %111, %113 : vector<4x16x128xf32>
    %115 = vector.shape_cast %2 : vector<16x128xf32> to vector<1x16x128xf32>
    %116 = vector.broadcast %115 : vector<1x16x128xf32> to vector<4x16x128xf32>
    %117 = arith.addf %114, %116 : vector<4x16x128xf32>
    %118 = vector.shape_cast %117 : vector<4x16x128xf32> to vector<64x128xf32>
    %119 = arith.truncf %118 : vector<64x128xf32> to vector<64x128xbf16>
    %c0_35 = arith.constant 0 : index
    %c0_36 = arith.constant 0 : index
    %120 = vector.load %arg8[%c0_35, %c0_36] : memref<128x128xbf16, #tpu.memory_space<vmem>>, vector<128x128xbf16>
    %cst_37 = arith.constant dense<0.000000e+00> : vector<64x128xf32>
    %121 = tpu.matmul %119, %120, %cst_37 {dimension_numbers = #tpu.dot_dimension_numbers<[1], [0], [0], [1], [0, 0, 1, 1], [], []>} : vector<64x128xbf16>, vector<128x128xbf16>, vector<64x128xf32> -> vector<64x128xf32>
    %c0_38 = arith.constant 0 : index
    %c0_39 = arith.constant 0 : index
    %122 = vector.load %arg9[%c0_38, %c0_39] : memref<1x128xf32, #tpu.memory_space<vmem>>, vector<1x128xf32>
    %123 = vector.broadcast %122 : vector<1x128xf32> to vector<64x128xf32>
    %124 = arith.addf %121, %123 : vector<64x128xf32>
    %125 = vector.shape_cast %124 : vector<64x128xf32> to vector<4x16x128xf32>
    %126 = arith.addf %125, %91 : vector<4x16x128xf32>
    %c0_40 = arith.constant 0 : index
    %c0_41 = arith.constant 0 : index
    %c0_42 = arith.constant 0 : index
    %127 = vector.load %arg10[%c0_40, %c0_41, %c0_42] : memref<4x16x128xf32, #tpu.memory_space<vmem>>, vector<4x16x128xf32>
    tpu.vector_store %arg10[%c0_40, %c0_41, %c0_42], %126 {strides = array<i32>} : memref<4x16x128xf32, #tpu.memory_space<vmem>>, vector<4x16x128xf32>,
    return
  }
  func.func @transform_0(%arg0: i32) -> (i32, i32, i32) {
    %c0_i32 = arith.constant 0 : i32
    %c0_i32_0 = arith.constant 0 : i32
    %c0_i32_1 = arith.constant 0 : i32
    return %arg0, %c0_i32, %c0_i32_0 : i32, i32, i32
  }
  func.func @transform_1(%arg0: i32) -> (i32, i32) {
    %c0_i32 = arith.constant 0 : i32
    %c0_i32_0 = arith.constant 0 : i32
    %c0_i32_1 = arith.constant 0 : i32
    return %c0_i32, %c0_i32_0 : i32, i32
  }
  func.func @transform_2(%arg0: i32) -> (i32, i32) {
    %c0_i32 = arith.constant 0 : i32
    %c0_i32_0 = arith.constant 0 : i32
    %c0_i32_1 = arith.constant 0 : i32
    return %c0_i32, %c0_i32_0 : i32, i32
  }
  func.func @transform_3(%arg0: i32) -> (i32, i32) {
    %c0_i32 = arith.constant 0 : i32
    %c0_i32_0 = arith.constant 0 : i32
    %c0_i32_1 = arith.constant 0 : i32
    return %c0_i32, %c0_i32_0 : i32, i32
  }
  func.func @transform_4(%arg0: i32) -> (i32, i32) {
    %c0_i32 = arith.constant 0 : i32
    %c0_i32_0 = arith.constant 0 : i32
    %c0_i32_1 = arith.constant 0 : i32
    return %c0_i32, %c0_i32_0 : i32, i32
  }
  func.func @transform_5(%arg0: i32) -> (i32, i32, i32) {
    %c0_i32 = arith.constant 0 : i32
    %c0_i32_0 = arith.constant 0 : i32
    %c0_i32_1 = arith.constant 0 : i32
    %c0_i32_2 = arith.constant 0 : i32
    return %c0_i32, %c0_i32_0, %c0_i32_1 : i32, i32, i32
  }
  func.func @transform_6(%arg0: i32) -> (i32, i32) {
    %c0_i32 = arith.constant 0 : i32
    %c0_i32_0 = arith.constant 0 : i32
    %c0_i32_1 = arith.constant 0 : i32
    return %c0_i32, %c0_i32_0 : i32, i32
  }
  func.func @transform_7(%arg0: i32) -> (i32, i32) {
    %c0_i32 = arith.constant 0 : i32
    %c0_i32_0 = arith.constant 0 : i32
    %c0_i32_1 = arith.constant 0 : i32
    return %c0_i32, %c0_i32_0 : i32, i32
  }
  func.func @transform_8(%arg0: i32) -> (i32, i32) {
    %c0_i32 = arith.constant 0 : i32
    %c0_i32_0 = arith.constant 0 : i32
    %c0_i32_1 = arith.constant 0 : i32
    return %c0_i32, %c0_i32_0 : i32, i32
  }
  func.func @transform_9(%arg0: i32) -> (i32, i32, i32) {
    %c0_i32 = arith.constant 0 : i32
    %c0_i32_0 = arith.constant 0 : i32
    %c0_i32_1 = arith.constant 0 : i32
    return %arg0, %c0_i32, %c0_i32_0 : i32, i32, i32
  }
}

</mosaic_0001>

<bundles_post_ra>
// kernel: tpu_custom_call.1
= control target key start
LH: loop header
LB: loop body
LE: loop exit
PB: predicated region body
PF: predicated region fallthrough
CT: control target
= control target key end

     0   :  { %14 = vsyncpa [#allocation3], 0  ;;  %s4563_s0 = inlined_call_operand.hbm [shape: f32[4,16,128], index: 0, kind: input, shape index: {}]   ;;  %s4564_s1 = inlined_call_operand.hbm [shape: f32[16,128], index: 1, kind: input, shape index: {}]   ;;  %s4565_s2 = inlined_call_operand.hbm [shape: f32[16,128], index: 2, kind: input, shape index: {}]   ;;  %s4566_s3 = inlined_call_operand.hbm [shape: bf16[128,384], index: 3, kind: input, shape index: {}]   ;;  %s4567_s4 = inlined_call_operand.vmem [shape: f32[1,384], index: 4, kind: input, shape index: {}]   ;;  %s4568_s5 = inlined_call_operand.hbm [shape: bf16[4,32,128], index: 5, kind: input, shape index: {}]   ;;  %s4569_s6 = inlined_call_operand.vmem [shape: f32[1,128], index: 6, kind: input, shape index: {}]   ;;  %s4570_s7 = inlined_call_operand.hbm [shape: bf16[128,128], index: 7, kind: input, shape index: {}]   ;;  %s4571_s8 = inlined_call_operand.vmem [shape: f32[1,128], index: 8, kind: input, shape index: {}]   ;;  %s4572_s9 = inlined_call_operand.hbm [shape: f32[4,16,128], index: 9, kind: output, shape index: {}]  }
   0x1   :  { %15 = vsyncpa [#allocation6], 0 }
   0x2   :  { %16 = vsyncpa [#allocation9], 0 }
   0x3   :  { %17 = vsyncpa [#allocation12], 0 }
   0x4   :  { %18 = vsyncpa [#allocation4], 0  ;;  %s36_s11 = sshll.u32 %s4564_s1, 4  ;;  %s3713_s12 = smov [#allocation5]   ;;  %s37_s11 = int_to_ptr.hbm [resolvable:$true] %s36_s11 }
   0x5   :  { %s38_s13 = sshll.u32 %s3713_s12, 4  ;;  %s62_s16 = sshll.u32 %s4566_s3, 4  ;;  %s39_s13 = int_to_ptr.vmem [resolvable:$true] %s38_s13  ;;  %s63_s16 = int_to_ptr.hbm [resolvable:$true] %s62_s16 }
   0x6   :  { %s3714_s17 = smov 128   ;;  %s3715_s18 = smov 8  }
   0x7   :  { %44 = dma.hbm_to_vmem [thread:$0]  %s37_s11, 256, %s39_s13, [#allocation6], %s3714_s17, %s3714_s17, %s3715_s18  }
   0x8   :  { %s3716_s19 = smov [#allocation8]   ;;  %s3717_s21 = smov 192  }
   0x9   :  { %s64_s20 = sshll.u32 %s3716_s19, 4  ;;  %s3718_s1 = smov 12   ;;  %s65_s20 = int_to_ptr.vmem [resolvable:$true] %s64_s20 }
   0xa   :  { %70 = dma.hbm_to_vmem [thread:$0]  %s63_s16, 3072, %s65_s20, [#allocation9], %s3717_s21, %s3717_s21, %s3718_s1  }
   0xb   :  { %s23_s24 = sshll.u32 %s4563_s0, 4  ;;  %s3719_s25 = smov [#allocation2]   ;;  %s24_s24 = int_to_ptr.hbm [resolvable:$true] %s23_s24 }
   0xc   :  { %s25_s3 = sshll.u32 %s3719_s25, 4  ;;  %s49_s28 = sshll.u32 %s4565_s2, 4  ;;  %s26_s3 = int_to_ptr.vmem [resolvable:$true] %s25_s3  ;;  %s50_s28 = int_to_ptr.hbm [resolvable:$true] %s49_s28 }
   0xd   :  { %31 = dma.hbm_to_vmem [thread:$0]  %s24_s24, 1024, %s26_s3, [#allocation3], %s3714_s17, %s3714_s17, %s3715_s18  }
   0xe   :  { %s3720_s29 = smov [#allocation7]   ;;  %s77_s12 = sshll.u32 %s4568_s5, 4  ;;  %s78_s12 = int_to_ptr.hbm [resolvable:$true] %s77_s12 }
   0xf   :  { %s51_s30 = sshll.u32 %s3720_s29, 4  ;;  %s3721_s0 = smov [#allocation10]   ;;  %s52_s30 = int_to_ptr.vmem [resolvable:$true] %s51_s30 }
  0x10   :  { %57 = dma.hbm_to_vmem [thread:$0]  %s50_s28, 256, %s52_s30, [#allocation6], %s3714_s17, %s3714_s17, %s3715_s18  }
  0x11   :  { %s79_s13 = sshll.u32 %s3721_s0, 4  ;;  %s92_s15 = sshll.u32 %s4570_s7, 4  ;;  %s80_s13 = int_to_ptr.vmem [resolvable:$true] %s79_s13  ;;  %s93_s15 = int_to_ptr.hbm [resolvable:$true] %s92_s15 }
  0x12   :  { %s3722_s16 = smov 64   ;;  %s3723_s19 = smov 4  }
  0x13   :  { %85 = dma.hbm_to_vmem [thread:$0]  %s78_s12, 1024, %s80_s13, [#allocation9], %s3722_s16, %s3722_s16, %s3723_s19  }
  0x14   :  { %s3724_s5 = smov [#allocation11]  }
  0x15   :  { %s94_s20 = sshll.u32 %s3724_s5, 4  ;;  %s95_s20 = int_to_ptr.vmem [resolvable:$true] %s94_s20 }
  0x16   :  { %100 = dma.hbm_to_vmem [thread:$0]  %s93_s15, 1024, %s95_s20, [#allocation12], %s3722_s16, %s3722_s16, %s3723_s19  }
  0x17   :  { %3703 = dma.done.wait [#allocation3], 1024  }
  0x18   :  { %3704 = vsyncadd [#allocation3], 4294966272 }
  0x19   :  { %3705 = dma.done.wait [#allocation6], 512  }
  0x1a   :  { %3706 = vsyncadd [#allocation6], 4294966784 }
  0x1b   :  { %3707 = dma.done.wait [#allocation9], 4096  }
  0x1c   :  { %3708 = vsyncadd [#allocation9], 4294963200 }
  0x1d   :  { %3709 = dma.done.wait [#allocation12], 1024  }
  0x1e   :  { %3710 = vsyncadd [#allocation12], 4294966272  ;;  %v130_v0 = vld [vmem:[#allocation2 + $0x10] sm:$0xff]  ;;  %v128_v1 = vld [vmem:[#allocation2] sm:$0xff]  ;;  %vm925_vm12 = vcmask 261120   ;;  %s3726_s1 = smov 32  }
  0x1f   :  { %v132_v2 = vld [vmem:[#allocation2 + $0x20] sm:$0xff]  ;;  %144 = vadd.xlane.f32.xlu1 %v130_v0  ;;  %140 = vadd.xlane.f32.xlu0 %v128_v1  ;;  %v131_v3 = vld [vmem:[#allocation2 + $0x18] sm:$0xff]  ;;  %v129_v4 = vld [vmem:[#allocation2 + $0x8] sm:$0xff]  ;;  %vm1396_vm13 = vcmask 130048   ;;  %s2916_s27 = sshll.u32 %s4572_s9, 4  ;;  %s2917_s27 = int_to_ptr.hbm [resolvable:$true] %s2916_s27 }
  0x20   :  { %148 = vadd.xlane.f32.xlu2 %v132_v2  ;;  %v133_v5 = vld [vmem:[#allocation2 + $0x28] sm:$0xff]  ;;  %v135_v6 = vld [vmem:[#allocation2 + $0x38] sm:$0xff]  ;;  %v134_v7 = vld [vmem:[#allocation2 + $0x30] sm:$0xff] }
  0x27   :  { %146 = vadd.xlane.f32.xlu1 %v131_v3  ;;  %142 = vadd.xlane.f32.xlu0 %v129_v4 }
  0x28   :  { %150 = vadd.xlane.f32.xlu2 %v133_v5 }
  0x2f   :  { %154 = vadd.xlane.f32.xlu1 %v135_v6  ;;  %152 = vadd.xlane.f32.xlu0 %v134_v7 }
  0x92   :  { %v145_v8 = vpop.xlane.xlu1 %144  ;;  %v141_v9 = vpop.xlane.xlu0 %140 }
  0x93   :  { %v149_v10 = vpop.xlane.xlu2 %148 }
  0x9a   :  { %v147_v11 = vpop.xlane.xlu1 %146  ;;  %v143_v12 = vpop.xlane.xlu0 %142 }
  0x9b   :  { %v163_v13 = vadd.f32 %v147_v11, %v145_v8  ;;  %v156_v14 = vadd.f32 %v143_v12, %v141_v9  ;;  %v151_v15 = vpop.xlane.xlu2 %150  ;;  %v3163_v8 = vld [vmem:[#allocation8 + $0xb8] sm:$0xf0]  ;;  %v3158_v11 = vld [vmem:[#allocation8 + $0x94] sm:$0xf] }
  0x9c   :  { %v170_v16 = vadd.f32 %v151_v15, %v149_v10  ;;  %v3159_v10 = vld [vmem:[#allocation8 + $0x98] sm:$0xf0]  ;;  %v3160_v15 = vld [vmem:[#allocation8 + $0xa0] sm:$0xf0] }
  0x9d   :  { %v164_v17 = vrot.slane %v163_v13, 4  ;;  %v157_v18 = vrot.slane %v156_v14, 4 }
  0x9e   :  { %v171_v19 = vrot.slane %v170_v16, 4 }
  0x9f   :  { %v165_v20 = vadd.f32 %v164_v17, %v163_v13  ;;  %v158_v21 = vadd.f32 %v157_v18, %v156_v14  ;;  %v3008_v13 = vld [vmem:[#allocation8 + $0x9c] sm:$0xf0]  ;;  %v3014_v14 = vld [vmem:[#allocation8 + $0x98] sm:$0xf] }
  0xa0   :  { %v172_v22 = vadd.f32 %v171_v19, %v170_v16  ;;  %v3011_v16 = vor.u32 %v3158_v11, %v3008_v13  ;;  %v3015_v17 = vor.u32 %v3160_v15, %v3014_v14  ;;  %v2994_v18 = vld [vmem:[#allocation8 + $0x78] sm:$0xf]  ;;  %v3156_v19 = vld [vmem:[#allocation8 + $0x80] sm:$0xf0]  ;;  %v3145_v11 = vld [vmem:[#allocation8 + $0x28] sm:$0xf0] }
  0xa1   :  { %v166_v23 = vrot.slane %v165_v20, 2  ;;  %v159_v24 = vrot.slane %v158_v21, 2 }
  0xa2   :  { %v173_v25 = vrot.slane %v172_v22, 2  ;;  %v155_v26 = vpop.xlane.xlu1 %154  ;;  %v153_v27 = vpop.xlane.xlu0 %152 }
  0xa3   :  { %v167_v28 = vadd.f32 %v166_v23, %v165_v20  ;;  %v160_v29 = vadd.f32 %v159_v24, %v158_v21  ;;  %v177_v30 = vadd.f32 %v155_v26, %v153_v27  ;;  %v3155_v20 = vld [vmem:[#allocation8 + $0x7c] sm:$0xf]  ;;  %v2995_v21 = vor.u32 %v3156_v19, %v2994_v18  ;;  %v3002_v23 = vld [vmem:[#allocation8 + $0x80] sm:$0xf]  ;;  %v3157_v24 = vld [vmem:[#allocation8 + $0x88] sm:$0xf0] }
  0xa4   :  { %v174_v31 = vadd.f32 %v173_v25, %v172_v22  ;;  %v2996_v22 = vld [vmem:[#allocation8 + $0x84] sm:$0xf0]  ;;  %v3003_v26 = vor.u32 %v3157_v24, %v3002_v23  ;;  %v2982_v27 = vld [vmem:[#allocation8 + $0x60] sm:$0xf] }
  0xa5   :  { %v168_v32 = vrot.slane %v167_v28, 1  ;;  %v161_v33 = vrot.slane %v160_v29, 1  ;;  %v178_v34 = vrot.slane %v177_v30, 4  ;;  %v2999_v25 = vor.u32 %v3155_v20, %v2996_v22  ;;  %v2936_v22 = vld [vmem:[#allocation8 + $0xc] sm:$0xf0] }
  0xa6   :  { %v175_v35 = vrot.slane %v174_v31, 1  ;;  %v2942_v23 = vld [vmem:[#allocation8 + $0x8] sm:$0xf] }
  0xa7   :  { %v179_v36 = vadd.f32 %v178_v34, %v177_v30  ;;  %v169_v37 = vadd.f32 %v168_v32, %v167_v28  ;;  %v162_v38 = vadd.f32 %v161_v33, %v160_v29  ;;  %v3153_v28 = vld [vmem:[#allocation8 + $0x68] sm:$0xf0]  ;;  %v3152_v29 = vld [vmem:[#allocation8 + $0x64] sm:$0xf]  ;;  %v2990_v32 = vld [vmem:[#allocation8 + $0x68] sm:$0xf] }
  0xa8   :  { %v176_v39 = vadd.f32 %v175_v35, %v174_v31  ;;  %v2983_v30 = vor.u32 %v3153_v28, %v2982_v27  ;;  %v2984_v31 = vld [vmem:[#allocation8 + $0x6c] sm:$0xf0]  ;;  %v3154_v33 = vld [vmem:[#allocation8 + $0x70] sm:$0xf0] }
  0xa9   :  { %v180_v40 = vrot.slane %v179_v36, 2  ;;  %v185_v41 = vmul.f32 0.00048828125, %v169_v37  ;;  %v184_v42 = vmul.f32 0.00048828125, %v162_v38  ;;  %v2987_v34 = vor.u32 %v3152_v29, %v2984_v31  ;;  %v3150_v37 = vld [vmem:[#allocation8 + $0x50] sm:$0xf0] }
  0xaa   :  { %v186_v43 = vmul.f32 0.00048828125, %v176_v39  ;;  %v2991_v35 = vor.u32 %v3154_v33, %v2990_v32  ;;  %v3149_v38 = vld [vmem:[#allocation8 + $0x4c] sm:$0xf]  ;;  %v3142_v27 = vld [vmem:[#allocation8 + $0x10] sm:$0xf0] }
  0xab   :  { %v181_v44 = vadd.f32 %v180_v40, %v179_v36  ;;  %v3809_v45 = vsub.f32 %v130_v0, %v185_v41  ;;  %v3811_v46 = vsub.f32 %v129_v4, %v184_v42  ;;  %v3813_v47 = vsub.f32 %v128_v1, %v184_v42  ;;  %v3018_v0 = vld [vmem:[#allocation8 + $0xa8] sm:$0xf]  ;;  %v3162_v1 = vld [vmem:[#allocation8 + $0xb0] sm:$0xf0]  ;;  %v3020_v4 = vld [vmem:[#allocation8 + $0xb4] sm:$0xf0] }
  0xac   :  { %v3821_v52 = vsub.f32 %v133_v5, %v186_v43  ;;  %v3823_v53 = vsub.f32 %v132_v2, %v186_v43  ;;  %v3825_v55 = vsub.f32 %v131_v3, %v185_v41  ;;  %v3161_v2 = vld [vmem:[#allocation8 + $0xac] sm:$0xf]  ;;  %v3019_v3 = vor.u32 %v3162_v1, %v3018_v0  ;;  %v3026_v5 = vld [vmem:[#allocation8 + $0xb0] sm:$0xf]  ;;  %v2970_v36 = vld [vmem:[#allocation8 + $0x48] sm:$0xf] }
  0xad   :  { %v182_v48 = vrot.slane %v181_v44, 1  ;;  %v198_v49 = vmul.f32 %v3809_v45, %v3809_v45  ;;  %v197_v50 = vmul.f32 %v3811_v46, %v3811_v46  ;;  %v196_v51 = vmul.f32 %v3813_v47, %v3813_v47  ;;  %v2972_v40 = vld [vmem:[#allocation8 + $0x54] sm:$0xf0]  ;;  %v2978_v41 = vld [vmem:[#allocation8 + $0x50] sm:$0xf] }
  0xae   :  { %v201_v56 = vmul.f32 %v3821_v52, %v3821_v52  ;;  %v200_v57 = vmul.f32 %v3823_v53, %v3823_v53  ;;  %v199_v59 = vmul.f32 %v3825_v55, %v3825_v55  ;;  %v3027_v9 = vor.u32 %v3163_v8, %v3026_v5  ;;  %492 = vmatpush.bf16.msra.mxu0 %v3019_v3  ;;  %v3151_v42 = vld [vmem:[#allocation8 + $0x58] sm:$0xf0]  ;;  %v2946_v3 = vld [vmem:[#allocation8 + $0x18] sm:$0xf] }
  0xaf   :  { %208 = vadd.xlane.f32.xlu1 %v198_v49  ;;  %206 = vadd.xlane.f32.xlu0 %v197_v50  ;;  %v183_v54 = vadd.f32 %v182_v48, %v181_v44  ;;  %v2971_v39 = vor.u32 %v3150_v37, %v2970_v36  ;;  %v2975_v43 = vor.u32 %v3149_v38, %v2972_v40  ;;  %v2958_v50 = vld [vmem:[#allocation8 + $0x30] sm:$0xf]  ;;  %v3143_v8 = vld [vmem:[#allocation8 + $0x1c] sm:$0xf] }
  0xb0   :  { %204 = vadd.xlane.f32.xlu2 %v196_v51  ;;  %550 = vmatpush.bf16.msra.mxu2 %v3027_v9  ;;  %v2979_v44 = vor.u32 %v3151_v42, %v2978_v41  ;;  %v3147_v51 = vld [vmem:[#allocation8 + $0x38] sm:$0xf0]  ;;  %v2954_v9 = vld [vmem:[#allocation8 + $0x20] sm:$0xf]  ;;  %v2943_v29 = vor.u32 %v3142_v27, %v2942_v23 }
  0xb1   :  { %v187_v58 = vmul.f32 0.00048828125, %v183_v54  ;;  %v3146_v54 = vld [vmem:[#allocation8 + $0x34] sm:$0xf] }
  0xb3   :  { %v3833_v60 = vsub.f32 %v135_v6, %v187_v58  ;;  %v3835_v61 = vsub.f32 %v134_v7, %v187_v58  ;;  %v3023_v6 = vor.u32 %v3161_v2, %v3020_v4  ;;  %v3006_v7 = vld [vmem:[#allocation8 + $0x90] sm:$0xf]  ;;  %v2960_v58 = vld [vmem:[#allocation8 + $0x3c] sm:$0xf0]  ;;  %v3144_v4 = vld [vmem:[#allocation8 + $0x20] sm:$0xf0] }
  0xb4   :  { %v3007_v12 = vor.u32 %v3159_v10, %v3006_v7  ;;  %551 = vmatpush.bf16.msra.mxu2 %v3015_v17  ;;  %v2963_v0 = vor.u32 %v3146_v54, %v2960_v58  ;;  %v2947_v5 = vor.u32 %v3144_v4, %v2946_v3  ;;  %v3141_v17 = vld [vmem:[#allocation8 + $0x8] sm:$0xf0] }
  0xb5   :  { %v203_v62 = vmul.f32 %v3833_v60, %v3833_v60  ;;  %v202_v63 = vmul.f32 %v3835_v61, %v3835_v61  ;;  %521 = vmatpush.bf16.msra.mxu1 %v3023_v6  ;;  %v2948_v6 = vld [vmem:[#allocation8 + $0x24] sm:$0xf0] }
  0xb6   :  { %493 = vmatpush.bf16.msra.mxu0 %v3007_v12  ;;  %v2951_v10 = vor.u32 %v3143_v8, %v2948_v6  ;;  %v2955_v12 = vor.u32 %v3145_v11, %v2954_v9  ;;  %v3841_v11 = vld [vmem:[#allocation5] sm:$0xff] }
  0xb7   :  { %214 = vadd.xlane.f32.xlu1 %v201_v56  ;;  %212 = vadd.xlane.f32.xlu0 %v200_v57  ;;  %v2959_v57 = vor.u32 %v3147_v51, %v2958_v50 }
  0xb8   :  { %210 = vadd.xlane.f32.xlu2 %v199_v59  ;;  %552 = vmatpush.bf16.msra.mxu2 %v3003_v26  ;;  %v2966_v59 = vld [vmem:[#allocation8 + $0x38] sm:$0xf] }
  0xb9   :  { %522 = vmatpush.bf16.msra.mxu1 %v3011_v16  ;;  %v2934_v16 = vld [vmem:[#allocation8] sm:$0xf] }
  0xba   :  { %494 = vmatpush.bf16.msra.mxu0 %v2995_v21  ;;  %v2935_v20 = vor.u32 %v3141_v17, %v2934_v16  ;;  %v3140_v21 = vld [vmem:[#allocation8 + $0x4] sm:$0xf] }
  0xbb   :  { %v2939_v26 = vor.u32 %v3140_v21, %v2936_v22 }
  0xbc   :  { %553 = vmatpush.bf16.msra.mxu2 %v2991_v35 }
  0xbd   :  { %523 = vmatpush.bf16.msra.mxu1 %v2999_v25 }
  0xbe   :  { %495 = vmatpush.bf16.msra.mxu0 %v2983_v30 }
  0xbf   :  { %218 = vadd.xlane.f32.xlu0 %v203_v62  ;;  %v3148_v62 = vld [vmem:[#allocation8 + $0x40] sm:$0xf0] }
  0xc0   :  { %216 = vadd.xlane.f32.xlu2 %v202_v63  ;;  %554 = vmatpush.bf16.msra.mxu2 %v2979_v44  ;;  %v2967_v1 = vor.u32 %v3148_v62, %v2966_v59 }
  0xc1   :  { %524 = vmatpush.bf16.msra.mxu1 %v2987_v34 }
  0xc2   :  { %496 = vmatpush.bf16.msra.mxu0 %v2971_v39 }
  0xc4   :  { %555 = vmatpush.bf16.msra.mxu2 %v2967_v1 }
  0xc5   :  { %525 = vmatpush.bf16.msra.mxu1 %v2975_v43 }
  0xc6   :  { %497 = vmatpush.bf16.msra.mxu0 %v2959_v57 }
  0xc8   :  { %556 = vmatpush.bf16.msra.mxu2 %v2955_v12  ;;  %v3843_v12 = vld [vmem:[#allocation5 + $0x8] sm:$0xff] }
  0xc9   :  { %526 = vmatpush.bf16.msra.mxu1 %v2963_v0 }
  0xca   :  { %498 = vmatpush.bf16.msra.mxu0 %v2947_v5 }
  0xcc   :  { %557 = vmatpush.bf16.msra.mxu2 %v2943_v29 }
  0xcd   :  { %527 = vmatpush.bf16.msra.mxu1 %v2951_v10 }
  0xce   :  { %499 = vmatpush.bf16.msra.mxu0 %v2935_v20 }
  0xd1   :  { %528 = vmatpush.bf16.msra.mxu1 %v2939_v26 }
 0x122   :  { %v209_v48 = vpop.xlane.xlu1 %208  ;;  %v207_v49 = vpop.xlane.xlu0 %206 }
 0x123   :  { %v205_v56 = vpop.xlane.xlu2 %204 }
 0x124   :  { %v220_v63 = vadd.f32 %v207_v49, %v205_v56 }
 0x126   :  { %v221_v2 = vrot.slane %v220_v63, 4 }
 0x128   :  { %v222_v7 = vadd.f32 %v221_v2, %v220_v63 }
 0x12a   :  { %v223_v13 = vrot.slane %v222_v7, 2  ;;  %v215_v14 = vpop.xlane.xlu1 %214  ;;  %v213_v15 = vpop.xlane.xlu0 %212 }
 0x12b   :  { %v211_v18 = vpop.xlane.xlu2 %210  ;;  %v234_v19 = vadd.f32 %v215_v14, %v213_v15 }
 0x12c   :  { %v224_v24 = vadd.f32 %v223_v13, %v222_v7  ;;  %v227_v25 = vadd.f32 %v211_v18, %v209_v48  ;;  %v138_v18 = vld [vmem:[#allocation7] sm:$0xff] }
 0x12d   :  { %v235_v28 = vrot.slane %v234_v19, 4 }
 0x12e   :  { %v225_v30 = vrot.slane %v224_v24, 1  ;;  %v228_v31 = vrot.slane %v227_v25, 4 }
 0x12f   :  { %v236_v32 = vadd.f32 %v235_v28, %v234_v19  ;;  %v139_v19 = vld [vmem:[#allocation7 + $0x8] sm:$0xff] }
 0x130   :  { %v226_v33 = vadd.f32 %v225_v30, %v224_v24  ;;  %v229_v34 = vadd.f32 %v228_v31, %v227_v25 }
 0x131   :  { %v237_v35 = vrot.slane %v236_v32, 2 }
 0x132   :  { %v248_v36 = vmul.f32 0.00048828125, %v226_v33  ;;  %v230_v37 = vrot.slane %v229_v34, 2  ;;  %v219_v38 = vpop.xlane.xlu0 %218 }
 0x133   :  { %v238_v39 = vadd.f32 %v237_v35, %v236_v32  ;;  %v217_v40 = vpop.xlane.xlu2 %216 }
 0x134   :  { %v252_v41 = vadd.f32 1e-05, %v248_v36  ;;  %v231_v42 = vadd.f32 %v230_v37, %v229_v34  ;;  %v241_v43 = vadd.f32 %v219_v38, %v217_v40 }
 0x135   :  { %v239_v44 = vrot.slane %v238_v39, 1 }
 0x136   :  { %3379 = vrsqrt.f32 %v252_v41  ;;  %v232_v48 = vrot.slane %v231_v42, 1  ;;  %v242_v49 = vrot.slane %v241_v43, 4  ;;  %vm262_vm1 = vweird.f32 %v252_v41 }
 0x137   :  { %v240_v50 = vadd.f32 %v239_v44, %v238_v39 }
 0x138   :  { %v233_v51 = vadd.f32 %v232_v48, %v231_v42  ;;  %v243_v54 = vadd.f32 %v242_v49, %v241_v43 }
 0x139   :  { %v250_v57 = vmul.f32 0.00048828125, %v240_v50 }
 0x13a   :  { %v249_v56 = vmul.f32 0.00048828125, %v233_v51  ;;  %v244_v58 = vrot.slane %v243_v54, 2 }
 0x13b   :  { %v254_v0 = vadd.f32 1e-05, %v250_v57 }
 0x13c   :  { %v3380_v59 = vpop.eup %3379  ;;  %v253_v62 = vadd.f32 1e-05, %v249_v56  ;;  %v245_v1 = vadd.f32 %v244_v58, %v243_v54 }
 0x13d   :  { %v257_v63 = vmul.f32 %v3380_v59, %v252_v41  ;;  %vm263_vm0 = vweird.f32 %v3380_v59  ;;  %vm282_vm6 = vweird.f32 %v254_v0 }
 0x13e   :  { %3381 = vrsqrt.f32 %v253_v62  ;;  %v246_v4 = vrot.slane %v245_v1, 1  ;;  %vm264_vm2 = vmor %vm262_vm1, %vm263_vm0  ;;  %vm272_vm4 = vweird.f32 %v253_v62 }
 0x13f   :  { %v258_v2 = vmul.f32 %v3380_v59, %v257_v63  ;;  %3383 = vrsqrt.f32 %v254_v0 }
 0x140   :  { %v247_v7 = vadd.f32 %v246_v4, %v245_v1 }
 0x141   :  { %v259_v3 = vmul.f32 0.5, %v258_v2  ;;  %v356_v2 = vld [vmem:[%s4567_s4] sm:$0x7]  ;;  %s3725_s4 = smov 96  }
 0x142   :  { %v251_v20 = vmul.f32 0.00048828125, %v247_v7 }
 0x143   :  { %v260_v5 = vsub.f32 1.5, %v259_v3 }
 0x144   :  { %v3382_v8 = vpop.eup %3381  ;;  %v255_v28 = vadd.f32 1e-05, %v251_v20 }
 0x145   :  { %v267_v6 = vmul.f32 %v3382_v8, %v253_v62  ;;  %v261_v9 = vmul.f32 %v3380_v59, %v260_v5  ;;  %v3384_v14 = vpop.eup %3383  ;;  %vm273_vm3 = vweird.f32 %v3382_v8  ;;  %v3864_v5 = vperm.slane %v356_v2, 1 }
 0x146   :  { %v277_v24 = vmul.f32 %v3384_v14, %v254_v0  ;;  %vm274_vm5 = vmor %vm272_vm4, %vm273_vm3  ;;  %3385 = vrsqrt.f32 %v255_v28  ;;  %vm283_vm7 = vweird.f32 %v3384_v14  ;;  %vm292_vm9 = vweird.f32 %v255_v28 }
 0x147   :  { %v268_v10 = vmul.f32 %v3382_v8, %v267_v6  ;;  %v265_v13 = vsel %vm264_vm2, %v3380_v59, %v261_v9  ;;  %vm284_vm8 = vmor %vm282_vm6, %vm283_vm7  ;;  %v3869_v6 = vperm.slane %v356_v2, 2 }
 0x148   :  { %v296_v15 = vmul.f32 %v265_v13, %v3813_v47  ;;  %v297_v16 = vmul.f32 %v265_v13, %v3811_v46  ;;  %v278_v29 = vmul.f32 %v3384_v14, %v277_v24 }
 0x149   :  { %v269_v17 = vmul.f32 0.5, %v268_v10 }
 0x14a   :  { %v304_v21 = vmul.f32 %v296_v15, %v3841_v11  ;;  %v305_v22 = vmul.f32 %v297_v16, %v3843_v12  ;;  %v279_v32 = vmul.f32 0.5, %v278_v29 }
 0x14b   :  { %v270_v23 = vsub.f32 1.5, %v269_v17 }
 0x14c   :  { %v312_v25 = vadd.f32 %v304_v21, %v138_v18  ;;  %v313_v26 = vadd.f32 %v305_v22, %v139_v19  ;;  %v280_v35 = vsub.f32 1.5, %v279_v32  ;;  %v3386_v36 = vpop.eup %3385 }
 0x14d   :  { %v271_v27 = vmul.f32 %v3382_v8, %v270_v23  ;;  %v287_v39 = vmul.f32 %v3386_v36, %v255_v28  ;;  %vm293_vm10 = vweird.f32 %v3386_v36 }
 0x14e   :  { %v320_v47 = vpack.c.bf16 %v313_v26, %v312_v25  ;;  %v281_v40 = vmul.f32 %v3384_v14, %v280_v35  ;;  %vm294_vm11 = vmor %vm292_vm9, %vm293_vm10 }
 0x14f   :  { %v275_v46 = vsel %vm274_vm5, %v3382_v8, %v271_v27  ;;  %v288_v42 = vmul.f32 %v3386_v36, %v287_v39 }
 0x150   :  { %500 = vmatmul.bf16.vlgmr.msra.gmra.mxu0 %v320_v47  ;;  %529 = vmatmul.bf16.vlgmr.msra.gmra.mxu1 %v320_v47  ;;  %v298_v30 = vmul.f32 %v275_v46, %v3809_v45  ;;  %v299_v31 = vmul.f32 %v275_v46, %v3825_v55  ;;  %v285_v43 = vsel %vm284_vm8, %v3384_v14, %v281_v40 }
 0x151   :  { %558 = vmatmul.bf16.vlgmr.msra.gmra.mxu2 %v320_v47  ;;  %v300_v45 = vmul.f32 %v285_v43, %v3823_v53  ;;  %v301_v55 = vmul.f32 %v285_v43, %v3821_v52  ;;  %v289_v44 = vmul.f32 0.5, %v288_v42 }
 0x152   :  { %v306_v33 = vmul.f32 %v298_v30, %v3841_v11  ;;  %v307_v34 = vmul.f32 %v299_v31, %v3843_v12 }
 0x153   :  { %v308_v48 = vmul.f32 %v300_v45, %v3841_v11  ;;  %v309_v49 = vmul.f32 %v301_v55, %v3843_v12  ;;  %v290_v50 = vsub.f32 1.5, %v289_v44 }
 0x154   :  { %v314_v37 = vadd.f32 %v306_v33, %v138_v18  ;;  %v315_v38 = vadd.f32 %v307_v34, %v139_v19 }
 0x155   :  { %v316_v51 = vadd.f32 %v308_v48, %v138_v18  ;;  %v317_v54 = vadd.f32 %v309_v49, %v139_v19  ;;  %v291_v56 = vmul.f32 %v3386_v36, %v290_v50 }
 0x156   :  { %v321_v41 = vpack.c.bf16 %v315_v38, %v314_v37 }
 0x157   :  { %v322_v57 = vpack.c.bf16 %v317_v54, %v316_v51  ;;  %v295_v58 = vsel %vm294_vm11, %v3386_v36, %v291_v56 }
 0x158   :  { %v302_v53 = vmul.f32 %v295_v58, %v3835_v61  ;;  %v303_v52 = vmul.f32 %v295_v58, %v3833_v60  ;;  %v3866_v61 = vperm.slane %v356_v2, 0 }
 0x15a   :  { %v310_v59 = vmul.f32 %v302_v53, %v3841_v11  ;;  %v311_v62 = vmul.f32 %v303_v52, %v3843_v12 }
 0x15c   :  { %v318_v63 = vadd.f32 %v310_v59, %v138_v18  ;;  %v319_v0 = vadd.f32 %v311_v62, %v139_v19 }
 0x15e   :  { %v323_v1 = vpack.c.bf16 %v319_v0, %v318_v63 }
 0x160   :  { %505 = vmatmul.bf16.gmra.mxu0 %v321_v41  ;;  %534 = vmatmul.bf16.gmra.mxu1 %v321_v41 }
 0x161   :  { %563 = vmatmul.bf16.gmra.mxu2 %v321_v41 }
 0x170   :  { %510 = vmatmul.bf16.gmra.mxu0 %v322_v57  ;;  %539 = vmatmul.bf16.gmra.mxu1 %v322_v57 }
 0x171   :  { %568 = vmatmul.bf16.gmra.mxu2 %v322_v57 }
 0x180   :  { %515 = vmatmul.bf16.gmra.mxu0 %v323_v1  ;;  %544 = vmatmul.bf16.gmra.mxu1 %v323_v1 }
 0x181   :  { %573 = vmatmul.bf16.gmra.mxu2 %v323_v1 }
 0x1cd   :  { %v501_v3 = vpop.f32.mrf.mxu0  ;;  %v530_v4 = vpop.f32.mrf.mxu1 }
 0x1ce   :  { %v531_v60 = vadd.f32 %v530_v4, %v3864_v5  ;;  %v502_v10 = vadd.f32 %v501_v3, %v3866_v61 }
 0x1d0   :  { %v771_v13 = vpack.c.bf16 %v531_v60, %v531_v60  ;;  %v659_v27 = vpack.c.bf16 %v502_v10, %v502_v10 }
 0x1d2   :  { %v922_v18 = vunpack.c.l.b16 %v771_v13  ;;  %v917_v33 = vunpack.c.l.b16 %v659_v27 }
 0x1d4   :  { %v559_v8 = vpop.f32.mrf.mxu2 }
 0x1d5   :  { %v503_v9 = vpop.f32.mrf.mxu0  ;;  %v532_v7 = vpop.f32.mrf.mxu1  ;;  %v560_v16 = vadd.f32 %v559_v8, %v3869_v6 }
 0x1d6   :  { %v504_v11 = vadd.f32 %v503_v9, %v3866_v61  ;;  %v533_v12 = vadd.f32 %v532_v7, %v3864_v5 }
 0x1d7   :  { %v883_v21 = vpack.c.bf16 %v560_v16, %v560_v16 }
 0x1d8   :  { %v3197_v14 = vpack.i.bf16 %v533_v12, %v531_v60  ;;  %v3212_v15 = vpack.i.bf16 %v504_v11, %v502_v10  ;;  %v772_v17 = vpack.c.bf16 %v533_v12, %v533_v12  ;;  %v660_v22 = vpack.c.bf16 %v504_v11, %v504_v11 }
 0x1d9   :  { %v3880_v46 = vunpack.c.l.b16 %v883_v21 }
 0x1da   :  { %3198 = vrot.lane.b32.xlu1 %v3197_v14, %s3725_s4  ;;  %3213 = vrot.lane.b32.xlu0 %v3212_v15, %s3722_s16  ;;  %v923_v19 = vunpack.c.l.b16 %v772_v17  ;;  %v918_v30 = vunpack.c.l.b16 %v660_v22 }
 0x1db   :  { %3203 = vrot.lane.b32.xlu2 %v3212_v15, %s3725_s4 }
 0x1dc   :  { %v561_v20 = vpop.f32.mrf.mxu2  ;;  %v924_v26 = vpack.c.b16 %v923_v19, %v922_v18  ;;  %v919_v38 = vpack.c.b16 %v918_v30, %v917_v33 }
 0x1dd   :  { %v562_v23 = vadd.f32 %v561_v20, %v3869_v6  ;;  %v506_v24 = vpop.f32.mrf.mxu0  ;;  %v535_v25 = vpop.f32.mrf.mxu1 }
 0x1de   :  { %v930_v47 = vsel %vm925_vm12, %v924_v26, 0  ;;  %v536_v32 = vadd.f32 %v535_v25, %v3864_v5  ;;  %v507_v55 = vadd.f32 %v506_v24, %v3866_v61 }
 0x1df   :  { %v884_v28 = vpack.c.bf16 %v562_v23, %v562_v23  ;;  %939 = vmatpush.bf16.xpose.msrb.mxu0 %v930_v47  ;;  %v3232_v29 = vpack.i.bf16 %v562_v23, %v560_v16 }
 0x1e0   :  { %v773_v40 = vpack.c.bf16 %v536_v32, %v536_v32  ;;  %v661_v52 = vpack.c.bf16 %v507_v55, %v507_v55 }
 0x1e1   :  { %v3882_v31 = vunpack.c.l.b16 %v884_v28 }
 0x1e2   :  { %3218 = vrot.lane.b32.xlu1 %v3197_v14, %s3726_s1  ;;  %3233 = vrot.lane.b32.xlu0 %v3232_v29, %s3722_s16  ;;  %v953_v44 = vunpack.c.l.b16 %v773_v40  ;;  %v948_v4 = vunpack.c.l.b16 %v661_v52 }
 0x1e3   :  { %3208 = vrot.lane.b32.xlu2 %v3197_v14, %s3722_s16  ;;  %v1790_v34 = vpack.c.b16 %v3882_v31, %v3880_v46 }
 0x1e4   :  { %v564_v35 = vpop.f32.mrf.mxu2 }
 0x1e5   :  { %v508_v36 = vpop.f32.mrf.mxu0  ;;  %v537_v37 = vpop.f32.mrf.mxu1  ;;  %v565_v45 = vadd.f32 %v564_v35, %v3869_v6 }
 0x1e6   :  { %v538_v39 = vadd.f32 %v537_v37, %v3864_v5  ;;  %3028 = vmatmul.msk.bf16.vlgmr.msrb.gmra.mxu0 %vm925_vm12, %v919_v38  ;;  %v509_v41 = vadd.f32 %v508_v36, %v3866_v61 }
 0x1e7   :  { %v885_v54 = vpack.c.bf16 %v565_v45, %v565_v45 }
 0x1e8   :  { %v3242_v42 = vpack.i.bf16 %v538_v39, %v536_v32  ;;  %v774_v43 = vpack.c.bf16 %v538_v39, %v538_v39  ;;  %v662_v51 = vpack.c.bf16 %v509_v41, %v509_v41  ;;  %v3257_v63 = vpack.i.bf16 %v509_v41, %v507_v55 }
 0x1e9   :  { %v3902_v1 = vunpack.c.l.b16 %v885_v54 }
 0x1ea   :  { %3228 = vrot.lane.b32.xlu1 %v3232_v29, %s3725_s4  ;;  %3243 = vrot.lane.b32.xlu0 %v3242_v42, %s3725_s4  ;;  %v954_v48 = vunpack.c.l.b16 %v774_v43  ;;  %v949_v0 = vunpack.c.l.b16 %v662_v51 }
 0x1eb   :  { %3223 = vrot.lane.b32.xlu2 %v3212_v15, %s3726_s1 }
 0x1ec   :  { %v566_v49 = vpop.f32.mrf.mxu2  ;;  %v955_v50 = vpack.c.b16 %v954_v48, %v953_v44  ;;  %v950_v9 = vpack.c.b16 %v949_v0, %v948_v4 }
 0x1ed   :  { %v567_v56 = vadd.f32 %v566_v49, %v3869_v6  ;;  %v511_v57 = vpop.f32.mrf.mxu0  ;;  %v540_v58 = vpop.f32.mrf.mxu1 }
 0x1ee   :  { %v960_v53 = vsel %vm925_vm12, %v955_v50, 0  ;;  %v541_v3 = vadd.f32 %v540_v58, %v3864_v5  ;;  %v512_v16 = vadd.f32 %v511_v57, %v3866_v61 }
 0x1ef   :  { %v886_v59 = vpack.c.bf16 %v567_v56, %v567_v56  ;;  %969 = vmatpush.bf16.xpose.msra.mxu3 %v960_v53  ;;  %v3900_v62 = vpack.i.bf16 %v567_v56, %v565_v45 }
 0x1f0   :  { %v775_v12 = vpack.c.bf16 %v541_v3, %v541_v3  ;;  %v663_v26 = vpack.c.bf16 %v512_v16, %v512_v16 }
 0x1f1   :  { %v3904_v2 = vunpack.c.l.b16 %v886_v59 }
 0x1f2   :  { %3238 = vrot.lane.b32.xlu1 %v3232_v29, %s3726_s1  ;;  %3258 = vrot.lane.b32.xlu0 %v3257_v63, %s3722_s16  ;;  %v983_v17 = vunpack.c.l.b16 %v775_v12  ;;  %v978_v35 = vunpack.c.l.b16 %v663_v26 }
 0x1f3   :  { %3253 = vrot.lane.b32.xlu2 %v3242_v42, %s3722_s16  ;;  %v1818_v60 = vpack.c.b16 %v3904_v2, %v3902_v1 }
 0x1f4   :  { %v569_v8 = vpop.f32.mrf.mxu2 }
 0x1f5   :  { %v513_v7 = vpop.f32.mrf.mxu0  ;;  %v542_v10 = vpop.f32.mrf.mxu1  ;;  %v570_v15 = vadd.f32 %v569_v8, %v3869_v6 }
 0x1f6   :  { %v543_v11 = vadd.f32 %v542_v10, %v3864_v5  ;;  %3029 = vmatmul.msk.bf16.vlgmr.msra.gmra.mxu3 %vm925_vm12, %v950_v9  ;;  %v514_v13 = vadd.f32 %v513_v7, %v3866_v61 }
 0x1f7   :  { %v887_v22 = vpack.c.bf16 %v570_v15, %v570_v15 }
 0x1f8   :  { %v776_v14 = vpack.c.bf16 %v543_v11, %v543_v11  ;;  %v664_v19 = vpack.c.bf16 %v514_v13, %v514_v13  ;;  %v3287_v32 = vpack.i.bf16 %v514_v13, %v512_v16  ;;  %v3282_v55 = vpack.i.bf16 %v543_v11, %v541_v3 }
 0x1f9   :  { %v3925_v30 = vunpack.c.l.b16 %v887_v22 }
 0x1fa   :  { %3248 = vrot.lane.b32.xlu1 %v3257_v63, %s3725_s4  ;;  %3263 = vrot.lane.b32.xlu0 %v3242_v42, %s3726_s1  ;;  %v984_v18 = vunpack.c.l.b16 %v776_v14  ;;  %v979_v29 = vunpack.c.l.b16 %v664_v19 }
 0x1fb   :  { %3273 = vrot.lane.b32.xlu2 %v3900_v62, %s3725_s4 }
 0x1fc   :  { %v571_v20 = vpop.f32.mrf.mxu2  ;;  %v985_v21 = vpack.c.b16 %v984_v18, %v983_v17  ;;  %v980_v39 = vpack.c.b16 %v979_v29, %v978_v35 }
 0x1fd   :  { %v572_v23 = vadd.f32 %v571_v20, %v3869_v6  ;;  %v516_v24 = vpop.f32.mrf.mxu0  ;;  %v545_v25 = vpop.f32.mrf.mxu1 }
 0x1fe   :  { %v990_v27 = vsel %vm925_vm12, %v985_v21, 0  ;;  %v546_v36 = vadd.f32 %v545_v25, %v3864_v5  ;;  %v517_v48 = vadd.f32 %v516_v24, %v3866_v61 }
 0x1ff   :  { %v888_v28 = vpack.c.bf16 %v572_v23, %v572_v23  ;;  %999 = vmatpush.bf16.xpose.msrb.mxu3 %v990_v27  ;;  %v3923_v47 = vpack.i.bf16 %v572_v23, %v570_v15 }
 0x200   :  { %v777_v43 = vpack.c.bf16 %v546_v36, %v546_v36  ;;  %v665_v58 = vpack.c.bf16 %v517_v48, %v517_v48 }
 0x201   :  { %v3927_v33 = vunpack.c.l.b16 %v888_v28 }
 0x202   :  { %3268 = vrot.lane.b32.xlu1 %v3257_v63, %s3726_s1  ;;  %3278 = vrot.lane.b32.xlu0 %v3900_v62, %s3722_s16  ;;  %v1013_v49 = vunpack.c.l.b16 %v777_v43  ;;  %v1008_v63 = vunpack.c.l.b16 %v665_v58 }
 0x203   :  { %3288 = vrot.lane.b32.xlu2 %v3287_v32, %s3725_s4  ;;  %v1846_v37 = vpack.c.b16 %v3927_v33, %v3925_v30 }
 0x204   :  { %v574_v38 = vpop.f32.mrf.mxu2 }
 0x205   :  { %v518_v40 = vpop.f32.mrf.mxu0  ;;  %v547_v41 = vpop.f32.mrf.mxu1  ;;  %v3944_v56 = vadd.f32 %v574_v38, %v3869_v6 }
 0x206   :  { %v548_v42 = vadd.f32 %v547_v41, %v3864_v5  ;;  %3030 = vmatmul.msk.bf16.vlgmr.msrb.gmra.mxu3 %vm925_vm12, %v980_v39  ;;  %v519_v45 = vadd.f32 %v518_v40, %v3866_v61 }
 0x208   :  { %v778_v44 = vpack.c.bf16 %v548_v42, %v548_v42  ;;  %v666_v51 = vpack.c.bf16 %v519_v45, %v519_v45  ;;  %v3317_v59 = vpack.i.bf16 %v548_v42, %v546_v36 }
 0x20a   :  { %3283 = vrot.lane.b32.xlu1 %v3282_v55, %s3725_s4  ;;  %3298 = vrot.lane.b32.xlu0 %v3287_v32, %s3722_s16  ;;  %v1014_v50 = vunpack.c.l.b16 %v778_v44  ;;  %v1009_v52 = vunpack.c.l.b16 %v666_v51 }
 0x20b   :  { %3293 = vrot.lane.b32.xlu2 %v3282_v55, %s3722_s16 }
 0x20c   :  { %v576_v54 = vpop.f32.mrf.mxu2  ;;  %v1015_v5 = vpack.c.b16 %v1014_v50, %v1013_v49  ;;  %v1010_v0 = vpack.c.b16 %v1009_v52, %v1008_v63 }
 0x20d   :  { %v3947_v57 = vadd.f32 %v576_v54, %v3869_v6  ;;  %v3332_v6 = vpack.i.bf16 %v519_v45, %v517_v48 }
 0x20e   :  { %v1020_v61 = vsel %vm925_vm12, %v1015_v5, 0 }
 0x20f   :  { %1029 = vmatpush.bf16.xpose.msra.mxu3 %v1020_v61  ;;  %v3952_v53 = vpack.i.bf16 %v3947_v57, %v3944_v56 }
 0x212   :  { %3303 = vrot.lane.b32.xlu1 %v3282_v55, %s3726_s1  ;;  %3318 = vrot.lane.b32.xlu0 %v3317_v59, %s3725_s4 }
 0x213   :  { %3308 = vrot.lane.b32.xlu2 %v3287_v32, %s3726_s1 }
 0x216   :  { %3031 = vmatmul.msk.bf16.vlgmr.msra.gmra.mxu3 %vm925_vm12, %v1010_v0 }
 0x21a   :  { %3333 = vrot.lane.b32.xlu0 %v3332_v6, %s3722_s16  ;;  %3323 = vrot.lane.b32.xlu1 %v3332_v6, %s3725_s4 }
 0x21b   :  { %3313 = vrot.lane.b32.xlu2 %v3923_v47, %s3725_s4 }
 0x222   :  { %3343 = vrot.lane.b32.xlu0 %v3332_v6, %s3726_s1  ;;  %3338 = vrot.lane.b32.xlu1 %v3317_v59, %s3726_s1 }
 0x223   :  { %3328 = vrot.lane.b32.xlu2 %v3317_v59, %s3722_s16 }
 0x235   :  { %v3204_v3 = vpop.permute.xlu2 %3203 }
 0x236   :  { %v3206_v27 = vunpack.i.h.bf16 %v3204_v3  ;;  %v3205_v28 = vunpack.i.l.bf16 %v3204_v3 }
 0x238   :  { %v668_v40 = vpack.c.bf16 %v3206_v27, %v3206_v27  ;;  %v667_v41 = vpack.c.bf16 %v3205_v28, %v3205_v28 }
 0x23a   :  { %v1039_v5 = vunpack.c.l.b16 %v668_v40  ;;  %v1038_v58 = vunpack.c.l.b16 %v667_v41 }
 0x23d   :  { %v3209_v4 = vpop.permute.xlu2 %3208 }
 0x23e   :  { %v3211_v8 = vunpack.i.h.bf16 %v3209_v4  ;;  %v3210_v9 = vunpack.i.l.bf16 %v3209_v4  ;;  %v1040_v4 = vpack.c.b16 %v1039_v5, %v1038_v58 }
 0x240   :  { %v788_v7 = vpack.c.bf16 %v3211_v8, %v3211_v8  ;;  %v787_v10 = vpack.c.bf16 %v3210_v9, %v3210_v9 }
 0x242   :  { %v1164_v11 = vunpack.c.l.b16 %v788_v7  ;;  %v1163_v12 = vunpack.c.l.b16 %v787_v10 }
 0x244   :  { %v1165_v13 = vpack.c.b16 %v1164_v11, %v1163_v12 }
 0x245   :  { %v3224_v14 = vpop.permute.xlu2 %3223 }
 0x246   :  { %v1170_v15 = vsel %vm925_vm12, %v1165_v13, 0  ;;  %v3226_v61 = vunpack.i.h.bf16 %v3224_v14  ;;  %v3225_v52 = vunpack.i.l.bf16 %v3224_v14 }
 0x247   :  { %1179 = vmatpush.bf16.xpose.msrb.mxu2 %v1170_v15 }
 0x248   :  { %v684_v8 = vpack.c.bf16 %v3226_v61, %v3226_v61  ;;  %v683_v9 = vpack.c.bf16 %v3225_v52, %v3225_v52 }
 0x24c   :  { %v3199_v16 = vpop.permute.xlu1 %3198  ;;  %v3214_v17 = vpop.permute.xlu0 %3213 }
 0x24d   :  { %v3201_v18 = vunpack.i.h.bf16 %v3199_v16  ;;  %v3200_v19 = vunpack.i.l.bf16 %v3199_v16  ;;  %v3254_v20 = vpop.permute.xlu2 %3253  ;;  %v3216_v21 = vunpack.i.h.bf16 %v3214_v17  ;;  %v3215_v22 = vunpack.i.l.bf16 %v3214_v17 }
 0x24e   :  { %v3256_v48 = vunpack.i.h.bf16 %v3254_v20  ;;  %v3255_v49 = vunpack.i.l.bf16 %v3254_v20 }
 0x24f   :  { %v780_v23 = vpack.c.bf16 %v3201_v18, %v3201_v18  ;;  %v779_v24 = vpack.c.bf16 %v3200_v19, %v3200_v19  ;;  %v676_v25 = vpack.c.bf16 %v3216_v21, %v3216_v21  ;;  %v675_v26 = vpack.c.bf16 %v3215_v22, %v3215_v22 }
 0x250   :  { %v790_v0 = vpack.c.bf16 %v3256_v48, %v3256_v48  ;;  %v789_v6 = vpack.c.bf16 %v3255_v49, %v3255_v49 }
 0x251   :  { %v1044_v29 = vunpack.c.l.b16 %v780_v23  ;;  %v1043_v32 = vunpack.c.l.b16 %v779_v24  ;;  %v1159_v35 = vunpack.c.l.b16 %v676_v25  ;;  %v1158_v36 = vunpack.c.l.b16 %v675_v26 }
 0x252   :  { %v1194_v17 = vunpack.c.l.b16 %v790_v0  ;;  %v1193_v18 = vunpack.c.l.b16 %v789_v6  ;;  %v1279_v23 = vunpack.c.l.b16 %v684_v8  ;;  %v1278_v24 = vunpack.c.l.b16 %v683_v9 }
 0x253   :  { %v1045_v38 = vpack.c.b16 %v1044_v29, %v1043_v32  ;;  %v1160_v39 = vpack.c.b16 %v1159_v35, %v1158_v36 }
 0x254   :  { %v3219_v42 = vpop.permute.xlu1 %3218  ;;  %v3966_v43 = vpop.permute.xlu0 %3233  ;;  %v1195_v29 = vpack.c.b16 %v1194_v17, %v1193_v18  ;;  %v1280_v36 = vpack.c.b16 %v1279_v23, %v1278_v24 }
 0x255   :  { %v3221_v45 = vunpack.i.h.bf16 %v3219_v42  ;;  %v3220_v55 = vunpack.i.l.bf16 %v3219_v42  ;;  %v3968_v44 = vpop.permute.xlu2 %3273  ;;  %3036 = vmatmul.msk.bf16.vlgmr.msrb.gmra.mxu2 %vm925_vm12, %v1160_v39  ;;  %v1050_v50 = vsel %vm925_vm12, %v1045_v38, 0 }
 0x256   :  { %1059 = vmatpush.bf16.xpose.msrb.mxu3 %v1050_v50  ;;  %v1200_v31 = vsel %vm925_vm12, %v1195_v29, 0 }
 0x257   :  { %v796_v51 = vpack.c.bf16 %v3221_v45, %v3221_v45  ;;  %v795_v54 = vpack.c.bf16 %v3220_v55, %v3220_v55 }
 0x259   :  { %v1284_v59 = vunpack.c.l.b16 %v796_v51  ;;  %v1283_v63 = vunpack.c.l.b16 %v795_v54 }
 0x25b   :  { %v1285_v3 = vpack.c.b16 %v1284_v59, %v1283_v63 }
 0x25c   :  { %v3229_v7 = vpop.permute.xlu1 %3228  ;;  %v3244_v10 = vpop.permute.xlu0 %3243 }
 0x25d   :  { %v3231_v11 = vunpack.i.h.bf16 %v3229_v7  ;;  %v3230_v12 = vunpack.i.l.bf16 %v3229_v7  ;;  %v3972_v13 = vpop.permute.xlu2 %3288  ;;  %v3246_v15 = vunpack.i.h.bf16 %v3244_v10  ;;  %v3245_v16 = vunpack.i.l.bf16 %v3244_v10  ;;  %3032 = vmatmul.msk.bf16.vlgmr.msrb.gmra.mxu3 %vm925_vm12, %v1040_v4 }
 0x25e   :  { %v1290_v14 = vsel %vm925_vm12, %v1285_v3, 0  ;;  %v3291_v23 = vunpack.i.h.bf16 %v3972_v13  ;;  %v3290_v24 = vunpack.i.l.bf16 %v3972_v13 }
 0x25f   :  { %v892_v19 = vpack.c.bf16 %v3231_v11, %v3231_v11  ;;  %v891_v20 = vpack.c.bf16 %v3230_v12, %v3230_v12  ;;  %v782_v21 = vpack.c.bf16 %v3246_v15, %v3246_v15  ;;  %v781_v22 = vpack.c.bf16 %v3245_v16, %v3245_v16  ;;  %1299 = vmatpush.bf16.xpose.msra.mxu2 %v1290_v14 }
 0x261   :  { %v1901_v25 = vunpack.c.l.b16 %v892_v19  ;;  %v1900_v26 = vunpack.c.l.b16 %v891_v20  ;;  %v1074_v27 = vunpack.c.l.b16 %v782_v21  ;;  %v1073_v28 = vunpack.c.l.b16 %v781_v22 }
 0x263   :  { %v1902_v32 = vpack.c.b16 %v1901_v25, %v1900_v26  ;;  %v1075_v35 = vpack.c.b16 %v1074_v27, %v1073_v28  ;;  %v3979_v38 = vpop.f32.mrf.mxu0 }
 0x264   :  { %v3981_v39 = vpop.permute.xlu1 %3238  ;;  %v3259_v41 = vpop.permute.xlu0 %3258  ;;  %v1397_v42 = vsel %vm1396_vm13, %v3979_v38, -inf }
 0x265   :  { %v3294_v40 = vpop.permute.xlu2 %3293  ;;  %v1080_v46 = vsel %vm925_vm12, %v1075_v35, 0  ;;  %1398 = vmax.xlane.f32.xlu2 %v1397_v42  ;;  %v3261_v15 = vunpack.i.h.bf16 %v3259_v41  ;;  %v3260_v16 = vunpack.i.l.bf16 %v3259_v41 }
 0x266   :  { %3040 = vmatmul.msk.bf16.vlgmr.msra.gmra.mxu2 %vm925_vm12, %v1280_v36  ;;  %1089 = vmatpush.bf16.xpose.msra.mxu3 %v1080_v46  ;;  %v3296_v11 = vunpack.i.h.bf16 %v3294_v40  ;;  %v3295_v12 = vunpack.i.l.bf16 %v3294_v40 }
 0x267   :  { %1802 = vmatpush.bf16.msrb.mxu2 %v1790_v34  ;;  %v678_v20 = vpack.c.bf16 %v3261_v15, %v3261_v15  ;;  %v677_v21 = vpack.c.bf16 %v3260_v16, %v3260_v16 }
 0x268   :  { %v792_v14 = vpack.c.bf16 %v3296_v11, %v3296_v11  ;;  %v791_v19 = vpack.c.bf16 %v3295_v12, %v3295_v12 }
 0x269   :  { %v1189_v36 = vunpack.c.l.b16 %v678_v20  ;;  %v1188_v40 = vunpack.c.l.b16 %v677_v21 }
 0x26a   :  { %v1223_v35 = vunpack.c.l.b16 %v791_v19 }
 0x26b   :  { %1914 = vmatpush.bf16.msra.mxu2 %v1902_v32  ;;  %v3988_v34 = vpop.f32.mrf.mxu0  ;;  %v1224_v32 = vunpack.c.l.b16 %v792_v14 }
 0x26c   :  { %v3249_v45 = vpop.permute.xlu1 %3248  ;;  %v3264_v50 = vpop.permute.xlu0 %3263  ;;  %v1400_v51 = vsel %vm1396_vm13, %v3988_v34, -inf }
 0x26d   :  { %v3251_v55 = vunpack.i.h.bf16 %v3249_v45  ;;  %v3250_v48 = vunpack.i.l.bf16 %v3249_v45  ;;  %v3990_v49 = vpop.permute.xlu2 %3308  ;;  %v3266_v54 = vunpack.i.h.bf16 %v3264_v50  ;;  %v3265_v5 = vunpack.i.l.bf16 %v3264_v50  ;;  %1401 = vmax.xlane.f32.xlu1 %v1400_v51 }
 0x26e   :  { %1209 = vmatpush.bf16.xpose.msrb.mxu3 %v1200_v31  ;;  %v672_v45 = vpack.c.bf16 %v3291_v23, %v3291_v23  ;;  %v1225_v51 = vpack.c.b16 %v1224_v32, %v1223_v35  ;;  %v3275_v23 = vunpack.i.l.bf16 %v3968_v44 }
 0x26f   :  { %v670_v58 = vpack.c.bf16 %v3251_v55, %v3251_v55  ;;  %v669_v61 = vpack.c.bf16 %v3250_v48, %v3250_v48  ;;  %v798_v52 = vpack.c.bf16 %v3266_v54, %v3266_v54  ;;  %v797_v59 = vpack.c.bf16 %v3265_v5, %v3265_v5 }
 0x270   :  { %v671_v55 = vpack.c.bf16 %v3290_v24, %v3290_v24  ;;  %v1190_v54 = vpack.c.b16 %v1189_v36, %v1188_v40 }
 0x271   :  { %v1069_v63 = vunpack.c.l.b16 %v670_v58  ;;  %v1068_v0 = vunpack.c.l.b16 %v669_v61  ;;  %v1314_v6 = vunpack.c.l.b16 %v798_v52  ;;  %v1313_v3 = vunpack.c.l.b16 %v797_v59 }
 0x272   :  { %v1099_v59 = vunpack.c.l.b16 %v672_v45 }
 0x273   :  { %v1070_v4 = vpack.c.b16 %v1069_v63, %v1068_v0  ;;  %v1315_v8 = vpack.c.b16 %v1314_v6, %v1313_v3  ;;  %v1098_v63 = vunpack.c.l.b16 %v671_v55 }
 0x274   :  { %v3994_v9 = vpop.permute.xlu1 %3268  ;;  %v3998_v10 = vpop.permute.xlu0 %3278 }
 0x275   :  { %v3996_v7 = vpop.permute.xlu2 %3313  ;;  %3033 = vmatmul.msk.bf16.vlgmr.msra.gmra.mxu3 %vm925_vm12, %v1070_v4  ;;  %v1320_v17 = vsel %vm925_vm12, %v1315_v8, 0  ;;  %v3271_v6 = vunpack.i.h.bf16 %v3994_v9  ;;  %v3270_v12 = vunpack.i.l.bf16 %v3994_v9  ;;  %v1100_v35 = vpack.c.b16 %v1099_v59, %v1098_v63 }
 0x276   :  { %1329 = vmatpush.bf16.xpose.msra.mxu3 %v1320_v17  ;;  %v1230_v17 = vsel %vm925_vm12, %v1225_v51, 0 }
 0x277   :  { %v685_v1 = vpack.c.bf16 %v3270_v12, %v3270_v12 }
 0x279   :  { %v4002_v18 = vpop.f32.mrf.mxu3 }
 0x27a   :  { %v1403_v22 = vsel %vm1396_vm13, %v4002_v18, -inf }
 0x27b   :  { %1404 = vmax.xlane.f32.xlu1 %v1403_v22  ;;  %v3276_v22 = vunpack.i.h.bf16 %v3968_v44 }
 0x27c   :  { %v3284_v25 = vpop.permute.xlu1 %3283  ;;  %v4008_v29 = vpop.permute.xlu0 %3298 }
 0x27d   :  { %v3286_v26 = vunpack.i.h.bf16 %v3284_v25  ;;  %v3285_v27 = vunpack.i.l.bf16 %v3284_v25  ;;  %v3329_v28 = vpop.permute.xlu2 %3328  ;;  %v686_v25 = vpack.c.bf16 %v3271_v6, %v3271_v6  ;;  %v3301_v51 = vunpack.i.h.bf16 %v4008_v29 }
 0x27e   :  { %v3331_v46 = vunpack.i.h.bf16 %v3329_v28  ;;  %v3330_v31 = vunpack.i.l.bf16 %v3329_v28 }
 0x27f   :  { %v784_v41 = vpack.c.bf16 %v3286_v26, %v3286_v26  ;;  %v783_v42 = vpack.c.bf16 %v3285_v27, %v3285_v27 }
 0x280   :  { %v794_v58 = vpack.c.bf16 %v3331_v46, %v3331_v46  ;;  %v793_v61 = vpack.c.bf16 %v3330_v31, %v3330_v31 }
 0x281   :  { %v1104_v48 = vunpack.c.l.b16 %v784_v41  ;;  %v1103_v50 = vunpack.c.l.b16 %v783_v42  ;;  %v4010_v13 = vpop.f32.mrf.mxu3  ;;  %v894_v41 = vpack.c.bf16 %v3276_v22, %v3276_v22  ;;  %v893_v42 = vpack.c.bf16 %v3275_v23, %v3275_v23 }
 0x282   :  { %v1406_v52 = vsel %vm1396_vm13, %v4010_v13, -inf  ;;  %v1254_v14 = vunpack.c.l.b16 %v794_v58  ;;  %v1253_v19 = vunpack.c.l.b16 %v793_v61 }
 0x283   :  { %v1105_v5 = vpack.c.b16 %v1104_v48, %v1103_v50  ;;  %1407 = vmax.xlane.f32.xlu0 %v1406_v52  ;;  %v1309_v48 = vunpack.c.l.b16 %v686_v25  ;;  %v1308_v50 = vunpack.c.l.b16 %v685_v1  ;;  %v1929_v59 = vunpack.c.l.b16 %v894_v41 }
 0x284   :  { %v3304_v0 = vpop.permute.xlu1 %3303  ;;  %v3319_v8 = vpop.permute.xlu0 %3318  ;;  %v1255_v36 = vpack.c.b16 %v1254_v14, %v1253_v19  ;;  %v1928_v63 = vunpack.c.l.b16 %v893_v42  ;;  %v889_v41 = vpack.c.bf16 %v3944_v56, %v3944_v56  ;;  %v3311_v42 = vunpack.i.h.bf16 %v3990_v49 }
 0x285   :  { %v3306_v3 = vunpack.i.h.bf16 %v3304_v0  ;;  %v3305_v4 = vunpack.i.l.bf16 %v3304_v0  ;;  %3037 = vmatmul.msk.bf16.vlgmr.msrb.gmra.mxu3 %vm925_vm12, %v1190_v54  ;;  %v1110_v11 = vsel %vm925_vm12, %v1105_v5, 0  ;;  %v3321_v15 = vunpack.i.h.bf16 %v3319_v8 }
 0x286   :  { %v3320_v16 = vunpack.i.l.bf16 %v3319_v8  ;;  %1830 = vmatpush.bf16.msrb.mxu3 %v1818_v60  ;;  %1119 = vmatpush.bf16.xpose.msra.mxu0 %v1110_v11  ;;  %v3300_v5 = vunpack.i.l.bf16 %v4008_v29  ;;  %v1260_v52 = vsel %vm925_vm12, %v1255_v36, 0  ;;  %v1310_v8 = vpack.c.b16 %v1309_v48, %v1308_v50 }
 0x287   :  { %v800_v20 = vpack.c.bf16 %v3306_v3, %v3306_v3  ;;  %v799_v21 = vpack.c.bf16 %v3305_v4, %v3305_v4  ;;  %v786_v24 = vpack.c.bf16 %v3321_v15, %v3321_v15  ;;  %v680_v11 = vpack.c.bf16 %v3301_v51, %v3301_v51 }
 0x288   :  { %v785_v9 = vpack.c.bf16 %v3320_v16, %v3320_v16  ;;  %v679_v12 = vpack.c.bf16 %v3300_v5, %v3300_v5  ;;  %v1930_v29 = vpack.c.b16 %v1929_v59, %v1928_v63  ;;  %v890_v36 = vpack.c.bf16 %v3947_v57, %v3947_v57 }
 0x289   :  { %v1344_v26 = vunpack.c.l.b16 %v800_v20  ;;  %v1343_v27 = vunpack.c.l.b16 %v799_v21  ;;  %v4024_v28 = vpop.f32.mrf.mxu3  ;;  %v1134_v2 = vunpack.c.l.b16 %v786_v24  ;;  %v1219_v20 = vunpack.c.l.b16 %v680_v11 }
 0x28a   :  { %v1133_v60 = vunpack.c.l.b16 %v785_v9  ;;  %v1409_v32 = vsel %vm1396_vm13, %v4024_v28, -inf  ;;  %v1218_v21 = vunpack.c.l.b16 %v679_v12  ;;  %v3315_v57 = vunpack.i.l.bf16 %v3996_v7 }
 0x28b   :  { %v1345_v40 = vpack.c.b16 %v1344_v26, %v1343_v27  ;;  %1410 = vmax.xlane.f32.xlu0 %v1409_v32  ;;  %v1873_v48 = vunpack.c.l.b16 %v890_v36  ;;  %v1872_v33 = vunpack.c.l.b16 %v889_v41 }
 0x28c   :  { %v3324_v44 = vpop.permute.xlu1 %3323  ;;  %v1135_v46 = vpack.c.b16 %v1134_v2, %v1133_v60  ;;  %v1220_v2 = vpack.c.b16 %v1219_v20, %v1218_v21  ;;  %v895_v51 = vpack.c.bf16 %v3315_v57, %v3315_v57 }
 0x28d   :  { %v3326_v31 = vunpack.i.h.bf16 %v3324_v44  ;;  %v3325_v45 = vunpack.i.l.bf16 %v3324_v44  ;;  %3034 = vmatmul.msk.bf16.vlgmr.msra.gmra.mxu0 %vm925_vm12, %v1100_v35  ;;  %v1350_v55 = vsel %vm925_vm12, %v1345_v40, 0  ;;  %v3310_v44 = vunpack.i.l.bf16 %v3990_v49 }
 0x28e   :  { %1239 = vmatpush.bf16.xpose.msrb.mxu0 %v1230_v17  ;;  %v1140_v54 = vsel %vm925_vm12, %v1135_v46, 0  ;;  %v3334_v17 = vpop.permute.xlu0 %3333  ;;  %v3316_v46 = vunpack.i.h.bf16 %v3996_v7  ;;  %v1874_v5 = vpack.c.b16 %v1873_v48, %v1872_v33 }
 0x28f   :  { %v674_v58 = vpack.c.bf16 %v3326_v31, %v3326_v31  ;;  %v673_v61 = vpack.c.bf16 %v3325_v45, %v3325_v45  ;;  %1149 = vmatpush.bf16.xpose.msrb.mxu1 %v1140_v54  ;;  %v3336_v24 = vunpack.i.h.bf16 %v3334_v17  ;;  %v3335_v9 = vunpack.i.l.bf16 %v3334_v17 }
 0x290   :  { %v687_v50 = vpack.c.bf16 %v3310_v44, %v3310_v44  ;;  %v896_v56 = vpack.c.bf16 %v3316_v46, %v3316_v46 }
 0x291   :  { %v1129_v0 = vunpack.c.l.b16 %v674_v58  ;;  %v1128_v6 = vunpack.c.l.b16 %v673_v61  ;;  %v4034_v3 = vpop.f32.mrf.mxu3  ;;  %v682_v32 = vpack.c.bf16 %v3336_v24, %v3336_v24  ;;  %v681_v35 = vpack.c.bf16 %v3335_v9, %v3335_v9 }
 0x292   :  { %v1412_v4 = vsel %vm1396_vm13, %v4034_v3, -inf  ;;  %v1338_v58 = vunpack.c.l.b16 %v687_v50  ;;  %v1957_v61 = vunpack.c.l.b16 %v896_v56 }
 0x293   :  { %v1130_v15 = vpack.c.b16 %v1129_v0, %v1128_v6  ;;  %1413 = vmax.xlane.f32.xlu2 %v1412_v4  ;;  %v1249_v31 = vunpack.c.l.b16 %v682_v32  ;;  %v1248_v45 = vunpack.c.l.b16 %v681_v35 }
 0x294   :  { %v3339_v16 = vpop.permute.xlu1 %3338 }
 0x295   :  { %v3341_v14 = vunpack.i.h.bf16 %v3339_v16  ;;  %v3340_v19 = vunpack.i.l.bf16 %v3339_v16  ;;  %3041 = vmatmul.msk.bf16.vlgmr.msra.gmra.mxu3 %vm925_vm12, %v1310_v8  ;;  %v1250_v54 = vpack.c.b16 %v1249_v31, %v1248_v45 }
 0x296   :  { %1359 = vmatpush.bf16.xpose.msra.mxu0 %v1350_v55  ;;  %3035 = vmatmul.msk.bf16.vlgmr.msrb.gmra.mxu1 %vm925_vm12, %v1130_v15  ;;  %v3344_v49 = vpop.permute.xlu0 %3343 }
 0x297   :  { %1269 = vmatpush.bf16.xpose.msra.mxu1 %v1260_v52  ;;  %1942 = vmatpush.bf16.msra.mxu3 %v1930_v29  ;;  %v802_v22 = vpack.c.bf16 %v3341_v14, %v3341_v14  ;;  %v801_v23 = vpack.c.bf16 %v3340_v19, %v3340_v19  ;;  %v1956_v52 = vunpack.c.l.b16 %v895_v51  ;;  %v3346_v59 = vunpack.i.h.bf16 %v3344_v49 }
 0x298   :  { %v3345_v63 = vunpack.i.l.bf16 %v3344_v49 }
 0x299   :  { %v1374_v25 = vunpack.c.l.b16 %v802_v22  ;;  %v1373_v26 = vunpack.c.l.b16 %v801_v23  ;;  %v4040_v27 = vpop.f32.mrf.mxu3  ;;  %v1958_v6 = vpack.c.b16 %v1957_v61, %v1956_v52  ;;  %v690_v4 = vpack.c.bf16 %v3346_v59, %v3346_v59 }
 0x29a   :  { %v1415_v1 = vsel %vm1396_vm13, %v4040_v27, -inf  ;;  %v689_v8 = vpack.c.bf16 %v3345_v63, %v3345_v63 }
 0x29b   :  { %v1375_v60 = vpack.c.b16 %v1374_v25, %v1373_v26  ;;  %1416 = vmax.xlane.f32.xlu0 %v1415_v1  ;;  %v1369_v11 = vunpack.c.l.b16 %v690_v4 }
 0x29c   :  { %v1368_v12 = vunpack.c.l.b16 %v689_v8 }
 0x29d   :  { %3038 = vmatmul.msk.bf16.vlgmr.msrb.gmra.mxu0 %vm925_vm12, %v1220_v2  ;;  %v1380_v40 = vsel %vm925_vm12, %v1375_v60, 0 }
 0x29e   :  { %1858 = vmatpush.bf16.msrb.mxu0 %v1846_v37  ;;  %v688_v37 = vpack.c.bf16 %v3311_v42, %v3311_v42  ;;  %v1370_v15 = vpack.c.b16 %v1369_v11, %v1368_v12 }
 0x29f   :  { %1389 = vmatpush.bf16.xpose.msrb.mxu1 %v1380_v40 }
 0x2a0   :  { %v1339_v7 = vunpack.c.l.b16 %v688_v37 }
 0x2a1   :  { %v4057_v55 = vpop.f32.mrf.mxu3 }
 0x2a2   :  { %v1418_v30 = vsel %vm1396_vm13, %v4057_v55, -inf  ;;  %v1340_v0 = vpack.c.b16 %v1339_v7, %v1338_v58 }
 0x2a3   :  { %1419 = vmax.xlane.f32.xlu2 %v1418_v30 }
 0x2a6   :  { %3039 = vmatmul.msk.bf16.vlgmr.msra.gmra.mxu1 %vm925_vm12, %v1250_v54 }
 0x2a7   :  { %1886 = vmatpush.bf16.msra.mxu1 %v1874_v5 }
 0x2ad   :  { %3042 = vmatmul.msk.bf16.vlgmr.msra.gmra.mxu0 %vm925_vm12, %v1340_v0 }
 0x2ae   :  { %1970 = vmatpush.bf16.msra.mxu0 %v1958_v6 }
 0x2b6   :  { %3043 = vmatmul.msk.bf16.vlgmr.msrb.gmra.mxu1 %vm925_vm12, %v1370_v15 }
 0x2d8   :  { %v1399_v29 = vpop.xlane.xlu2 %1398  ;;  %v4069_v20 = vpop.f32.mrf.mxu2 }
 0x2d9   :  { %v1493_v16 = vsub.f32 %v3979_v38, %v1399_v29  ;;  %v1445_v38 = vsel %vm1396_vm13, %v4069_v20, -inf }
 0x2db   :  { %v1525_v19 = vmul.f32 1.442695, %v1493_v16 }
 0x2dd   :  { %3387 = vpow2.f32 %v1525_v19 }
 0x2e0   :  { %v4065_v17 = vpop.f32.mrf.mxu3  ;;  %v1402_v21 = vpop.xlane.xlu1 %1401 }
 0x2e1   :  { %v1421_v14 = vsel %vm1396_vm13, %v4065_v17, -inf  ;;  %v1494_v22 = vsub.f32 %v3988_v34, %v1402_v21  ;;  %v4080_v26 = vpop.f32.mrf.mxu2 }
 0x2e2   :  { %1422 = vmax.xlane.f32.xlu2 %v1421_v14  ;;  %v1448_v34 = vsel %vm1396_vm13, %v4080_v26, -inf }
 0x2e3   :  { %v1527_v9 = vmul.f32 1.442695, %v1494_v22  ;;  %v4078_v25 = vpop.eup %3387 }
 0x2e4   :  { %v1589_v1 = vsel %vm1396_vm13, %v4078_v25, 0.0 }
 0x2e5   :  { %3389 = vpow2.f32 %v1527_v9 }
 0x2e8   :  { %v4072_v23 = vpop.f32.mrf.mxu3 }
 0x2e9   :  { %v1424_v24 = vsel %vm1396_vm13, %v4072_v23, -inf  ;;  %v4092_v35 = vpop.f32.mrf.mxu2 }
 0x2ea   :  { %1425 = vmax.xlane.f32.xlu1 %v1424_v24  ;;  %1446 = vmax.xlane.f32.xlu2 %v1445_v38  ;;  %v1469_v33 = vsel %vm1396_vm13, %v4092_v35, -inf }
 0x2eb   :  { %v4086_v2 = vpop.eup %3389 }
 0x2ec   :  { %v1592_v32 = vsel %vm1396_vm13, %v4086_v2, 0.0 }
 0x2ee   :  { %v1405_v42 = vpop.xlane.xlu1 %1404 }
 0x2ef   :  { %v1495_v57 = vsub.f32 %v4002_v18, %v1405_v42 }
 0x2f1   :  { %v4100_v44 = vpop.f32.mrf.mxu2  ;;  %v1529_v37 = vmul.f32 1.442695, %v1495_v57 }
 0x2f2   :  { %1590 = vadd.xlane.f32.xlu2 %v1589_v1  ;;  %1449 = vmax.xlane.f32.xlu1 %v1448_v34  ;;  %v1472_v45 = vsel %vm1396_vm13, %v4100_v44, -inf }
 0x2f3   :  { %3391 = vpow2.f32 %v1529_v37 }
 0x2f6   :  { %v1408_v46 = vpop.xlane.xlu0 %1407 }
 0x2f7   :  { %v1496_v48 = vsub.f32 %v4010_v13, %v1408_v46 }
 0x2f8   :  { %v4088_v60 = vpop.f32.mrf.mxu3 }
 0x2f9   :  { %v1427_v41 = vsel %vm1396_vm13, %v4088_v60, -inf  ;;  %v1531_v50 = vmul.f32 1.442695, %v1496_v48  ;;  %v4122_v5 = vpop.eup %3391 }
 0x2fa   :  { %1593 = vadd.xlane.f32.xlu1 %v1592_v32  ;;  %v1595_v59 = vsel %vm1396_vm13, %v4122_v5, 0.0 }
 0x2fb   :  { %3393 = vpow2.f32 %v1531_v50 }
 0x2fe   :  { %v1411_v4 = vpop.xlane.xlu0 %1410 }
 0x2ff   :  { %v1497_v11 = vsub.f32 %v4024_v28, %v1411_v4 }
 0x300   :  { %v4094_v36 = vpop.f32.mrf.mxu3 }
 0x301   :  { %v1430_v40 = vsel %vm1396_vm13, %v4094_v36, -inf  ;;  %v4124_v7 = vpop.eup %3393  ;;  %v1533_v14 = vmul.f32 1.442695, %v1497_v11 }
 0x302   :  { %1431 = vmax.xlane.f32.xlu0 %v1430_v40  ;;  %1428 = vmax.xlane.f32.xlu1 %v1427_v41  ;;  %v1598_v0 = vsel %vm1396_vm13, %v4124_v7, 0.0 }
 0x306   :  { %v1414_v49 = vpop.xlane.xlu2 %1413 }
 0x307   :  { %v1498_v58 = vsub.f32 %v4034_v3, %v1414_v49 }
 0x308   :  { %v4103_v31 = vpop.f32.mrf.mxu3 }
 0x309   :  { %v1535_v6 = vmul.f32 1.442695, %v1498_v58  ;;  %v1451_v8 = vsel %vm1396_vm13, %v4103_v31, -inf }
 0x30a   :  { %v4108_v30 = vpop.f32.mrf.mxu0  ;;  %1473 = vmax.xlane.f32.xlu0 %v1472_v45  ;;  %1470 = vmax.xlane.f32.xlu1 %v1469_v33 }
 0x30b   :  { %v1433_v18 = vsel %vm1396_vm13, %v4108_v30, -inf  ;;  %3395 = vpow2.f32 %v1535_v6 }
 0x30c   :  { %3397 = vpow2.f32 %v1533_v14 }
 0x30e   :  { %v1417_v29 = vpop.xlane.xlu0 %1416 }
 0x30f   :  { %v1499_v21 = vsub.f32 %v4040_v27, %v1417_v29 }
 0x310   :  { %v4112_v56 = vpop.f32.mrf.mxu3 }
 0x311   :  { %v1454_v15 = vsel %vm1396_vm13, %v4112_v56, -inf  ;;  %v4146_v16 = vpop.eup %3395  ;;  %v1537_v9 = vmul.f32 1.442695, %v1499_v21 }
 0x312   :  { %v4116_v51 = vpop.f32.mrf.mxu0  ;;  %1434 = vmax.xlane.f32.xlu0 %v1433_v18  ;;  %v1604_v22 = vsel %vm1396_vm13, %v4146_v16, 0.0  ;;  %v4161_v34 = vpop.eup %3397 }
 0x313   :  { %v4118_v13 = vpop.f32.mrf.mxu1  ;;  %v1436_v54 = vsel %vm1396_vm13, %v4116_v51, -inf  ;;  %3399 = vpow2.f32 %v1537_v9  ;;  %v1601_v41 = vsel %vm1396_vm13, %v4161_v34, 0.0 }
 0x314   :  { %1437 = vmax.xlane.f32.xlu2 %v1436_v54  ;;  %v1439_v38 = vsel %vm1396_vm13, %v4118_v13, -inf }
 0x316   :  { %v1420_v57 = vpop.xlane.xlu2 %1419 }
 0x317   :  { %v1500_v33 = vsub.f32 %v4057_v55, %v1420_v57 }
 0x318   :  { %v4127_v61 = vpop.f32.mrf.mxu3 }
 0x319   :  { %v1475_v52 = vsel %vm1396_vm13, %v4127_v61, -inf  ;;  %v4173_v46 = vpop.eup %3399  ;;  %v1539_v18 = vmul.f32 1.442695, %v1500_v33  ;;  %v3236_v33 = vunpack.i.h.bf16 %v3966_v43 }
 0x31a   :  { %1476 = vmax.xlane.f32.xlu1 %v1475_v52  ;;  %1596 = vadd.xlane.f32.xlu0 %v1595_v59  ;;  %v4148_v19 = vpop.f32.mrf.mxu0  ;;  %v1607_v48 = vsel %vm1396_vm13, %v4173_v46, 0.0 }
 0x31b   :  { %v4133_v63 = vpop.f32.mrf.mxu1  ;;  %v1457_v28 = vsel %vm1396_vm13, %v4148_v19, -inf  ;;  %3401 = vpow2.f32 %v1539_v18 }
 0x31c   :  { %1599 = vadd.xlane.f32.xlu2 %v1598_v0  ;;  %v1442_v3 = vsel %vm1396_vm13, %v4133_v63, -inf }
 0x320   :  { %v4159_v1 = vpop.f32.mrf.mxu3 }
 0x321   :  { %v1478_v32 = vsel %vm1396_vm13, %v4159_v1, -inf  ;;  %v4194_v59 = vpop.eup %3401 }
 0x322   :  { %1443 = vmax.xlane.f32.xlu1 %v1442_v3  ;;  %1452 = vmax.xlane.f32.xlu0 %v1451_v8  ;;  %v4167_v40 = vpop.f32.mrf.mxu0  ;;  %v1610_v6 = vsel %vm1396_vm13, %v4194_v59, 0.0 }
 0x323   :  { %v4142_v12 = vpop.f32.mrf.mxu1  ;;  %v1460_v37 = vsel %vm1396_vm13, %v4167_v40, -inf }
 0x324   :  { %1455 = vmax.xlane.f32.xlu2 %v1454_v15  ;;  %v1463_v27 = vsel %vm1396_vm13, %v4142_v12, -inf }
 0x32a   :  { %1605 = vadd.xlane.f32.xlu1 %v1604_v22  ;;  %1458 = vmax.xlane.f32.xlu0 %v1457_v28  ;;  %v4182_v50 = vpop.f32.mrf.mxu0 }
 0x32b   :  { %v4155_v24 = vpop.f32.mrf.mxu1  ;;  %v1481_v55 = vsel %vm1396_vm13, %v4182_v50, -inf }
 0x32c   :  { %1440 = vmax.xlane.f32.xlu2 %v1439_v38  ;;  %v1466_v58 = vsel %vm1396_vm13, %v4155_v24, -inf }
 0x332   :  { %1464 = vmax.xlane.f32.xlu1 %v1463_v27  ;;  %1479 = vmax.xlane.f32.xlu0 %v1478_v32  ;;  %v4192_v52 = vpop.f32.mrf.mxu0 }
 0x333   :  { %v4171_v42 = vpop.f32.mrf.mxu1  ;;  %v1484_v0 = vsel %vm1396_vm13, %v4192_v52, -inf }
 0x334   :  { %1602 = vadd.xlane.f32.xlu2 %v1601_v41  ;;  %v1487_v45 = vsel %vm1396_vm13, %v4171_v42, -inf }
 0x33a   :  { %1488 = vmax.xlane.f32.xlu1 %v1487_v45  ;;  %1608 = vadd.xlane.f32.xlu0 %v1607_v48 }
 0x33b   :  { %v4184_v54 = vpop.f32.mrf.mxu1 }
 0x33c   :  { %1461 = vmax.xlane.f32.xlu2 %v1460_v37  ;;  %v1490_v49 = vsel %vm1396_vm13, %v4184_v54, -inf }
 0x342   :  { %1491 = vmax.xlane.f32.xlu1 %v1490_v49  ;;  %1467 = vmax.xlane.f32.xlu0 %v1466_v58 }
 0x344   :  { %1482 = vmax.xlane.f32.xlu2 %v1481_v55  ;;  %v900_v55 = vpack.c.bf16 %v3236_v33, %v3236_v33 }
 0x34a   :  { %1485 = vmax.xlane.f32.xlu0 %v1484_v0 }
 0x34c   :  { %1611 = vadd.xlane.f32.xlu2 %v1610_v6 }
 0x355   :  { %v1423_v4 = vpop.xlane.xlu2 %1422 }
 0x356   :  { %v1501_v3 = vsub.f32 %v4065_v17, %v1423_v4 }
 0x358   :  { %v1541_v8 = vmul.f32 1.442695, %v1501_v3 }
 0x35a   :  { %3403 = vpow2.f32 %v1541_v8 }
 0x35d   :  { %v1426_v11 = vpop.xlane.xlu1 %1425  ;;  %v1447_v15 = vpop.xlane.xlu2 %1446 }
 0x35e   :  { %v1509_v29 = vsub.f32 %v4069_v20, %v1447_v15  ;;  %v1502_v22 = vsub.f32 %v4072_v23, %v1426_v11 }
 0x360   :  { %v4202_v14 = vpop.eup %3403  ;;  %v1557_v21 = vmul.f32 1.442695, %v1509_v29  ;;  %v1543_v38 = vmul.f32 1.442695, %v1502_v22  ;;  %v2013_v29 = vunpack.c.l.b16 %v900_v55 }
 0x361   :  { %v1613_v28 = vsel %vm1396_vm13, %v4202_v14, 0.0 }
 0x362   :  { %1614 = vadd.xlane.f32.xlu1 %v1613_v28  ;;  %3405 = vpow2.f32 %v1557_v21 }
 0x365   :  { %v1591_v9 = vpop.xlane.xlu2 %1590  ;;  %v1450_v27 = vpop.xlane.xlu1 %1449 }
 0x366   :  { %v1510_v17 = vsub.f32 %v4080_v26, %v1450_v27  ;;  %3407 = vrcp.f32 %v1591_v9  ;;  %v3235_v26 = vunpack.i.l.bf16 %v3966_v43 }
 0x367   :  { %3409 = vpow2.f32 %v1543_v38 }
 0x368   :  { %v1559_v32 = vmul.f32 1.442695, %v1510_v17  ;;  %v4208_v41 = vpop.eup %3405  ;;  %v899_v0 = vpack.c.bf16 %v3235_v26, %v3235_v26 }
 0x369   :  { %v1637_v20 = vsel %vm1396_vm13, %v4208_v41, 0.0 }
 0x36a   :  { %3411 = vpow2.f32 %v1559_v32  ;;  %1638 = vadd.xlane.f32.xlu0 %v1637_v20  ;;  %v2012_v21 = vunpack.c.l.b16 %v899_v0 }
 0x36c   :  { %v3408_v57 = vpop.eup %3407  ;;  %v2014_v27 = vpack.c.b16 %v2013_v29, %v2012_v21 }
 0x36d   :  { %v1594_v23 = vpop.xlane.xlu1 %1593  ;;  %v4212_v45 = vpop.eup %3409  ;;  %v1717_v37 = vmul.f32 %v3408_v57, %v4078_v25 }
 0x36e   :  { %3413 = vrcp.f32 %v1594_v23  ;;  %v1616_v49 = vsel %vm1396_vm13, %v4212_v45, 0.0 }
 0x36f   :  { %v1749_v4 = vpack.c.bf16 %v1717_v37, %v1717_v37 }
 0x370   :  { %v4214_v48 = vpop.eup %3411 }
 0x371   :  { %v1640_v18 = vsel %vm1396_vm13, %v4214_v48, 0.0  ;;  %v1783_v28 = vunpack.c.l.b16 %v1749_v4 }
 0x372   :  { %1641 = vadd.xlane.f32.xlu2 %v1640_v18  ;;  %1617 = vadd.xlane.f32.xlu0 %v1616_v49 }
 0x374   :  { %v3414_v58 = vpop.eup %3413 }
 0x375   :  { %v1432_v6 = vpop.xlane.xlu0 %1431  ;;  %v1718_v3 = vmul.f32 %v3414_v58, %v4086_v2  ;;  %v1429_v43 = vpop.xlane.xlu1 %1428 }
 0x376   :  { %v1504_v8 = vsub.f32 %v4094_v36, %v1432_v6  ;;  %v1503_v25 = vsub.f32 %v4088_v60, %v1429_v43 }
 0x377   :  { %v1750_v11 = vpack.c.bf16 %v1718_v3, %v1718_v3  ;;  %v3281_v3 = vunpack.i.h.bf16 %v3998_v10 }
 0x378   :  { %v1547_v15 = vmul.f32 1.442695, %v1504_v8  ;;  %v1545_v22 = vmul.f32 1.442695, %v1503_v25  ;;  %v3280_v8 = vunpack.i.l.bf16 %v3998_v10 }
 0x379   :  { %v1784_v38 = vunpack.c.l.b16 %v1750_v11  ;;  %v902_v21 = vpack.c.bf16 %v3281_v3, %v3281_v3 }
 0x37a   :  { %3415 = vpow2.f32 %v1547_v15 }
 0x37b   :  { %3417 = vpow2.f32 %v1545_v22  ;;  %v1785_v9 = vpack.c.b16 %v1784_v38, %v1783_v28  ;;  %v901_v22 = vpack.c.bf16 %v3280_v8, %v3280_v8 }
 0x37d   :  { %v1474_v17 = vpop.xlane.xlu0 %1473  ;;  %3044 = vmatmul.msk.bf16.vlgmr.msrb.gmra.mxu2 %vm1396_vm13, %v1785_v9  ;;  %v1471_v2 = vpop.xlane.xlu1 %1470 }
 0x37e   :  { %2026 = vmatpush.bf16.msrb.mxu2 %v2014_v27  ;;  %v1517_v36 = vsub.f32 %v4092_v35, %v1471_v2  ;;  %v1518_v23 = vsub.f32 %v4100_v44, %v1474_v17 }
 0x380   :  { %v4228_v32 = vpop.eup %3415  ;;  %v1573_v20 = vmul.f32 1.442695, %v1517_v36  ;;  %v1575_v26 = vmul.f32 1.442695, %v1518_v23  ;;  %v2041_v36 = vunpack.c.l.b16 %v902_v21 }
 0x381   :  { %v4230_v60 = vpop.eup %3417  ;;  %v1622_v57 = vsel %vm1396_vm13, %v4228_v32, 0.0 }
 0x382   :  { %1623 = vadd.xlane.f32.xlu2 %v1622_v57  ;;  %v1619_v33 = vsel %vm1396_vm13, %v4230_v60, 0.0  ;;  %3419 = vpow2.f32 %v1573_v20  ;;  %v2040_v20 = vunpack.c.l.b16 %v901_v22 }
 0x383   :  { %1620 = vadd.xlane.f32.xlu0 %v1619_v33  ;;  %3421 = vpow2.f32 %v1575_v26 }
 0x385   :  { %v1435_v37 = vpop.xlane.xlu0 %1434 }
 0x386   :  { %v1505_v49 = vsub.f32 %v4108_v30, %v1435_v37 }
 0x387   :  { %v1438_v18 = vpop.xlane.xlu2 %1437 }
 0x388   :  { %v4237_v35 = vpop.eup %3419  ;;  %v1549_v58 = vmul.f32 1.442695, %v1505_v49 }
 0x389   :  { %v1661_v44 = vsel %vm1396_vm13, %v4237_v35, 0.0  ;;  %v4244_v6 = vpop.eup %3421 }
 0x38a   :  { %1662 = vadd.xlane.f32.xlu1 %v1661_v44  ;;  %v1664_v30 = vsel %vm1396_vm13, %v4244_v6, 0.0 }
 0x38d   :  { %v4242_v55 = vpop.xlane.xlu1 %1476  ;;  %v1597_v0 = vpop.xlane.xlu0 %1596 }
 0x38e   :  { %3423 = vrcp.f32 %v1597_v0 }
 0x38f   :  { %v1600_v4 = vpop.xlane.xlu2 %1599 }
 0x390   :  { %3425 = vrcp.f32 %v1600_v4 }
 0x391   :  { %3427 = vpow2.f32 %v1549_v58 }
 0x392   :  { %1665 = vadd.xlane.f32.xlu1 %v1664_v30 }
 0x394   :  { %v3424_v43 = vpop.eup %3423 }
 0x395   :  { %v1719_v25 = vmul.f32 %v3424_v43, %v4122_v5  ;;  %v4251_v11 = vpop.xlane.xlu1 %1443  ;;  %v1453_v15 = vpop.xlane.xlu0 %1452  ;;  %v1506_v5 = vsub.f32 %v4116_v51, %v1438_v18 }
 0x396   :  { %v3426_v29 = vpop.eup %3425  ;;  %v1511_v28 = vsub.f32 %v4103_v31, %v1453_v15 }
 0x397   :  { %v4254_v38 = vpop.eup %3427  ;;  %v1751_v9 = vpack.c.bf16 %v1719_v25, %v1719_v25  ;;  %v1720_v10 = vmul.f32 %v3426_v29, %v4124_v7  ;;  %3358 = vrot.lane.b32.xlu0 %v3923_v47, %s3722_s16  ;;  %v1456_v27 = vpop.xlane.xlu2 %1455  ;;  %v1551_v33 = vmul.f32 1.442695, %v1506_v5  ;;  %v2042_v7 = vpack.c.b16 %v2041_v36, %v2040_v20 }
 0x398   :  { %v1561_v17 = vmul.f32 1.442695, %v1511_v28  ;;  %v1625_v23 = vsel %vm1396_vm13, %v4254_v38, 0.0 }
 0x399   :  { %v1752_v2 = vpack.c.bf16 %v1720_v10, %v1720_v10  ;;  %v1811_v57 = vunpack.c.l.b16 %v1751_v9  ;;  %v1512_v10 = vsub.f32 %v4112_v56, %v1456_v27 }
 0x39a   :  { %3429 = vpow2.f32 %v1561_v17  ;;  %1626 = vadd.xlane.f32.xlu1 %v1625_v23 }
 0x39b   :  { %v1812_v31 = vunpack.c.l.b16 %v1752_v2  ;;  %3431 = vpow2.f32 %v1551_v33  ;;  %v1519_v2 = vsub.f32 %v4127_v61, %v4242_v55 }
 0x39d   :  { %v1813_v26 = vpack.c.b16 %v1812_v31, %v1811_v57  ;;  %v1606_v37 = vpop.xlane.xlu1 %1605  ;;  %v1459_v44 = vpop.xlane.xlu0 %1458  ;;  %v1577_v20 = vmul.f32 1.442695, %v1519_v2  ;;  %v1508_v31 = vsub.f32 %v4133_v63, %v4251_v11 }
 0x39e   :  { %3433 = vrcp.f32 %v1606_v37 }
 0x39f   :  { %3363 = vrot.lane.b32.xlu0 %v3952_v53, %s3722_s16  ;;  %v4264_v49 = vpop.xlane.xlu2 %1440  ;;  %3045 = vmatmul.msk.bf16.vlgmr.msrb.gmra.mxu3 %vm1396_vm13, %v1813_v26 }
 0x3a0   :  { %2054 = vmatpush.bf16.msrb.mxu3 %v2042_v7  ;;  %v4267_v51 = vpop.eup %3429  ;;  %v1555_v7 = vmul.f32 1.442695, %v1508_v31 }
 0x3a1   :  { %v1643_v18 = vsel %vm1396_vm13, %v4267_v51, 0.0  ;;  %v4271_v58 = vpop.eup %3431 }
 0x3a2   :  { %1644 = vadd.xlane.f32.xlu2 %v1643_v18  ;;  %v1628_v3 = vsel %vm1396_vm13, %v4271_v58, 0.0 }
 0x3a4   :  { %v3434_v4 = vpop.eup %3433 }
 0x3a5   :  { %v1722_v8 = vmul.f32 %v3434_v4, %v4146_v16  ;;  %v1480_v30 = vpop.xlane.xlu0 %1479  ;;  %v1563_v16 = vmul.f32 1.442695, %v1512_v10  ;;  %v1465_v23 = vpop.xlane.xlu1 %1464 }
 0x3a7   :  { %v1603_v0 = vpop.xlane.xlu2 %1602  ;;  %v1754_v25 = vpack.c.bf16 %v1722_v8, %v1722_v8 }
 0x3a8   :  { %3435 = vrcp.f32 %v1603_v0 }
 0x3a9   :  { %v1840_v22 = vunpack.c.l.b16 %v1754_v25 }
 0x3aa   :  { %1629 = vadd.xlane.f32.xlu2 %v1628_v3 }
 0x3ad   :  { %v1609_v17 = vpop.xlane.xlu0 %1608  ;;  %v4296_v0 = vpop.xlane.xlu1 %1488 }
 0x3ae   :  { %v3436_v43 = vpop.eup %3435  ;;  %3437 = vrcp.f32 %v1609_v17 }
 0x3af   :  { %v1721_v15 = vmul.f32 %v3436_v43, %v4161_v34  ;;  %v1462_v29 = vpop.xlane.xlu2 %1461  ;;  %3439 = vpow2.f32 %v1563_v16 }
 0x3b0   :  { %v1514_v63 = vsub.f32 %v4167_v40, %v1462_v29 }
 0x3b1   :  { %v1753_v21 = vpack.c.bf16 %v1721_v15, %v1721_v15 }
 0x3b2   :  { %v1567_v8 = vmul.f32 1.442695, %v1514_v63 }
 0x3b3   :  { %v1839_v28 = vunpack.c.l.b16 %v1753_v21  ;;  %3353 = vrot.lane.b32.xlu1 %v3952_v53, %s3725_s4  ;;  %v1507_v21 = vsub.f32 %v4118_v13, %v4264_v49 }
 0x3b4   :  { %v3438_v36 = vpop.eup %3437 }
 0x3b5   :  { %v1841_v9 = vpack.c.b16 %v1840_v22, %v1839_v28  ;;  %v1723_v57 = vmul.f32 %v3438_v36, %v4173_v46  ;;  %v4286_v56 = vpop.eup %3439  ;;  %v1468_v4 = vpop.xlane.xlu0 %1467 }
 0x3b6   :  { %v1646_v55 = vsel %vm1396_vm13, %v4286_v56, 0.0  ;;  %v4305_v43 = vpop.xlane.xlu1 %1491  ;;  %v1516_v25 = vsub.f32 %v4155_v24, %v1468_v4 }
 0x3b7   :  { %v1483_v5 = vpop.xlane.xlu2 %1482  ;;  %3046 = vmatmul.msk.bf16.vlgmr.msrb.gmra.mxu0 %vm1396_vm13, %v1841_v9  ;;  %v1755_v33 = vpack.c.bf16 %v1723_v57, %v1723_v57  ;;  %v1553_v9 = vmul.f32 1.442695, %v1507_v21 }
 0x3b8   :  { %v1571_v28 = vmul.f32 1.442695, %v1516_v25 }
 0x3b9   :  { %v1867_v46 = vunpack.c.l.b16 %v1755_v33  ;;  %v3240_v33 = vunpack.i.l.bf16 %v3981_v39 }
 0x3bd   :  { %v1486_v15 = vpop.xlane.xlu0 %1485 }
 0x3be   :  { %v1522_v31 = vsub.f32 %v4192_v52, %v1486_v15 }
 0x3bf   :  { %v1612_v34 = vpop.xlane.xlu2 %1611 }
 0x3c0   :  { %3441 = vrcp.f32 %v1612_v34 }
 0x3c1   :  { %3443 = vpow2.f32 %v1577_v20 }
 0x3c2   :  { %3348 = vrot.lane.b32.xlu2 %v3900_v62, %s3726_s1  ;;  %v1513_v62 = vsub.f32 %v4148_v19, %v1459_v44  ;;  %3445 = vpow2.f32 %v1555_v7  ;;  %v1520_v19 = vsub.f32 %v4159_v1, %v1480_v30  ;;  %v1521_v1 = vsub.f32 %v4182_v50, %v1483_v5 }
 0x3c3   :  { %v1515_v50 = vsub.f32 %v4142_v12, %v1465_v23  ;;  %v3241_v23 = vunpack.i.h.bf16 %v3981_v39 }
 0x3c4   :  { %v1579_v40 = vmul.f32 1.442695, %v1520_v19  ;;  %v1581_v16 = vmul.f32 1.442695, %v1521_v1 }
 0x3c5   :  { %v1569_v34 = vmul.f32 1.442695, %v1515_v50 }
 0x3c6   :  { %v3442_v27 = vpop.eup %3441 }
 0x3c7   :  { %v1724_v61 = vmul.f32 %v3442_v27, %v4194_v59  ;;  %v4294_v18 = vpop.eup %3443  ;;  %v1565_v59 = vmul.f32 1.442695, %v1513_v62  ;;  %v907_v62 = vpack.c.bf16 %v3240_v33, %v3240_v33 }
 0x3c8   :  { %v1667_v11 = vsel %vm1396_vm13, %v4294_v18, 0.0  ;;  %v4303_v44 = vpop.eup %3445 }
 0x3c9   :  { %v1756_v26 = vpack.c.bf16 %v1724_v61, %v1724_v61  ;;  %1647 = vadd.xlane.f32.xlu0 %v1646_v55  ;;  %3447 = vpow2.f32 %v1565_v59  ;;  %v1634_v29 = vsel %vm1396_vm13, %v4303_v44, 0.0  ;;  %v2124_v59 = vunpack.c.l.b16 %v907_v62 }
 0x3ca   :  { %3449 = vpow2.f32 %v1567_v8 }
 0x3cb   :  { %v1868_v37 = vunpack.c.l.b16 %v1756_v26  ;;  %3451 = vpow2.f32 %v1579_v40  ;;  %v1583_v26 = vmul.f32 1.442695, %v1522_v31 }
 0x3cc   :  { %3453 = vpow2.f32 %v1571_v28 }
 0x3cd   :  { %v1869_v3 = vpack.c.b16 %v1868_v37, %v1867_v46  ;;  %3455 = vpow2.f32 %v1553_v9  ;;  %v908_v37 = vpack.c.bf16 %v3241_v23, %v3241_v23  ;;  %v1524_v9 = vsub.f32 %v4184_v54, %v4305_v43 }
 0x3cf   :  { %3047 = vmatmul.msk.bf16.vlgmr.msra.gmra.mxu1 %vm1396_vm13, %v1869_v3  ;;  %v4312_v22 = vpop.eup %3447  ;;  %v2125_v63 = vunpack.c.l.b16 %v908_v37 }
 0x3d0   :  { %v4315_v30 = vpop.eup %3449  ;;  %v1649_v24 = vsel %vm1396_vm13, %v4312_v22, 0.0 }
 0x3d1   :  { %1668 = vadd.xlane.f32.xlu0 %v1667_v11  ;;  %v1652_v13 = vsel %vm1396_vm13, %v4315_v30, 0.0  ;;  %v4321_v49 = vpop.eup %3451  ;;  %v1523_v11 = vsub.f32 %v4171_v42, %v4296_v0 }
 0x3d2   :  { %v4324_v5 = vpop.eup %3453  ;;  %v1670_v2 = vsel %vm1396_vm13, %v4321_v49, 0.0 }
 0x3d3   :  { %v4328_v36 = vpop.eup %3455  ;;  %v1658_v27 = vsel %vm1396_vm13, %v4324_v5, 0.0  ;;  %v1585_v21 = vmul.f32 1.442695, %v1523_v11 }
 0x3d4   :  { %v1631_v55 = vsel %vm1396_vm13, %v4328_v36, 0.0 }
 0x3d5   :  { %v1615_v10 = vpop.xlane.xlu1 %1614 }
 0x3d6   :  { %3457 = vrcp.f32 %v1615_v10 }
 0x3d7   :  { %3459 = vpow2.f32 %v1581_v16 }
 0x3d9   :  { %1635 = vadd.xlane.f32.xlu0 %v1634_v29  ;;  %v2126_v29 = vpack.c.b16 %v2125_v63, %v2124_v59 }
 0x3dc   :  { %v3458_v57 = vpop.eup %3457 }
 0x3dd   :  { %1650 = vadd.xlane.f32.xlu1 %v1649_v24  ;;  %v1639_v17 = vpop.xlane.xlu0 %1638  ;;  %v4333_v12 = vpop.eup %3459  ;;  %v1725_v61 = vmul.f32 %v3458_v57, %v4202_v14 }
 0x3de   :  { %v1673_v46 = vsel %vm1396_vm13, %v4333_v12, 0.0 }
 0x3df   :  { %v1757_v4 = vpack.c.bf16 %v1725_v61, %v1725_v61 }
 0x3e1   :  { %1653 = vadd.xlane.f32.xlu0 %v1652_v13  ;;  %v1895_v8 = vunpack.c.l.b16 %v1757_v4 }
 0x3e5   :  { %1671 = vadd.xlane.f32.xlu1 %v1670_v2  ;;  %v1618_v20 = vpop.xlane.xlu0 %1617  ;;  %v1642_v7 = vpop.xlane.xlu2 %1641  ;;  %v1587_v2 = vmul.f32 1.442695, %v1524_v9 }
 0x3e6   :  { %3461 = vrcp.f32 %v1618_v20 }
 0x3e7   :  { %3463 = vpow2.f32 %v1569_v34 }
 0x3e8   :  { %3465 = vrcp.f32 %v1642_v7  ;;  %v4375_v7 = vld [vmem:[#allocation10] sm:$0xff] }
 0x3e9   :  { %1659 = vadd.xlane.f32.xlu0 %v1658_v27  ;;  %3467 = vpow2.f32 %v1583_v26 }
 0x3ea   :  { %3469 = vrcp.f32 %v1639_v17 }
 0x3eb   :  { %1632 = vadd.xlane.f32.xlu2 %v1631_v55 }
 0x3ec   :  { %v3462_v52 = vpop.eup %3461 }
 0x3ed   :  { %1674 = vadd.xlane.f32.xlu1 %v1673_v46  ;;  %v1726_v3 = vmul.f32 %v3462_v52, %v4212_v45  ;;  %v4343_v39 = vpop.eup %3463 }
 0x3ee   :  { %v1655_v25 = vsel %vm1396_vm13, %v4343_v39, 0.0  ;;  %v3466_v45 = vpop.eup %3465 }
 0x3ef   :  { %v1758_v14 = vpack.c.bf16 %v1726_v3, %v1726_v3  ;;  %v4349_v1 = vpop.eup %3467  ;;  %v1734_v0 = vmul.f32 %v3466_v45, %v4214_v48 }
 0x3f0   :  { %v3470_v42 = vpop.eup %3469  ;;  %v1676_v10 = vsel %vm1396_vm13, %v4349_v1, 0.0 }
 0x3f1   :  { %v1896_v19 = vunpack.c.l.b16 %v1758_v14  ;;  %v1733_v24 = vmul.f32 %v3470_v42, %v4208_v41  ;;  %v1766_v13 = vpack.c.bf16 %v1734_v0, %v1734_v0 }
 0x3f3   :  { %1656 = vadd.xlane.f32.xlu2 %v1655_v25  ;;  %v1897_v15 = vpack.c.b16 %v1896_v19, %v1895_v8  ;;  %v1765_v20 = vpack.c.bf16 %v1733_v24, %v1733_v24  ;;  %v2008_v57 = vunpack.c.l.b16 %v1766_v13 }
 0x3f5   :  { %v1624_v40 = vpop.xlane.xlu2 %1623  ;;  %3048 = vmatmul.msk.bf16.vlgmr.msra.gmra.mxu2 %vm1396_vm13, %v1897_v15  ;;  %v2007_v23 = vunpack.c.l.b16 %v1765_v20 }
 0x3f6   :  { %3471 = vrcp.f32 %v1624_v40  ;;  %v1621_v28 = vpop.xlane.xlu0 %1620  ;;  %2138 = vmatpush.bf16.msra.mxu2 %v2126_v29 }
 0x3f7   :  { %3473 = vrcp.f32 %v1621_v28 }
 0x3f8   :  { %3475 = vpow2.f32 %v1585_v21 }
 0x3fb   :  { %1677 = vadd.xlane.f32.xlu2 %v1676_v10 }
 0x3fc   :  { %v3472_v17 = vpop.eup %3471 }
 0x3fd   :  { %v3474_v16 = vpop.eup %3473  ;;  %v1728_v50 = vmul.f32 %v3472_v17, %v4228_v32  ;;  %3373 = vrot.lane.b32.xlu0 %v3952_v53, %s3726_s1  ;;  %v1663_v34 = vpop.xlane.xlu1 %1662  ;;  %v4366_v53 = vld [vmem:[#allocation10 + $0x8] sm:$0xff] }
 0x3fe   :  { %v1727_v48 = vmul.f32 %v3474_v16, %v4230_v60  ;;  %v4362_v43 = vpop.eup %3475  ;;  %3477 = vrcp.f32 %v1663_v34  ;;  %v2009_v60 = vpack.c.b16 %v2008_v57, %v2007_v23 }
 0x3ff   :  { %v1760_v54 = vpack.c.bf16 %v1728_v50, %v1728_v50  ;;  %3479 = vpow2.f32 %v1587_v2  ;;  %v1679_v32 = vsel %vm1396_vm13, %v4362_v43, 0.0 }
 0x400   :  { %v1759_v41 = vpack.c.bf16 %v1727_v48, %v1727_v48  ;;  %v1804_v19 = vpop.f32.mrf.mxu2 }
 0x401   :  { %v1924_v27 = vunpack.c.l.b16 %v1760_v54  ;;  %v2229_v24 = vpack.c.bf16 %v1804_v19, %v1804_v19 }
 0x402   :  { %v1923_v31 = vunpack.c.l.b16 %v1759_v41 }
 0x403   :  { %1680 = vadd.xlane.f32.xlu2 %v1679_v32  ;;  %v2285_v2 = vunpack.c.l.b16 %v2229_v24 }
 0x404   :  { %v1925_v33 = vpack.c.b16 %v1924_v27, %v1923_v31  ;;  %v3478_v55 = vpop.eup %3477 }
 0x405   :  { %v1666_v61 = vpop.xlane.xlu1 %1665  ;;  %3052 = vmatmul.msk.bf16.vlgmr.msrb.gmra.mxu2 %vm1396_vm13, %v2009_v60  ;;  %v4372_v26 = vpop.eup %3479  ;;  %v1741_v52 = vmul.f32 %v3478_v55, %v4237_v35 }
 0x406   :  { %3049 = vmatmul.msk.bf16.vlgmr.msra.gmra.mxu3 %vm1396_vm13, %v1925_v33  ;;  %3481 = vrcp.f32 %v1666_v61  ;;  %3368 = vrot.lane.b32.xlu1 %v3923_v47, %s3726_s1  ;;  %v1682_v4 = vsel %vm1396_vm13, %v4372_v26, 0.0 }
 0x407   :  { %2327 = vmatpush.bf16.msrb.mxu2 %v4366_v53  ;;  %v1773_v63 = vpack.c.bf16 %v1741_v52, %v1741_v52 }
 0x408   :  { %v1806_v28 = vpop.f32.mrf.mxu2 }
 0x409   :  { %v3359_v46 = vpop.permute.xlu0 %3358  ;;  %v2119_v35 = vunpack.c.l.b16 %v1773_v63  ;;  %v2230_v42 = vpack.c.bf16 %v1806_v28, %v1806_v28 }
 0x40a   :  { %v3361_v37 = vunpack.i.h.bf16 %v3359_v46  ;;  %v3360_v62 = vunpack.i.l.bf16 %v3359_v46 }
 0x40b   :  { %1683 = vadd.xlane.f32.xlu2 %v1682_v4  ;;  %2328 = vmatpush.bf16.msrb.mxu2 %v4375_v7  ;;  %v2286_v10 = vunpack.c.l.b16 %v2230_v42 }
 0x40c   :  { %v904_v3 = vpack.c.bf16 %v3361_v37, %v3361_v37  ;;  %v903_v14 = vpack.c.bf16 %v3360_v62, %v3360_v62  ;;  %v3482_v47 = vpop.eup %3481 }
 0x40d   :  { %v1742_v59 = vmul.f32 %v3482_v47, %v4244_v6  ;;  %v1627_v29 = vpop.xlane.xlu1 %1626  ;;  %v2293_v34 = vpack.c.b16 %v2286_v10, %v2285_v2 }
 0x40e   :  { %v2069_v11 = vunpack.c.l.b16 %v904_v3  ;;  %v2068_v8 = vunpack.c.l.b16 %v903_v14  ;;  %3483 = vrcp.f32 %v1627_v29 }
 0x40f   :  { %v1774_v25 = vpack.c.bf16 %v1742_v59, %v1742_v59 }
 0x410   :  { %v2070_v15 = vpack.c.b16 %v2069_v11, %v2068_v8 }
 0x411   :  { %v2120_v40 = vunpack.c.l.b16 %v1774_v25  ;;  %v3364_v6 = vpop.permute.xlu0 %3363 }
 0x412   :  { %2082 = vmatpush.bf16.msrb.mxu0 %v2070_v15  ;;  %v3366_v16 = vunpack.i.h.bf16 %v3364_v6  ;;  %v3365_v13 = vunpack.i.l.bf16 %v3364_v6 }
 0x413   :  { %v2121_v45 = vpack.c.b16 %v2120_v40, %v2119_v35 }
 0x414   :  { %v3484_v9 = vpop.eup %3483  ;;  %v906_v54 = vpack.c.bf16 %v3366_v16, %v3366_v16  ;;  %v905_v41 = vpack.c.bf16 %v3365_v13, %v3365_v13 }
 0x415   :  { %v1645_v21 = vpop.xlane.xlu2 %1644  ;;  %3056 = vmatmul.msk.bf16.vlgmr.msra.gmra.mxu2 %vm1396_vm13, %v2121_v45  ;;  %v1729_v17 = vmul.f32 %v3484_v9, %v4254_v38 }
 0x416   :  { %v2097_v62 = vunpack.c.l.b16 %v906_v54  ;;  %v2096_v4 = vunpack.c.l.b16 %v905_v41 }
 0x417   :  { %v1761_v20 = vpack.c.bf16 %v1729_v17, %v1729_v17 }
 0x418   :  { %v2098_v15 = vpack.c.b16 %v2097_v62, %v2096_v4 }
 0x419   :  { %v1951_v37 = vunpack.c.l.b16 %v1761_v20 }
 0x41d   :  { %v1630_v0 = vpop.xlane.xlu2 %1629 }
 0x41e   :  { %3485 = vrcp.f32 %v1630_v0 }
 0x41f   :  { %3487 = vrcp.f32 %v1645_v21 }
 0x422   :  { %v1832_v50 = vpop.f32.mrf.mxu3 }
 0x423   :  { %v2231_v35 = vpack.c.bf16 %v1832_v50, %v1832_v50 }
 0x424   :  { %v3486_v48 = vpop.eup %3485 }
 0x425   :  { %v1730_v57 = vmul.f32 %v3486_v48, %v4271_v58  ;;  %v3354_v27 = vpop.permute.xlu1 %3353  ;;  %v3349_v31 = vpop.permute.xlu2 %3348  ;;  %3068 = vmatmul.msk.bf16.vlgmr.msrb.gmra.mxu2 %vm925_vm12, %v2293_v34  ;;  %v2287_v45 = vunpack.c.l.b16 %v2231_v35 }
 0x426   :  { %v3356_v23 = vunpack.i.h.bf16 %v3354_v27  ;;  %v3355_v32 = vunpack.i.l.bf16 %v3354_v27  ;;  %v3351_v33 = vunpack.i.h.bf16 %v3349_v31  ;;  %v3350_v60 = vunpack.i.l.bf16 %v3349_v31  ;;  %v3488_v42 = vpop.eup %3487 }
 0x427   :  { %v1762_v38 = vpack.c.bf16 %v1730_v57, %v1730_v57  ;;  %v1735_v0 = vmul.f32 %v3488_v42, %v4267_v51 }
 0x428   :  { %v898_v61 = vpack.c.bf16 %v3356_v23, %v3356_v23  ;;  %v897_v55 = vpack.c.bf16 %v3355_v32, %v3355_v32  ;;  %v910_v46 = vpack.c.bf16 %v3351_v33, %v3351_v33  ;;  %v909_v52 = vpack.c.bf16 %v3350_v60, %v3350_v60 }
 0x429   :  { %v1952_v3 = vunpack.c.l.b16 %v1762_v38  ;;  %v1767_v24 = vpack.c.bf16 %v1735_v0, %v1735_v0  ;;  %v3167_v0 = vld [vmem:[#allocation10 + $0x18] sm:$0xff] }
 0x42a   :  { %v1834_v14 = vpop.f32.mrf.mxu3  ;;  %v1985_v47 = vunpack.c.l.b16 %v898_v61  ;;  %v1984_v58 = vunpack.c.l.b16 %v897_v55  ;;  %v2153_v63 = vunpack.c.l.b16 %v910_v46  ;;  %v2152_v59 = vunpack.c.l.b16 %v909_v52 }
 0x42b   :  { %v1953_v11 = vpack.c.b16 %v1952_v3, %v1951_v37  ;;  %v2232_v25 = vpack.c.bf16 %v1834_v14, %v1834_v14  ;;  %v2035_v16 = vunpack.c.l.b16 %v1767_v24 }
 0x42c   :  { %v1986_v8 = vpack.c.b16 %v1985_v47, %v1984_v58  ;;  %v2154_v19 = vpack.c.b16 %v2153_v63, %v2152_v59 }
 0x42d   :  { %3050 = vmatmul.msk.bf16.vlgmr.msra.gmra.mxu0 %vm1396_vm13, %v1953_v11  ;;  %v2288_v40 = vunpack.c.l.b16 %v2232_v25 }
 0x42e   :  { %1998 = vmatpush.bf16.msrb.mxu1 %v1986_v8  ;;  %2166 = vmatpush.bf16.msra.mxu3 %v2154_v19 }
 0x42f   :  { %v2294_v29 = vpack.c.b16 %v2288_v40, %v2287_v45 }
 0x432   :  { %2110 = vmatpush.bf16.msra.mxu1 %v2098_v15 }
 0x435   :  { %3069 = vmatmul.msk.bf16.gmra.mxu2 %vm925_vm12, %v2294_v29 }
 0x43c   :  { %v1648_v28 = vpop.xlane.xlu0 %1647 }
 0x43d   :  { %3489 = vrcp.f32 %v1648_v28 }
 0x443   :  { %v3490_v9 = vpop.eup %3489 }
 0x444   :  { %v1736_v6 = vmul.f32 %v3490_v9, %v4286_v56  ;;  %v1669_v10 = vpop.xlane.xlu0 %1668 }
 0x446   :  { %v1768_v17 = vpack.c.bf16 %v1736_v6, %v1736_v6 }
 0x448   :  { %v2036_v13 = vunpack.c.l.b16 %v1768_v17 }
 0x44a   :  { %v2037_v50 = vpack.c.b16 %v2036_v13, %v2035_v16 }
 0x44c   :  { %3053 = vmatmul.msk.bf16.vlgmr.msrb.gmra.mxu3 %vm1396_vm13, %v2037_v50  ;;  %v1636_v2 = vpop.xlane.xlu0 %1635  ;;  %v1888_v29 = vpop.f32.mrf.mxu1 }
 0x44d   :  { %3180 = vmatpush.bf16.msrb.mxu3 %v4366_v53 }
 0x450   :  { %v1651_v21 = vpop.xlane.xlu1 %1650 }
 0x451   :  { %3181 = vmatpush.bf16.msrb.mxu3 %v4375_v7  ;;  %3491 = vrcp.f32 %v1651_v21  ;;  %v3166_v21 = vld [vmem:[#allocation10 + $0x10] sm:$0xff] }
 0x452   :  { %3493 = vrcp.f32 %v1669_v10 }
 0x454   :  { %v1654_v51 = vpop.xlane.xlu0 %1653 }
 0x455   :  { %3495 = vrcp.f32 %v1654_v51 }
 0x456   :  { %3497 = vrcp.f32 %v1636_v2 }
 0x457   :  { %v3492_v48 = vpop.eup %3491 }
 0x458   :  { %v1737_v56 = vmul.f32 %v3492_v48, %v4312_v22  ;;  %v1672_v34 = vpop.xlane.xlu1 %1671  ;;  %v3494_v20 = vpop.eup %3493 }
 0x459   :  { %3499 = vrcp.f32 %v1672_v34  ;;  %v1743_v53 = vmul.f32 %v3494_v20, %v4294_v18  ;;  %v1860_v22 = vpop.f32.mrf.mxu0 }
 0x45a   :  { %v1769_v41 = vpack.c.bf16 %v1737_v56, %v1737_v56  ;;  %v2233_v40 = vpack.c.bf16 %v1860_v22, %v1860_v22 }
 0x45b   :  { %v3496_v54 = vpop.eup %3495  ;;  %v1775_v60 = vpack.c.bf16 %v1743_v53, %v1743_v53 }
 0x45c   :  { %v1738_v57 = vmul.f32 %v3496_v54, %v4315_v30  ;;  %v3498_v31 = vpop.eup %3497  ;;  %v2063_v32 = vunpack.c.l.b16 %v1769_v41  ;;  %v1660_v4 = vpop.xlane.xlu0 %1659  ;;  %v2289_v16 = vunpack.c.l.b16 %v2233_v40 }
 0x45d   :  { %v1732_v55 = vmul.f32 %v3498_v31, %v4303_v44  ;;  %v2147_v30 = vunpack.c.l.b16 %v1775_v60  ;;  %v1890_v31 = vpop.f32.mrf.mxu1 }
 0x45e   :  { %v1770_v27 = vpack.c.bf16 %v1738_v57, %v1738_v57  ;;  %v1633_v7 = vpop.xlane.xlu2 %1632 }
 0x45f   :  { %v3500_v23 = vpop.eup %3499  ;;  %3501 = vrcp.f32 %v1633_v7  ;;  %v1764_v37 = vpack.c.bf16 %v1732_v55, %v1732_v55 }
 0x460   :  { %v2064_v33 = vunpack.c.l.b16 %v1770_v27  ;;  %v1744_v38 = vmul.f32 %v3500_v23, %v4321_v49  ;;  %v1675_v63 = vpop.xlane.xlu1 %1674 }
 0x461   :  { %v1980_v49 = vunpack.c.l.b16 %v1764_v37  ;;  %v1862_v44 = vpop.f32.mrf.mxu0 }
 0x462   :  { %v2065_v61 = vpack.c.b16 %v2064_v33, %v2063_v32  ;;  %v1776_v46 = vpack.c.bf16 %v1744_v38, %v1744_v38  ;;  %v2234_v8 = vpack.c.bf16 %v1862_v44, %v1862_v44  ;;  %v2236_v38 = vpack.c.bf16 %v1890_v31, %v1890_v31 }
 0x464   :  { %3054 = vmatmul.msk.bf16.vlgmr.msrb.gmra.mxu0 %vm1396_vm13, %v2065_v61  ;;  %v2148_v52 = vunpack.c.l.b16 %v1776_v46  ;;  %v2290_v9 = vunpack.c.l.b16 %v2234_v8  ;;  %v3169_v61 = vld [vmem:[#allocation10 + $0x28] sm:$0xff] }
 0x465   :  { %v3502_v18 = vpop.eup %3501 }
 0x466   :  { %v2149_v62 = vpack.c.b16 %v2148_v52, %v2147_v30  ;;  %v1731_v3 = vmul.f32 %v3502_v18, %v4328_v36  ;;  %v1657_v14 = vpop.xlane.xlu2 %1656  ;;  %v2295_v51 = vpack.c.b16 %v2290_v9, %v2289_v16  ;;  %v2235_v30 = vpack.c.bf16 %v1888_v29, %v1888_v29  ;;  %v3171_v18 = vld [vmem:[#allocation10 + $0x38] sm:$0xff] }
 0x467   :  { %3503 = vrcp.f32 %v1657_v14  ;;  %v3168_v14 = vld [vmem:[#allocation10 + $0x20] sm:$0xff] }
 0x468   :  { %v1763_v47 = vpack.c.bf16 %v1731_v3, %v1731_v3  ;;  %3057 = vmatmul.msk.bf16.vlgmr.msra.gmra.mxu3 %vm1396_vm13, %v2149_v62  ;;  %3505 = vrcp.f32 %v1660_v4  ;;  %v2292_v62 = vunpack.c.l.b16 %v2236_v38 }
 0x469   :  { %3507 = vrcp.f32 %v1675_v63  ;;  %2400 = vmatpush.bf16.msra.mxu3 %v3167_v0 }
 0x46a   :  { %v1979_v58 = vunpack.c.l.b16 %v1763_v47  ;;  %v2291_v47 = vunpack.c.l.b16 %v2235_v30 }
 0x46c   :  { %v1981_v59 = vpack.c.b16 %v1980_v49, %v1979_v58  ;;  %v3170_v49 = vld [vmem:[#allocation10 + $0x30] sm:$0xff]  ;;  %v2296_v44 = vpack.c.b16 %v2292_v62, %v2291_v47 }
 0x46d   :  { %v3504_v11 = vpop.eup %3503  ;;  %2401 = vmatpush.bf16.msra.mxu3 %v3166_v21 }
 0x46e   :  { %v1678_v19 = vpop.xlane.xlu2 %1677  ;;  %3051 = vmatmul.msk.bf16.vlgmr.msrb.gmra.mxu1 %vm1396_vm13, %v1981_v59  ;;  %v3506_v15 = vpop.eup %3505  ;;  %v1739_v45 = vmul.f32 %v3504_v11, %v4343_v39 }
 0x46f   :  { %v3374_v25 = vpop.permute.xlu0 %3373  ;;  %3509 = vrcp.f32 %v1678_v19  ;;  %v1740_v24 = vmul.f32 %v3506_v15, %v4324_v5  ;;  %v3508_v17 = vpop.eup %3507 }
 0x470   :  { %v3376_v36 = vunpack.i.h.bf16 %v3374_v25  ;;  %v3375_v35 = vunpack.i.l.bf16 %v3374_v25  ;;  %v1771_v13 = vpack.c.bf16 %v1739_v45, %v1739_v45  ;;  %v1745_v34 = vmul.f32 %v3508_v17, %v4333_v12 }
 0x471   :  { %v1772_v48 = vpack.c.bf16 %v1740_v24, %v1740_v24 }
 0x472   :  { %v914_v28 = vpack.c.bf16 %v3376_v36, %v3376_v36  ;;  %v913_v42 = vpack.c.bf16 %v3375_v35, %v3375_v35  ;;  %v2091_v20 = vunpack.c.l.b16 %v1771_v13  ;;  %v1777_v32 = vpack.c.bf16 %v1745_v34, %v1745_v34 }
 0x473   :  { %v2092_v53 = vunpack.c.l.b16 %v1772_v48 }
 0x474   :  { %v2209_v6 = vunpack.c.l.b16 %v914_v28  ;;  %v2208_v10 = vunpack.c.l.b16 %v913_v42  ;;  %v2175_v52 = vunpack.c.l.b16 %v1777_v32 }
 0x475   :  { %v3510_v50 = vpop.eup %3509 }
 0x476   :  { %v2210_v2 = vpack.c.b16 %v2209_v6, %v2208_v10  ;;  %v1746_v39 = vmul.f32 %v3510_v50, %v4349_v1  ;;  %v1681_v56 = vpop.xlane.xlu2 %1680  ;;  %v2093_v1 = vpack.c.b16 %v2092_v53, %v2091_v20 }
 0x477   :  { %3511 = vrcp.f32 %v1681_v56 }
 0x478   :  { %2222 = vmatpush.bf16.msrb.mxu1 %v2210_v2  ;;  %v3369_v5 = vpop.permute.xlu1 %3368  ;;  %3070 = vmatmul.msk.bf16.vlgmr.msrb.gmra.mxu3 %vm925_vm12, %v2295_v51  ;;  %v1916_v57 = vpop.f32.mrf.mxu2  ;;  %v1778_v27 = vpack.c.bf16 %v1746_v39, %v1746_v39 }
 0x479   :  { %v3371_v54 = vunpack.i.h.bf16 %v3369_v5  ;;  %v3370_v41 = vunpack.i.l.bf16 %v3369_v5  ;;  %v2237_v36 = vpack.c.bf16 %v1916_v57, %v1916_v57 }
 0x47a   :  { %v2176_v22 = vunpack.c.l.b16 %v1778_v27 }
 0x47b   :  { %v912_v7 = vpack.c.bf16 %v3371_v54, %v3371_v54  ;;  %v911_v23 = vpack.c.bf16 %v3370_v41, %v3370_v41  ;;  %v2358_v42 = vunpack.c.l.b16 %v2237_v36 }
 0x47c   :  { %v2177_v4 = vpack.c.b16 %v2176_v22, %v2175_v52 }
 0x47d   :  { %v2181_v33 = vunpack.c.l.b16 %v912_v7  ;;  %v2180_v60 = vunpack.c.l.b16 %v911_v23  ;;  %v3512_v55 = vpop.eup %3511 }
 0x47e   :  { %v1684_v12 = vpop.xlane.xlu2 %1683  ;;  %3055 = vmatmul.msk.bf16.vlgmr.msra.gmra.mxu1 %vm1396_vm13, %v2093_v1  ;;  %v1747_v3 = vmul.f32 %v3512_v55, %v4362_v43 }
 0x47f   :  { %v2182_v46 = vpack.c.b16 %v2181_v33, %v2180_v60  ;;  %3513 = vrcp.f32 %v1684_v12  ;;  %2546 = vmatpush.bf16.msra.mxu1 %v3171_v18 }
 0x480   :  { %v1918_v37 = vpop.f32.mrf.mxu2  ;;  %v1779_v63 = vpack.c.bf16 %v1747_v3, %v1747_v3 }
 0x481   :  { %2194 = vmatpush.bf16.msra.mxu0 %v2182_v46  ;;  %v2238_v15 = vpack.c.bf16 %v1918_v37, %v1918_v37 }
 0x482   :  { %v2203_v19 = vunpack.c.l.b16 %v1779_v63 }
 0x483   :  { %2547 = vmatpush.bf16.msra.mxu1 %v3170_v49  ;;  %v2359_v29 = vunpack.c.l.b16 %v2238_v15 }
 0x484   :  { %3058 = vmatmul.msk.bf16.vlgmr.msra.gmra.mxu0 %vm1396_vm13, %v2177_v4 }
 0x485   :  { %2473 = vmatpush.bf16.msrb.mxu0 %v3169_v61  ;;  %v3514_v58 = vpop.eup %3513  ;;  %v2366_v9 = vpack.c.b16 %v2359_v29, %v2358_v42 }
 0x486   :  { %v1748_v59 = vmul.f32 %v3514_v58, %v4372_v26 }
 0x488   :  { %v1780_v11 = vpack.c.bf16 %v1748_v59, %v1748_v59  ;;  %3071 = vmatmul.msk.bf16.gmra.mxu3 %vm925_vm12, %v2296_v44  ;;  %v2028_v8 = vpop.f32.mrf.mxu2 }
 0x489   :  { %2474 = vmatpush.bf16.msrb.mxu0 %v3168_v14  ;;  %v2245_v35 = vpack.c.bf16 %v2028_v8, %v2028_v8  ;;  %v1944_v40 = vpop.f32.mrf.mxu3 }
 0x48a   :  { %v2204_v43 = vunpack.c.l.b16 %v1780_v11  ;;  %v2239_v16 = vpack.c.bf16 %v1944_v40, %v1944_v40 }
 0x48b   :  { %v2431_v26 = vunpack.c.l.b16 %v2245_v35 }
 0x48c   :  { %v2205_v25 = vpack.c.b16 %v2204_v43, %v2203_v19  ;;  %v2360_v51 = vunpack.c.l.b16 %v2239_v16 }
 0x48e   :  { %3059 = vmatmul.msk.bf16.vlgmr.msrb.gmra.mxu1 %vm1396_vm13, %v2205_v25 }
 0x490   :  { %v2030_v45 = vpop.f32.mrf.mxu2 }
 0x491   :  { %v2246_v28 = vpack.c.bf16 %v2030_v45, %v2030_v45  ;;  %v1946_v10 = vpop.f32.mrf.mxu3 }
 0x492   :  { %v2240_v17 = vpack.c.bf16 %v1946_v10, %v1946_v10 }
 0x493   :  { %v2432_v0 = vunpack.c.l.b16 %v2246_v28 }
 0x494   :  { %v2361_v2 = vunpack.c.l.b16 %v2240_v17 }
 0x495   :  { %v2439_v24 = vpack.c.b16 %v2432_v0, %v2431_v26 }
 0x496   :  { %v2367_v56 = vpack.c.b16 %v2361_v2, %v2360_v51 }
 0x497   :  { %3092 = vmatmul.msk.bf16.vlgmr.msrb.gmra.mxu0 %vm925_vm12, %v2439_v24 }
 0x498   :  { %3080 = vmatmul.msk.bf16.vlgmr.msra.gmra.mxu3 %vm925_vm12, %v2366_v9  ;;  %v2140_v6 = vpop.f32.mrf.mxu2 }
 0x499   :  { %v2253_v13 = vpack.c.bf16 %v2140_v6, %v2140_v6 }
 0x49b   :  { %v2504_v48 = vunpack.c.l.b16 %v2253_v13 }
 0x4a0   :  { %v2142_v50 = vpop.f32.mrf.mxu2 }
 0x4a1   :  { %v2254_v21 = vpack.c.bf16 %v2142_v50, %v2142_v50 }
 0x4a3   :  { %v2505_v39 = vunpack.c.l.b16 %v2254_v21 }
 0x4a5   :  { %v2512_v34 = vpack.c.b16 %v2505_v39, %v2504_v48 }
 0x4a7   :  { %3104 = vmatmul.msk.bf16.vlgmr.msra.gmra.mxu1 %vm925_vm12, %v2512_v34 }
 0x4a8   :  { %3081 = vmatmul.msk.bf16.gmra.mxu3 %vm925_vm12, %v2367_v56  ;;  %v2330_v48 = vpop.f32.mrf.mxu2 }
 0x4aa   :  { %v1972_v20 = vpop.f32.mrf.mxu0 }
 0x4ab   :  { %v2241_v5 = vpack.c.bf16 %v1972_v20, %v1972_v20 }
 0x4ad   :  { %v2362_v57 = vunpack.c.l.b16 %v2241_v5  ;;  %v4436_v5 = vld [vmem:[%s4569_s6] ss:$0 sm:$0xff] }
 0x4b2   :  { %v1974_v54 = vpop.f32.mrf.mxu0 }
 0x4b3   :  { %v2242_v41 = vpack.c.bf16 %v1974_v54, %v1974_v54 }
 0x4b5   :  { %v2363_v53 = vunpack.c.l.b16 %v2242_v41 }
 0x4b7   :  { %v2368_v27 = vpack.c.b16 %v2363_v53, %v2362_v57  ;;  %v2332_v53 = vpop.f32.mrf.mxu2 }
 0x4b9   :  { %3082 = vmatmul.msk.bf16.gmra.mxu3 %vm925_vm12, %v2368_v27 }
 0x4cf   :  { %v2056_v31 = vpop.f32.mrf.mxu3 }
 0x4d0   :  { %v2247_v7 = vpack.c.bf16 %v2056_v31, %v2056_v31 }
 0x4d2   :  { %v2433_v1 = vunpack.c.l.b16 %v2247_v7  ;;  %v3523_v7 = vld [vmem:[#allocation2] sm:$0xff] }
 0x4d7   :  { %v2058_v23 = vpop.f32.mrf.mxu3 }
 0x4d8   :  { %v2248_v32 = vpack.c.bf16 %v2058_v23, %v2058_v23 }
 0x4da   :  { %v2434_v33 = vunpack.c.l.b16 %v2248_v32 }
 0x4dc   :  { %v2440_v60 = vpack.c.b16 %v2434_v33, %v2433_v1 }
 0x4de   :  { %3093 = vmatmul.msk.bf16.gmra.mxu0 %vm925_vm12, %v2440_v60 }
 0x4e1   :  { %v2084_v38 = vpop.f32.mrf.mxu0 }
 0x4e2   :  { %v2249_v22 = vpack.c.bf16 %v2084_v38, %v2084_v38 }
 0x4e4   :  { %v2435_v55 = vunpack.c.l.b16 %v2249_v22  ;;  %v3524_v22 = vld [vmem:[#allocation2 + $0x8] sm:$0xff] }
 0x4e9   :  { %v2086_v12 = vpop.f32.mrf.mxu0 }
 0x4ea   :  { %v2250_v61 = vpack.c.bf16 %v2086_v12, %v2086_v12 }
 0x4eb   :  { %v2000_v30 = vpop.f32.mrf.mxu1  ;;  %v2168_v52 = vpop.f32.mrf.mxu3 }
 0x4ec   :  { %v2436_v46 = vunpack.c.l.b16 %v2250_v61  ;;  %v2243_v37 = vpack.c.bf16 %v2000_v30, %v2000_v30  ;;  %v2255_v62 = vpack.c.bf16 %v2168_v52, %v2168_v52 }
 0x4ee   :  { %v2441_v18 = vpack.c.b16 %v2436_v46, %v2435_v55  ;;  %v2364_v49 = vunpack.c.l.b16 %v2243_v37  ;;  %v2506_v58 = vunpack.c.l.b16 %v2255_v62  ;;  %v2335_v55 = vpop.f32.mrf.mxu2 }
 0x4f0   :  { %3094 = vmatmul.msk.bf16.gmra.mxu0 %vm925_vm12, %v2441_v18 }
 0x4f3   :  { %v2002_v4 = vpop.f32.mrf.mxu1  ;;  %v2170_v3 = vpop.f32.mrf.mxu3 }
 0x4f4   :  { %v2244_v14 = vpack.c.bf16 %v2002_v4, %v2002_v4  ;;  %v2256_v47 = vpack.c.bf16 %v2170_v3, %v2170_v3 }
 0x4f6   :  { %v2365_v44 = vunpack.c.l.b16 %v2244_v14  ;;  %v2507_v63 = vunpack.c.l.b16 %v2256_v47  ;;  %v2337_v3 = vpop.f32.mrf.mxu2 }
 0x4f8   :  { %v2369_v59 = vpack.c.b16 %v2365_v44, %v2364_v49  ;;  %v2513_v11 = vpack.c.b16 %v2507_v63, %v2506_v58  ;;  %v3525_v49 = vld [vmem:[#allocation2 + $0x10] sm:$0xff] }
 0x4fa   :  { %3083 = vmatmul.msk.bf16.gmra.mxu3 %vm925_vm12, %v2369_v59  ;;  %3105 = vmatmul.msk.bf16.gmra.mxu1 %vm925_vm12, %v2513_v11 }
 0x4fb   :  { %v2112_v8 = vpop.f32.mrf.mxu1  ;;  %v4422_v19 = vpop.f32.mrf.mxu3 }
 0x4fc   :  { %v2251_v25 = vpack.c.bf16 %v2112_v8, %v2112_v8 }
 0x4fe   :  { %v2437_v40 = vunpack.c.l.b16 %v2251_v25 }
 0x501   :  { %v2196_v43 = vpop.f32.mrf.mxu0 }
 0x502   :  { %v2257_v29 = vpack.c.bf16 %v2196_v43, %v2196_v43  ;;  %v3526_v43 = vld [vmem:[#allocation2 + $0x18] sm:$0xff] }
 0x503   :  { %v2114_v15 = vpop.f32.mrf.mxu1  ;;  %v4424_v36 = vpop.f32.mrf.mxu3 }
 0x504   :  { %v2252_v35 = vpack.c.bf16 %v2114_v15, %v2114_v15  ;;  %v2508_v24 = vunpack.c.l.b16 %v2257_v29 }
 0x506   :  { %v2438_v45 = vunpack.c.l.b16 %v2252_v35 }
 0x508   :  { %v2442_v28 = vpack.c.b16 %v2438_v45, %v2437_v40 }
 0x509   :  { %v2198_v42 = vpop.f32.mrf.mxu0 }
 0x50a   :  { %v2258_v26 = vpack.c.bf16 %v2198_v42, %v2198_v42  ;;  %3095 = vmatmul.msk.bf16.gmra.mxu0 %vm925_vm12, %v2442_v28 }
 0x50b   :  { %v2224_v0 = vpop.f32.mrf.mxu1  ;;  %v4427_v9 = vpop.f32.mrf.mxu3 }
 0x50c   :  { %v2509_v6 = vunpack.c.l.b16 %v2258_v26  ;;  %v2259_v50 = vpack.c.bf16 %v2224_v0, %v2224_v0 }
 0x50e   :  { %v2514_v10 = vpack.c.b16 %v2509_v6, %v2508_v24  ;;  %v2510_v51 = vunpack.c.l.b16 %v2259_v50  ;;  %v3527_v24 = vld [vmem:[#allocation2 + $0x20] sm:$0xff] }
 0x510   :  { %3106 = vmatmul.msk.bf16.gmra.mxu1 %vm925_vm12, %v2514_v10 }
 0x513   :  { %v2226_v17 = vpop.f32.mrf.mxu1  ;;  %v4430_v16 = vpop.f32.mrf.mxu3 }
 0x514   :  { %v2260_v13 = vpack.c.bf16 %v2226_v17, %v2226_v17  ;;  %v2476_v34 = vpop.f32.mrf.mxu0 }
 0x516   :  { %v2511_v2 = vunpack.c.l.b16 %v2260_v13 }
 0x518   :  { %v2515_v39 = vpack.c.b16 %v2511_v2, %v2510_v51  ;;  %v3528_v51 = vld [vmem:[#allocation2 + $0x28] sm:$0xff] }
 0x51b   :  { %v2403_v21 = vpop.f32.mrf.mxu3 }
 0x51c   :  { %v2569_v56 = vadd.f32 %v2403_v21, %v2330_v48  ;;  %v2478_v32 = vpop.f32.mrf.mxu0 }
 0x51e   :  { %v2570_v20 = vadd.f32 %v2569_v56, %v2476_v34 }
 0x520   :  { %3107 = vmatmul.msk.bf16.gmra.mxu1 %vm925_vm12, %v2515_v39 }
 0x523   :  { %v2405_v54 = vpop.f32.mrf.mxu3 }
 0x524   :  { %v2549_v41 = vpop.f32.mrf.mxu1  ;;  %v2572_v27 = vadd.f32 %v2405_v54, %v2332_v53 }
 0x525   :  { %v2571_v57 = vadd.f32 %v2570_v20, %v2549_v41 }
 0x526   :  { %v2573_v1 = vadd.f32 %v2572_v27, %v2478_v32 }
 0x527   :  { %v2597_v31 = vadd.f32 %v4436_v5, %v2571_v57  ;;  %v3529_v57 = vld [vmem:[#allocation2 + $0x30] sm:$0xff] }
 0x529   :  { %v4439_v23 = vadd.f32 %v3523_v7, %v2597_v31 }
 0x52b   :  { %2613 = vadd.xlane.f32.xlu2 %v4439_v23  ;;  %v2408_v61 = vpop.f32.mrf.mxu3 }
 0x52c   :  { %v2551_v33 = vpop.f32.mrf.mxu1  ;;  %v2575_v30 = vadd.f32 %v2408_v61, %v2335_v55 }
 0x52d   :  { %v2574_v60 = vadd.f32 %v2573_v1, %v2551_v33 }
 0x52f   :  { %v2598_v38 = vadd.f32 %v4436_v5, %v2574_v60 }
 0x531   :  { %v4443_v12 = vadd.f32 %v3524_v22, %v2598_v38  ;;  %v3530_v38 = vld [vmem:[#allocation2 + $0x38] sm:$0xff] }
 0x533   :  { %2615 = vadd.xlane.f32.xlu0 %v4443_v12  ;;  %v2410_v62 = vpop.f32.mrf.mxu3 }
 0x534   :  { %v2578_v47 = vadd.f32 %v2410_v62, %v2337_v3 }
 0x53c   :  { %v2413_v8 = vpop.f32.mrf.mxu3 }
 0x53d   :  { %v2581_v35 = vadd.f32 %v2413_v8, %v4422_v19 }
 0x544   :  { %v2415_v45 = vpop.f32.mrf.mxu3 }
 0x545   :  { %v2584_v0 = vadd.f32 %v2415_v45, %v4424_v36 }
 0x55b   :  { %v2481_v46 = vpop.f32.mrf.mxu0 }
 0x55c   :  { %v2576_v52 = vadd.f32 %v2575_v30, %v2481_v46 }
 0x563   :  { %v2483_v14 = vpop.f32.mrf.mxu0 }
 0x564   :  { %v2579_v44 = vadd.f32 %v2578_v47, %v2483_v14 }
 0x56d   :  { %v2486_v15 = vpop.f32.mrf.mxu0 }
 0x56e   :  { %v2582_v40 = vadd.f32 %v2581_v35, %v2486_v15 }
 0x575   :  { %v2488_v42 = vpop.f32.mrf.mxu0 }
 0x576   :  { %v2585_v10 = vadd.f32 %v2584_v0, %v2488_v42 }
 0x577   :  { %v2554_v18 = vpop.f32.mrf.mxu1 }
 0x578   :  { %v2577_v37 = vadd.f32 %v2576_v52, %v2554_v18 }
 0x57a   :  { %v2599_v4 = vadd.f32 %v4436_v5, %v2577_v37 }
 0x57c   :  { %v4447_v58 = vadd.f32 %v3525_v49, %v2599_v4 }
 0x57d   :  { %v2418_v17 = vpop.f32.mrf.mxu3 }
 0x57e   :  { %2617 = vadd.xlane.f32.xlu2 %v4447_v58  ;;  %v2587_v21 = vadd.f32 %v2418_v17, %v4427_v9 }
 0x57f   :  { %v2556_v63 = vpop.f32.mrf.mxu1 }
 0x580   :  { %v2580_v59 = vadd.f32 %v2579_v44, %v2556_v63 }
 0x582   :  { %v2600_v11 = vadd.f32 %v4436_v5, %v2580_v59 }
 0x584   :  { %v4451_v25 = vadd.f32 %v3526_v43, %v2600_v11 }
 0x585   :  { %v2420_v34 = vpop.f32.mrf.mxu3 }
 0x586   :  { %2619 = vadd.xlane.f32.xlu1 %v4451_v25  ;;  %v2590_v41 = vadd.f32 %v2420_v34, %v4430_v16 }
 0x587   :  { %v2491_v2 = vpop.f32.mrf.mxu0 }
 0x588   :  { %v2588_v39 = vadd.f32 %v2587_v21, %v2491_v2 }
 0x58d   :  { %v2559_v29 = vpop.f32.mrf.mxu1 }
 0x58e   :  { %v2583_v28 = vadd.f32 %v2582_v40, %v2559_v29 }
 0x58f   :  { %v2493_v54 = vpop.f32.mrf.mxu0 }
 0x590   :  { %v2601_v26 = vadd.f32 %v4436_v5, %v2583_v28  ;;  %v2591_v27 = vadd.f32 %v2590_v41, %v2493_v54  ;;  %v3177_v41 = vld [vmem:[#allocation11 + $0x28] sm:$0xff] }
 0x592   :  { %v4457_v6 = vadd.f32 %v3527_v24, %v2601_v26 }
 0x594   :  { %2621 = vadd.xlane.f32.xlu2 %v4457_v6 }
 0x595   :  { %v2561_v13 = vpop.f32.mrf.mxu1 }
 0x596   :  { %v2586_v50 = vadd.f32 %v2585_v10, %v2561_v13 }
 0x598   :  { %v2602_v19 = vadd.f32 %v4436_v5, %v2586_v50  ;;  %v3179_v50 = vld [vmem:[#allocation11 + $0x38] sm:$0xff] }
 0x599   :  { %2865 = vmatpush.bf16.msra.mxu2 %v3179_v50  ;;  %v4525_v50 = vld [vmem:[#allocation7 + $0x8] sm:$0xff] }
 0x59a   :  { %v4462_v48 = vadd.f32 %v3528_v51, %v2602_v19 }
 0x59c   :  { %2623 = vadd.xlane.f32.xlu2 %v4462_v48 }
 0x59d   :  { %v2564_v36 = vpop.f32.mrf.mxu1 }
 0x59e   :  { %v2589_v56 = vadd.f32 %v2588_v39, %v2564_v36  ;;  %v2614_v7 = vpop.xlane.xlu2 %2613  ;;  %v3178_v36 = vld [vmem:[#allocation11 + $0x30] sm:$0xff] }
 0x59f   :  { %2866 = vmatpush.bf16.msra.mxu2 %v3178_v36 }
 0x5a0   :  { %v2603_v20 = vadd.f32 %v4436_v5, %v2589_v56 }
 0x5a2   :  { %v4467_v53 = vadd.f32 %v3529_v57, %v2603_v20 }
 0x5a3   :  { %2867 = vmatpush.bf16.msra.mxu2 %v3177_v41 }
 0x5a4   :  { %2625 = vadd.xlane.f32.xlu2 %v4467_v53 }
 0x5a5   :  { %v2566_v9 = vpop.f32.mrf.mxu1 }
 0x5a6   :  { %v2592_v31 = vadd.f32 %v2591_v27, %v2566_v9  ;;  %v2616_v32 = vpop.xlane.xlu0 %2615  ;;  %v3176_v9 = vld [vmem:[#allocation11 + $0x20] sm:$0xff] }
 0x5a7   :  { %v2629_v33 = vadd.f32 %v2616_v32, %v2614_v7  ;;  %2868 = vmatpush.bf16.msra.mxu2 %v3176_v9  ;;  %v3175_v32 = vld [vmem:[#allocation11 + $0x18] sm:$0xff] }
 0x5a8   :  { %v2604_v1 = vadd.f32 %v4436_v5, %v2592_v31 }
 0x5a9   :  { %v2630_v60 = vrot.slane %v2629_v33, 4 }
 0x5aa   :  { %v4471_v22 = vadd.f32 %v3530_v38, %v2604_v1 }
 0x5ab   :  { %v2631_v61 = vadd.f32 %v2630_v60, %v2629_v33  ;;  %2869 = vmatpush.bf16.msra.mxu2 %v3175_v32 }
 0x5ac   :  { %2627 = vadd.xlane.f32.xlu2 %v4471_v22 }
 0x5ad   :  { %v2632_v16 = vrot.slane %v2631_v61, 2 }
 0x5af   :  { %v2633_v55 = vadd.f32 %v2632_v16, %v2631_v61 }
 0x5b1   :  { %v2634_v46 = vrot.slane %v2633_v55, 1 }
 0x5b3   :  { %v2635_v30 = vadd.f32 %v2634_v46, %v2633_v55  ;;  %v3174_v55 = vld [vmem:[#allocation11 + $0x10] sm:$0xff] }
 0x5b4   :  { %2870 = vmatpush.bf16.msra.mxu2 %v3174_v55 }
 0x5b5   :  { %v2657_v52 = vmul.f32 0.00048828125, %v2635_v30 }
 0x5b7   :  { %v4475_v18 = vsub.f32 %v4443_v12, %v2657_v52  ;;  %v4478_v37 = vsub.f32 %v4439_v23, %v2657_v52 }
 0x5b9   :  { %v2670_v5 = vmul.f32 %v4475_v18, %v4475_v18  ;;  %v2669_v62 = vmul.f32 %v4478_v37, %v4478_v37 }
 0x5bb   :  { %2679 = vadd.xlane.f32.xlu0 %v2670_v5  ;;  %2677 = vadd.xlane.f32.xlu2 %v2669_v62  ;;  %v3173_v62 = vld [vmem:[#allocation11 + $0x8] sm:$0xff] }
 0x5bc   :  { %2871 = vmatpush.bf16.msra.mxu2 %v3173_v62 }
 0x5f1   :  { %v2618_v4 = vpop.xlane.xlu2 %2617 }
 0x5f9   :  { %v2620_v3 = vpop.xlane.xlu1 %2619 }
 0x5fa   :  { %v2636_v14 = vadd.f32 %v2620_v3, %v2618_v4  ;;  %v3172_v3 = vld [vmem:[#allocation11] sm:$0xff] }
 0x5fb   :  { %2872 = vmatpush.bf16.msra.mxu2 %v3172_v3 }
 0x5fc   :  { %v2637_v47 = vrot.slane %v2636_v14, 4 }
 0x5fe   :  { %v2638_v49 = vadd.f32 %v2637_v47, %v2636_v14 }
 0x600   :  { %v2639_v44 = vrot.slane %v2638_v49, 2 }
 0x602   :  { %v2640_v63 = vadd.f32 %v2639_v44, %v2638_v49 }
 0x604   :  { %v2641_v59 = vrot.slane %v2640_v63, 1 }
 0x606   :  { %v2642_v11 = vadd.f32 %v2641_v59, %v2640_v63 }
 0x607   :  { %v2622_v8 = vpop.xlane.xlu2 %2621 }
 0x608   :  { %v2658_v43 = vmul.f32 0.00048828125, %v2642_v11 }
 0x60a   :  { %v4485_v15 = vsub.f32 %v4447_v58, %v2658_v43  ;;  %v4488_v35 = vsub.f32 %v4451_v25, %v2658_v43 }
 0x60c   :  { %v2671_v40 = vmul.f32 %v4485_v15, %v4485_v15  ;;  %v2672_v45 = vmul.f32 %v4488_v35, %v4488_v35 }
 0x60e   :  { %2681 = vadd.xlane.f32.xlu1 %v2671_v40  ;;  %2683 = vadd.xlane.f32.xlu2 %v2672_v45 }
 0x60f   :  { %v2624_v29 = vpop.xlane.xlu2 %2623 }
 0x610   :  { %v2643_v28 = vadd.f32 %v2624_v29, %v2622_v8 }
 0x612   :  { %v2644_v42 = vrot.slane %v2643_v28, 4 }
 0x614   :  { %v2645_v26 = vadd.f32 %v2644_v42, %v2643_v28 }
 0x616   :  { %v2646_v0 = vrot.slane %v2645_v26, 2 }
 0x617   :  { %v2626_v24 = vpop.xlane.xlu2 %2625 }
 0x618   :  { %v2647_v10 = vadd.f32 %v2646_v0, %v2645_v26  ;;  %v4516_v26 = vld [vmem:[#allocation5] sm:$0xff] }
 0x61a   :  { %v2648_v17 = vrot.slane %v2647_v10, 1 }
 0x61c   :  { %v2649_v13 = vadd.f32 %v2648_v17, %v2647_v10  ;;  %v4522_v17 = vld [vmem:[#allocation7] sm:$0xff] }
 0x61e   :  { %v2659_v2 = vmul.f32 0.00048828125, %v2649_v13 }
 0x61f   :  { %v2628_v19 = vpop.xlane.xlu2 %2627 }
 0x620   :  { %v2650_v21 = vadd.f32 %v2628_v19, %v2626_v24  ;;  %v4495_v51 = vsub.f32 %v4462_v48, %v2659_v2  ;;  %v4498_v39 = vsub.f32 %v4457_v6, %v2659_v2  ;;  %v4519_v24 = vld [vmem:[#allocation5 + $0x8] sm:$0xff] }
 0x622   :  { %v2651_v56 = vrot.slane %v2650_v21, 4  ;;  %v2674_v34 = vmul.f32 %v4495_v51, %v4495_v51  ;;  %v2673_v20 = vmul.f32 %v4498_v39, %v4498_v39 }
 0x624   :  { %v2652_v54 = vadd.f32 %v2651_v56, %v2650_v21  ;;  %2687 = vadd.xlane.f32.xlu1 %v2674_v34  ;;  %2685 = vadd.xlane.f32.xlu0 %v2673_v20 }
 0x626   :  { %v2653_v57 = vrot.slane %v2652_v54, 2 }
 0x628   :  { %v2654_v27 = vadd.f32 %v2653_v57, %v2652_v54 }
 0x62a   :  { %v2655_v31 = vrot.slane %v2654_v27, 1 }
 0x62c   :  { %v2656_v7 = vadd.f32 %v2655_v31, %v2654_v27 }
 0x62e   :  { %v2660_v1 = vmul.f32 0.00048828125, %v2656_v7  ;;  %v2680_v33 = vpop.xlane.xlu0 %2679  ;;  %v2678_v60 = vpop.xlane.xlu2 %2677 }
 0x62f   :  { %v2693_v38 = vadd.f32 %v2680_v33, %v2678_v60 }
 0x630   :  { %v4505_v61 = vsub.f32 %v4471_v22, %v2660_v1  ;;  %v4508_v16 = vsub.f32 %v4467_v53, %v2660_v1 }
 0x631   :  { %v2694_v46 = vrot.slane %v2693_v38, 4 }
 0x632   :  { %v2676_v30 = vmul.f32 %v4505_v61, %v4505_v61  ;;  %v2675_v52 = vmul.f32 %v4508_v16, %v4508_v16 }
 0x633   :  { %v2695_v5 = vadd.f32 %v2694_v46, %v2693_v38 }
 0x634   :  { %2691 = vadd.xlane.f32.xlu0 %v2676_v30  ;;  %2689 = vadd.xlane.f32.xlu2 %v2675_v52 }
 0x635   :  { %v2696_v4 = vrot.slane %v2695_v5, 2 }
 0x637   :  { %v2697_v14 = vadd.f32 %v2696_v4, %v2695_v5 }
 0x639   :  { %v2698_v47 = vrot.slane %v2697_v14, 1 }
 0x63b   :  { %v2699_v49 = vadd.f32 %v2698_v47, %v2697_v14 }
 0x63d   :  { %v2721_v44 = vmul.f32 0.00048828125, %v2699_v49 }
 0x63f   :  { %v2725_v63 = vadd.f32 1e-05, %v2721_v44 }
 0x641   :  { %3515 = vrsqrt.f32 %v2725_v63  ;;  %vm2735_vm15 = vweird.f32 %v2725_v63 }
 0x647   :  { %v3516_v59 = vpop.eup %3515 }
 0x648   :  { %v2730_v11 = vmul.f32 %v3516_v59, %v2725_v63  ;;  %vm2736_vm14 = vweird.f32 %v3516_v59 }
 0x649   :  { %vm2737_vm0 = vmor %vm2735_vm15, %vm2736_vm14 }
 0x64a   :  { %v2731_v8 = vmul.f32 %v3516_v59, %v2730_v11 }
 0x64c   :  { %v2732_v43 = vmul.f32 0.5, %v2731_v8 }
 0x64e   :  { %v2733_v40 = vsub.f32 1.5, %v2732_v43 }
 0x650   :  { %v2734_v45 = vmul.f32 %v3516_v59, %v2733_v40 }
 0x652   :  { %v2738_v29 = vsel %vm2737_vm0, %v3516_v59, %v2734_v45 }
 0x653   :  { %v2769_v28 = vmul.f32 %v2738_v29, %v4478_v37  ;;  %v2770_v42 = vmul.f32 %v2738_v29, %v4475_v18 }
 0x655   :  { %v2777_v0 = vmul.f32 %v4516_v26, %v2769_v28  ;;  %v2778_v10 = vmul.f32 %v4519_v24, %v2770_v42 }
 0x657   :  { %v2785_v13 = vadd.f32 %v4522_v17, %v2777_v0  ;;  %v2786_v2 = vadd.f32 %v4525_v50, %v2778_v10 }
 0x659   :  { %v2793_v19 = vpack.c.bf16 %v2786_v2, %v2785_v13 }
 0x65b   :  { %2873 = vmatmul.bf16.vlgmr.msra.gmra.mxu2 %v2793_v19 }
 0x681   :  { %v2682_v37 = vpop.xlane.xlu1 %2681  ;;  %v2684_v18 = vpop.xlane.xlu2 %2683 }
 0x682   :  { %v2700_v21 = vadd.f32 %v2684_v18, %v2682_v37 }
 0x684   :  { %v2701_v36 = vrot.slane %v2700_v21, 4 }
 0x686   :  { %v2702_v56 = vadd.f32 %v2701_v36, %v2700_v21 }
 0x688   :  { %v2703_v34 = vrot.slane %v2702_v56, 2 }
 0x68a   :  { %v2704_v20 = vadd.f32 %v2703_v34, %v2702_v56 }
 0x68c   :  { %v2705_v54 = vrot.slane %v2704_v20, 1 }
 0x68e   :  { %v2706_v41 = vadd.f32 %v2705_v54, %v2704_v20 }
 0x690   :  { %v2722_v57 = vmul.f32 0.00048828125, %v2706_v41 }
 0x692   :  { %v2726_v27 = vadd.f32 1e-05, %v2722_v57 }
 0x694   :  { %3517 = vrsqrt.f32 %v2726_v27  ;;  %vm2745_vm2 = vweird.f32 %v2726_v27 }
 0x697   :  { %v2688_v9 = vpop.xlane.xlu1 %2687  ;;  %v2686_v31 = vpop.xlane.xlu0 %2685 }
 0x698   :  { %v2707_v7 = vadd.f32 %v2688_v9, %v2686_v31 }
 0x69a   :  { %v3518_v32 = vpop.eup %3517  ;;  %v2708_v1 = vrot.slane %v2707_v7, 4 }
 0x69b   :  { %v2740_v33 = vmul.f32 %v3518_v32, %v2726_v27  ;;  %vm2746_vm1 = vweird.f32 %v3518_v32 }
 0x69c   :  { %v2709_v60 = vadd.f32 %v2708_v1, %v2707_v7  ;;  %vm2747_vm3 = vmor %vm2745_vm2, %vm2746_vm1 }
 0x69d   :  { %v2741_v38 = vmul.f32 %v3518_v32, %v2740_v33 }
 0x69e   :  { %v2710_v55 = vrot.slane %v2709_v60, 2 }
 0x69f   :  { %v2742_v46 = vmul.f32 0.5, %v2741_v38 }
 0x6a0   :  { %v2711_v30 = vadd.f32 %v2710_v55, %v2709_v60 }
 0x6a1   :  { %v2743_v52 = vsub.f32 1.5, %v2742_v46 }
 0x6a2   :  { %v2712_v5 = vrot.slane %v2711_v30, 1 }
 0x6a3   :  { %v2744_v62 = vmul.f32 %v3518_v32, %v2743_v52 }
 0x6a4   :  { %v2713_v4 = vadd.f32 %v2712_v5, %v2711_v30 }
 0x6a5   :  { %v2748_v3 = vsel %vm2747_vm3, %v3518_v32, %v2744_v62 }
 0x6a6   :  { %v2723_v14 = vmul.f32 0.00048828125, %v2713_v4  ;;  %v2771_v47 = vmul.f32 %v2748_v3, %v4485_v15  ;;  %v2772_v49 = vmul.f32 %v2748_v3, %v4488_v35  ;;  %v3378_v4 = vld [vmem:[%s4571_s8] ss:$0 sm:$0xff]  ;;  %s3727_s8 = smov [#allocation13]  }
 0x6a7   :  { %v2692_v44 = vpop.xlane.xlu0 %2691  ;;  %v2690_v63 = vpop.xlane.xlu2 %2689  ;;  %s2914_s25 = sshll.u32 %s3727_s8, 4  ;;  %s2915_s25 = int_to_ptr.vmem [resolvable:$true] %s2914_s25 }
 0x6a8   :  { %v2727_v59 = vadd.f32 1e-05, %v2723_v14  ;;  %v2714_v11 = vadd.f32 %v2692_v44, %v2690_v63  ;;  %v2779_v8 = vmul.f32 %v4516_v26, %v2771_v47  ;;  %v2780_v43 = vmul.f32 %v4519_v24, %v2772_v49 }
 0x6aa   :  { %3519 = vrsqrt.f32 %v2727_v59  ;;  %v2715_v40 = vrot.slane %v2714_v11, 4  ;;  %v2787_v45 = vadd.f32 %v4522_v17, %v2779_v8  ;;  %v2788_v29 = vadd.f32 %v4525_v50, %v2780_v43 }
 0x6ab   :  { %vm2755_vm5 = vweird.f32 %v2727_v59 }
 0x6ac   :  { %v2716_v28 = vadd.f32 %v2715_v40, %v2714_v11  ;;  %v2794_v42 = vpack.c.bf16 %v2788_v29, %v2787_v45 }
 0x6ae   :  { %v2717_v0 = vrot.slane %v2716_v28, 2  ;;  %2878 = vmatmul.bf16.gmra.mxu2 %v2794_v42 }
 0x6b0   :  { %v3520_v15 = vpop.eup %3519  ;;  %v2718_v35 = vadd.f32 %v2717_v0, %v2716_v28 }
 0x6b1   :  { %v2750_v10 = vmul.f32 %v3520_v15, %v2727_v59  ;;  %vm2756_vm4 = vweird.f32 %v3520_v15 }
 0x6b2   :  { %v2719_v13 = vrot.slane %v2718_v35, 1  ;;  %vm2757_vm6 = vmor %vm2755_vm5, %vm2756_vm4 }
 0x6b3   :  { %v2751_v2 = vmul.f32 %v3520_v15, %v2750_v10 }
 0x6b4   :  { %v2720_v19 = vadd.f32 %v2719_v13, %v2718_v35 }
 0x6b5   :  { %v2752_v37 = vmul.f32 0.5, %v2751_v2 }
 0x6b6   :  { %v2724_v18 = vmul.f32 0.00048828125, %v2720_v19 }
 0x6b7   :  { %v2753_v21 = vsub.f32 1.5, %v2752_v37 }
 0x6b8   :  { %v2728_v36 = vadd.f32 1e-05, %v2724_v18 }
 0x6b9   :  { %v2754_v56 = vmul.f32 %v3520_v15, %v2753_v21 }
 0x6ba   :  { %3521 = vrsqrt.f32 %v2728_v36  ;;  %vm2765_vm8 = vweird.f32 %v2728_v36 }
 0x6bb   :  { %v2758_v34 = vsel %vm2757_vm6, %v3520_v15, %v2754_v56 }
 0x6bc   :  { %v2773_v20 = vmul.f32 %v2758_v34, %v4498_v39  ;;  %v2774_v54 = vmul.f32 %v2758_v34, %v4495_v51 }
 0x6be   :  { %v2781_v41 = vmul.f32 %v4516_v26, %v2773_v20  ;;  %v2782_v57 = vmul.f32 %v4519_v24, %v2774_v54 }
 0x6c0   :  { %v3522_v27 = vpop.eup %3521  ;;  %v2789_v9 = vadd.f32 %v4522_v17, %v2781_v41  ;;  %v2790_v31 = vadd.f32 %v4525_v50, %v2782_v57 }
 0x6c1   :  { %v2760_v7 = vmul.f32 %v3522_v27, %v2728_v36  ;;  %vm2766_vm7 = vweird.f32 %v3522_v27 }
 0x6c2   :  { %v2795_v32 = vpack.c.bf16 %v2790_v31, %v2789_v9  ;;  %vm2767_vm9 = vmor %vm2765_vm8, %vm2766_vm7 }
 0x6c3   :  { %v2761_v1 = vmul.f32 %v3522_v27, %v2760_v7 }
 0x6c4   :  { %2883 = vmatmul.bf16.gmra.mxu2 %v2795_v32 }
 0x6c5   :  { %v2762_v33 = vmul.f32 0.5, %v2761_v1 }
 0x6c7   :  { %v2763_v60 = vsub.f32 1.5, %v2762_v33 }
 0x6c9   :  { %v2764_v39 = vmul.f32 %v3522_v27, %v2763_v60 }
 0x6cb   :  { %v2768_v51 = vsel %vm2767_vm9, %v3522_v27, %v2764_v39 }
 0x6cc   :  { %v2775_v38 = vmul.f32 %v2768_v51, %v4508_v16  ;;  %v2776_v55 = vmul.f32 %v2768_v51, %v4505_v61 }
 0x6ce   :  { %v2783_v46 = vmul.f32 %v4516_v26, %v2775_v38  ;;  %v2784_v30 = vmul.f32 %v4519_v24, %v2776_v55 }
 0x6d0   :  { %v2791_v52 = vadd.f32 %v4522_v17, %v2783_v46  ;;  %v2792_v5 = vadd.f32 %v4525_v50, %v2784_v30 }
 0x6d2   :  { %v2796_v62 = vpack.c.bf16 %v2792_v5, %v2791_v52 }
 0x6d4   :  { %2888 = vmatmul.bf16.gmra.mxu2 %v2796_v62 }
 0x6de   :  { %v2874_v3 = vpop.f32.mrf.mxu2 }
 0x6df   :  { %v2875_v14 = vadd.f32 %v3378_v4, %v2874_v3 }
 0x6e1   :  { %v2894_v16 = vadd.f32 %v2875_v14, %v4439_v23 }
 0x6e3   :  { %2902 = vst [vmem:[#allocation13] sm:$0xff] %v2894_v16 }
 0x6e6   :  { %v2876_v61 = vpop.f32.mrf.mxu2 }
 0x6e7   :  { %v2877_v47 = vadd.f32 %v3378_v4, %v2876_v61 }
 0x6e9   :  { %v2895_v26 = vadd.f32 %v2877_v47, %v4443_v12 }
 0x6eb   :  { %2903 = vst [vmem:[#allocation13 + $0x8] sm:$0xff] %v2895_v26 }
 0x731   :  { %v2879_v24 = vpop.f32.mrf.mxu2 }
 0x732   :  { %v2880_v17 = vadd.f32 %v3378_v4, %v2879_v24 }
 0x734   :  { %v2896_v50 = vadd.f32 %v2880_v17, %v4447_v58 }
 0x736   :  { %2904 = vst [vmem:[#allocation13 + $0x10] sm:$0xff] %v2896_v50 }
 0x739   :  { %v2881_v49 = vpop.f32.mrf.mxu2 }
 0x73a   :  { %v2882_v44 = vadd.f32 %v3378_v4, %v2881_v49 }
 0x73c   :  { %v2897_v63 = vadd.f32 %v2882_v44, %v4451_v25 }
 0x73e   :  { %2905 = vst [vmem:[#allocation13 + $0x18] sm:$0xff] %v2897_v63 }
 0x747   :  { %v2884_v59 = vpop.f32.mrf.mxu2 }
 0x748   :  { %v2885_v11 = vadd.f32 %v3378_v4, %v2884_v59 }
 0x74a   :  { %v2898_v23 = vadd.f32 %v2885_v11, %v4457_v6 }
 0x74c   :  { %2906 = vst [vmem:[#allocation13 + $0x20] sm:$0xff] %v2898_v23 }
 0x74f   :  { %v2886_v8 = vpop.f32.mrf.mxu2 }
 0x750   :  { %v2887_v43 = vadd.f32 %v3378_v4, %v2886_v8 }
 0x752   :  { %v2899_v12 = vadd.f32 %v2887_v43, %v4462_v48 }
 0x754   :  { %2907 = vst [vmem:[#allocation13 + $0x28] sm:$0xff] %v2899_v12 }
 0x757   :  { %v2889_v40 = vpop.f32.mrf.mxu2 }
 0x758   :  { %v2890_v45 = vadd.f32 %v3378_v4, %v2889_v40 }
 0x75a   :  { %v2900_v58 = vadd.f32 %v2890_v45, %v4467_v53 }
 0x75c   :  { %2908 = vst [vmem:[#allocation13 + $0x30] sm:$0xff] %v2900_v58 }
 0x75f   :  { %v2891_v29 = vpop.f32.mrf.mxu2 }
 0x760   :  { %v2892_v25 = vadd.f32 %v3378_v4, %v2891_v29 }
 0x762   :  { %v2901_v6 = vadd.f32 %v2892_v25, %v4471_v22 }
 0x764   :  { %2909 = vst [vmem:[#allocation13 + $0x38] sm:$0xff] %v2901_v6 }
 0x765   :  { %2922 = dma.vmem_to_hbm [thread:$0]  %s2915_s25, 1024, %s2917_s27, [#allocation4], %s3714_s17, %s3714_s17, %s3715_s18  }
 0x766   :  { %3711 = dma.done.wait [#allocation4], 1024  }
 0x767   :  { %3712 = vsyncadd [#allocation4], 4294966272 }
 0x768   :  { %2927 = vsyncpa [#allocation3], 1 }
 0x769   :  { %2928 = vsyncpa [#allocation6], 1 }
 0x76a   :  { %2929 = vsyncpa [#allocation9], 1 }
 0x76b   :  { %2930 = vsyncpa [#allocation12], 1 }
 0x76c   :  { %2931 = vsyncpa [#allocation4], 1 }

</bundles_post_ra>
